<compile_context>
chip_gen: v6e
topology: v6e:2x2x1
jax: 0.10.0
libtpu: 0.0.40
codegen_flags: <defaults>
</compile_context>

<pallas_src>
import jax
import jax.numpy as jnp
from jax.experimental import pallas as pl
from jax.experimental.pallas import tpu as pltpu

_LANES = 128
_DEFAULT_TILE_ROWS = 2048          # (2048, 128) f32 = 1 MiB per block
_MIN_KERNEL_ELEMS = 1 << 19        # ~0.5M elements: below this, fused XLA wins
_MIN_GRID_STEPS = 4                # >= 2 pipelined steps per core on 2-TC chips


def _two_cell_kernel(x_ref, o_ref):
    # x is a (tile_rows, 128) lane-dense view of interleaved (x, y) pairs:
    #   lane 2k   -> x_k
    #   lane 2k+1 -> y_k
    # Rotation by the fixed generator: lane 2k -> -y_k, lane 2k+1 -> x_k.
    x = x_ref[...]
    nxt = pltpu.roll(x, 127, axis=1)   # nxt[:, i] = x[:, (i + 1) % 128]  (XLU)
    prv = pltpu.roll(x, 1, axis=1)     # prv[:, i] = x[:, (i - 1) % 128]  (XLU)
    lane = jax.lax.broadcasted_iota(jnp.int32, x.shape, dimension=1)
    is_even = (lane & 1) == 0
    # Wrapped lanes (lane 0 of prv, lane 127 of nxt) are never selected by the
    # parity mask, so the circular wrap is harmless.
    o_ref[...] = jnp.where(is_even, -nxt, prv)


def _sublane_multiple(dtype):
    """Packed sublane count: 8 for 4-byte, 16 for 2-byte, 32 for 1-byte dtypes."""
    return max(8, 32 // jnp.dtype(dtype).itemsize)


def _choose_tile_rows(rows, want, sublane):
    """Sublane-aligned tile-row count; grid uses pl.cdiv, so no divisibility needed."""
    want = max(sublane, (want // sublane) * sublane)
    if rows <= want:
        return rows                          # full-extent block is always legal
    # Cap so the grid has at least _MIN_GRID_STEPS blocks: on 2-TC chips each
    # core then keeps >= 2 steps and retains double-buffering.
    cap = (rows // _MIN_GRID_STEPS // sublane) * sublane
    if cap <= 0:
        cap = want
    return max(sublane, min(want, cap))


def two_cell_forward(t, state, movement=None, *, tile_rows=_DEFAULT_TILE_ROWS):
    """Pallas implementation of TwoCellSystem.forward: state @ movement.T.

    `t` and `movement` are accepted for ODE-solver / module API compatibility;
    the fixed rotation generator [[0,-1],[1,0]] is a non-learned buffer, so its
    semantics are baked into the kernel and no (2,2) operand is ever moved.
    """
    del t, movement
    n, d = state.shape
    if d != 2:
        raise ValueError(f"state must have shape (N, 2), got {state.shape}")

    total = 2 * n
    if total < _MIN_KERNEL_ELEMS or total % _LANES != 0:
        # Small / non-lane-divisible inputs: fused XLA negate/stack is already
        # at HBM roofline and avoids the custom-call launch overhead.
        return jnp.stack([-state[:, 1], state[:, 0]], axis=-1)

    rows = total // _LANES
    flat = state.reshape(rows, _LANES)       # free: row-major contiguous view
    sublane = _sublane_multiple(state.dtype)
    tr = _choose_tile_rows(rows, tile_rows, sublane)
    grid = pl.cdiv(rows, tr)                 # padded/masked last block if ragged
    itemsize = jnp.dtype(state.dtype).itemsize

    out_flat = pl.pallas_call(
        _two_cell_kernel,
        out_shape=jax.ShapeDtypeStruct((rows, _LANES), state.dtype),
        grid=(grid,),
        in_specs=[pl.BlockSpec((tr, _LANES), lambda i: (i, 0))],
        out_specs=pl.BlockSpec((tr, _LANES), lambda i: (i, 0)),
        compiler_params=pltpu.CompilerParams(
            dimension_semantics=("parallel",),
        ),
        cost_estimate=pl.CostEstimate(
            flops=0,
            transcendentals=0,
            bytes_accessed=2 * total * itemsize,   # pure HBM copy: read + write
        ),
    )(flat)
    return out_flat.reshape(n, 2)


if __name__ == "__main__":
    movement = jnp.array([[0.0, -1.0], [1.0, 0.0]], dtype=jnp.float32)
    t = jnp.float32(0.0)

    # Module-scale tiny input (consistent with a 2-cell ODE state): exercises
    # the fused-XLA fast path below the kernel threshold.
    small = jax.random.normal(jax.random.PRNGKey(0), (8, 2), dtype=jnp.float32)
    out_small = jax.block_until_ready(two_cell_forward(t, small, movement))
    assert out_small.shape == (8, 2)
    assert jnp.allclose(out_small, small @ movement.T, atol=1e-6), \
        "small-input path mismatch vs reference"

    # Kernel path: rows = 8192 -> tr = 2048 (1 MiB blocks), grid = 4, i.e.
    # >= 2 pipelined steps per TensorCore on 2-TC chips.
    n_big = 524288
    big = jax.random.normal(jax.random.PRNGKey(0), (n_big, 2), dtype=jnp.float32)
    out_big = jax.block_until_ready(two_cell_forward(t, big, movement))
    assert out_big.shape == (n_big, 2)
    assert jnp.allclose(out_big, big @ movement.T, atol=1e-6), \
        "kernel path mismatch vs reference"

    # Ragged kernel path: rows = 9001 is not divisible by the tile, exercising
    # the pl.cdiv grid with a masked / padded last block.
    n_ragged = 64 * 9001
    ragged = jax.random.normal(jax.random.PRNGKey(0), (n_ragged, 2),
                               dtype=jnp.float32)
    out_ragged = jax.block_until_ready(two_cell_forward(t, ragged, movement))
    assert out_ragged.shape == (n_ragged, 2)
    assert jnp.allclose(out_ragged, ragged @ movement.T, atol=1e-6), \
        "ragged (padded last block) path mismatch vs reference"

    print("KERNEL_OK")
</pallas_src>

<mosaic_0001>
module attributes {stable_mosaic.version = 11 : i64} {
  func.func @_two_cell_kernel(%arg0: i32, %arg1: memref<2048x128xf32, #tpu.memory_space<vmem>>, %arg2: memref<2048x128xf32, #tpu.memory_space<vmem>>) attributes {dimension_semantics = [#tpu.dimension_semantics<parallel>], iteration_bounds = array<i64: 4>, scalar_prefetch = 0 : i64, scratch_operands = 0 : i64, tpu.core_type = #tpu.core_type<tc>, window_params = [{transform_indices = @transform_0, window_bounds = array<i64: 2048, 128>}, {transform_indices = @transform_1, window_bounds = array<i64: 2048, 128>}]} {
    %c0 = arith.constant 0 : index
    %c0_0 = arith.constant 0 : index
    %0 = vector.load %arg1[%c0, %c0_0] : memref<2048x128xf32, #tpu.memory_space<vmem>>, vector<2048x128xf32>
    %c127_i32 = arith.constant 127 : i32
    %1 = tpu.dynamic_rotate %0 by %c127_i32 dim 1 : vector<2048x128xf32>, i32 -> vector<2048x128xf32>
    %c1_i32 = arith.constant 1 : i32
    %2 = tpu.dynamic_rotate %0 by %c1_i32 dim 1 : vector<2048x128xf32>, i32 -> vector<2048x128xf32>
    %3 = tpu.iota {dimensions = array<i32: 1>} : vector<2048x128xi32>
    %c1_i32_1 = arith.constant 1 : i32
    %4 = vector.broadcast %c1_i32_1 : i32 to vector<2048x128xi32>
    %5 = arith.andi %3, %4 : vector<2048x128xi32>
    %c0_i32 = arith.constant 0 : i32
    %6 = vector.broadcast %c0_i32 : i32 to vector<2048x128xi32>
    %7 = arith.cmpi eq, %5, %6 : vector<2048x128xi32>
    %cst = arith.constant 0.000000e+00 : f32
    %8 = vector.broadcast %cst : f32 to vector<2048x128xf32>
    %9 = arith.subf %8, %1 : vector<2048x128xf32>
    %10 = arith.select %7, %9, %2 : vector<2048x128xi1>, vector<2048x128xf32>
    %c0_2 = arith.constant 0 : index
    %c0_3 = arith.constant 0 : index
    %11 = vector.load %arg2[%c0_2, %c0_3] : memref<2048x128xf32, #tpu.memory_space<vmem>>, vector<2048x128xf32>
    tpu.vector_store %arg2[%c0_2, %c0_3], %10 {strides = array<i32>} : memref<2048x128xf32, #tpu.memory_space<vmem>>, vector<2048x128xf32>,
    return
  }
  func.func @transform_0(%arg0: i32) -> (i32, i32) {
    %c0_i32 = arith.constant 0 : i32
    %c0_i32_0 = arith.constant 0 : i32
    return %arg0, %c0_i32 : i32, i32
  }
  func.func @transform_1(%arg0: i32) -> (i32, i32) {
    %c0_i32 = arith.constant 0 : i32
    %c0_i32_0 = arith.constant 0 : i32
    return %arg0, %c0_i32 : i32, i32
  }
}

</mosaic_0001>

<bundles_post_ra>
// kernel: tpu_custom_call.1
= control target key start
LH: loop header
LB: loop body
LE: loop exit
PB: predicated region body
PF: predicated region fallthrough
CT: control target
= control target key end

     0   :  { %6 = vsyncpa [#allocation3], 0  ;;  %s5437_s0 = inlined_call_operand.hbm [shape: f32[8192,128], index: 0, kind: input, shape index: {}]   ;;  %s5438_s1 = inlined_call_operand.hbm [shape: f32[8192,128], index: 1, kind: output, shape index: {}]  }
   0x1   :  { %8 = vsyncpa [#allocation3 + $0x1], 0 }
   0x2   :  { %9 = vsyncpa [#allocation4], 0 }
   0x3   :  { %11 = vsyncpa [#allocation4 + $0x1], 0  ;;  %s2712_s6 = smov 0   ;;  %s2714_s7 = smov 0  }
   0x4   :  { %s2716_s8 = smov 0   ;;  %s2718_s9 = smov 0  }
   0x5 LB: > { %s2733_s10 = sadd.s32 4294967295, %s2692_s9   ;;  %s2276_s11 = sadd.s32 4294967294, %s2692_s9   ;;  %s2692_s9 = sphi %s2718_s9, %s5858_s9   ;;  %s2688_s8 = sphi %s2716_s8, %s5857_s8   ;;  %s2684_s7 = sphi %s2714_s7, %s5856_s7   ;;  %s2680_s6 = sphi %s2712_s6, %s5855_s6  }
   0x6   : > { %s2737_s12 = sadd.s32 1, %s2692_s9   ;;  %s24_s13 = sadd.s32 1, %s2688_s8 }
   0x7   : > { %s21_s14 = ssub.s32 %s2692_s9, %s2737_s12  ;;  %p31_p0 = scmp.ne.s32.totalorder %s2688_s8, %s2684_s7 }
   0x8   : > { %p22_p1 = scmp.eq.s32.totalorder %s21_s14, 0  ;;  %p32_p2 = scmp.eq.s32.totalorder %s2692_s9, 0 }
   0x9   : > { %p37_p3 = scmp.ne.s32.totalorder %s2684_s7, %s2680_s6  ;;  %p38_p4 = scmp.eq.s32.totalorder %s2733_s10, 0 }
   0xa   : > { %s2749_s15 = scalar_select %p22_p1, %s2688_s8, %s24_s13  }
   0xb   : > { %p2751_p5 = por %p32_p2, %p31_p0  ;;  %p2755_p6 = por %p38_p4, %p37_p3 }
   0xc   : > { %p61_p7 = scmp.eq.s32.totalorder %s2733_s10, 3  ;;  %p67_p8 = scmp.eq.s32.totalorder %s2276_s11, 3 }
   0xd   : > { %s5442_s17 = scalar_select %p2755_p6, 1, 0 }
   0xe   : > { %p2304_p9 = scmp.lt.s32.totalorder %s2692_s9, 4  ;;  %p2761_p10 = por %p61_p7, %p31_p0 }
   0xf   : > { %p2765_p11 = por %p67_p8, %p37_p3  ;;  %s87_s20 = sand.u32 1, %s2688_s8  }
  0x10   : > { %s5443_s18 = scalar_select %p2761_p10, 1, 0 }
  0x11   : > { %s5444_s19 = scalar_select %p2765_p11, 1, 0 }
  0x12   : > { %s2290_s21 = sshll.u32 %s2692_s9, 15  ;;  %s2279_s22 = sshll.u32 %s87_s20, 11 }
  0x13   : > { %s2774_s25 = scalar_lea.hbm %s5437_s0, %s2290_s21  ;;  %s91_s26 = scalar_lea.vmem [#allocation2], %s2279_s22 }
  0x14   : > { %s98_s27 = sshll.u32 %s91_s26, 4  ;;  %p2778_p12 = pnand %p2304_p9, %p2751_p5  ;;  %s2782_s27 = int_to_ptr.vmem [resolvable:$true] %s98_s27 }
  0x15   : > { %s2784_s29 = scalar_lea.sflag [#allocation3], %s87_s20  ;;  %s2600_s30 = scalar_lea.hbm %s2774_s25, 32768 }
  0x16   : > { %p2601_p13 = scmp.ne.s32.totalorder %s2774_s25, %s2600_s30  ;;  %p2602_p0 = pneg %p2778_p12 }
  0x17   : > { %s2605_s4 = scalar_lea.hbm %s5437_s0, 131072  ;;  %p2606_p3 = scmp.lt.s32.totalorder %s2774_s25, %s5437_s0 }
  0x18   : > { %p2603_p1 = pnand %p2602_p0, %p2601_p13  ;;  %p2607_p4 = scmp.lt.s32.totalorder %s2605_s4, %s2600_s30 }
  0x1a   : > { %p2604_p2 = pneg %p2603_p1  ;;  %p2608_p5 = por %p2607_p4, %p2606_p3 }
  0x1c   : > { %p2609_p7 = pnand %p2608_p5, %p2604_p2 }
  0x1e   : > { %2612 = shalt.err (!%p2609_p7)
}
  0x1f   : > { %s2613_s13 = scalar_lea.vmem %s2782_s27, 32768  ;;  %s2694_s14 = smov [#allocation2]  }
  0x20   : > { %p2614_p8 = scmp.ne.s32.totalorder %s2782_s27, %s2613_s13  ;;  %s2618_s16 = sshll.u32 %s2694_s14, 4  ;;  %s2619_s16 = int_to_ptr.vmem [resolvable:$false] %s2618_s16 }
  0x21   : > { %s2620_s20 = scalar_lea.vmem %s2619_s16, 65536  ;;  %p2621_p1 = scmp.lt.s32.totalorder %s2782_s27, %s2619_s16 }
  0x22   : > { %p2616_p9 = pnand %p2614_p8, %p2602_p0  ;;  %p2622_p11 = scmp.lt.s32.totalorder %s2620_s20, %s2613_s13 }
  0x24   : > { %p2617_p13 = pneg %p2616_p9  ;;  %p2623_p10 = por %p2622_p11, %p2621_p1 }
  0x26   : > { %p2624_p6 = pnand %p2623_p10, %p2617_p13 }
  0x28   : > { %2627 = shalt.err (!%p2624_p6)
}
  0x29   : > { %s2695_s21 = smov 128   ;;  %s2696_s22 = smov 8  }
  0x2a   : > { %2299 = dma.hbm_to_vmem [thread:$0]  (!%p2778_p12), %s2774_s25, 32768, %s2782_s27, %s2784_s29, %s2695_s21, %s2695_s21, %s2696_s22  }
  0x2b   : > { %p2282_p0 = scmp.ge.s32.totalorder %s2692_s9, 1  ;;  %p106_p2 = scmp.lt.s32.totalorder %s2692_s9, 5 }
  0x2d   : > { %p107_p3 = pnand %p2282_p0, %p106_p2 }
  0x2f   : > { %110 = sbr.rel (%p107_p3) target bundleno = 1207 (0x4b7), region = 24 }
  0x34   : > { %s2808_s23 = sand.u32 1, %s2684_s7   ;;  %p5446_p6 = scmp.ne.s32.totalorder %s5442_s17, 0 }
  0x35   : > { %s2283_s24 = sshll.u32 %s2808_s23, 11  ;;  %s113_s26 = scalar_lea.sflag [#allocation3], %s2808_s23 }
  0x36   : > { %s2814_s30 = scalar_lea.vmem [#allocation2], %s2283_s24 }
  0x37   : > { %2671 = dma.done.wait (%p5446_p6), %s113_s26, 32768  }
  0x38   : > { %2673 = vsyncadd (%p5446_p6), %s113_s26, 4294934528  ;;  %v139_v0 = vld [vmem:[%s2814_s30 + $0x10] sm:$0xff]  ;;  %v137_v1 = vld [vmem:[%s2814_s30] sm:$0xff]  ;;  %s2697_s25 = smov 127   ;;  %s2698_s17 = smov 1  }
  0x39   : > { %397 = vrot.lane.b32.xlu1 %v139_v0, %s2697_s25  ;;  %393 = vrot.lane.b32.xlu0 %v137_v1, %s2697_s25  ;;  %v140_v2 = vld [vmem:[%s2814_s30 + $0x18] sm:$0xff]  ;;  %v138_v3 = vld [vmem:[%s2814_s30 + $0x8] sm:$0xff]  ;;  %s3972_s27 = scalar_lea.vmem [#allocation5], %s2283_s24  ;;  %s2291_s28 = sshll.u32 %s2733_s10, 15 }
  0x3a   : > { %v142_v4 = vld [vmem:[%s2814_s30 + $0x28] sm:$0xff]  ;;  %v141_v5 = vld [vmem:[%s2814_s30 + $0x20] sm:$0xff]  ;;  %v144_v6 = vld [vmem:[%s2814_s30 + $0x38] sm:$0xff]  ;;  %s2203_s29 = sshll.u32 %s3972_s27, 4  ;;  %s5387_s4 = scalar_lea.hbm %s5438_s1, %s2291_s28  ;;  %s5389_s29 = int_to_ptr.vmem [resolvable:$true] %s2203_s29 }
  0x3b   : > { %v143_v7 = vld [vmem:[%s2814_s30 + $0x30] sm:$0xff]  ;;  %v146_v8 = vld [vmem:[%s2814_s30 + $0x48] sm:$0xff]  ;;  %v145_v9 = vld [vmem:[%s2814_s30 + $0x40] sm:$0xff]  ;;  %s2190_s10 = scalar_lea.sflag [#allocation4], %s2808_s23  ;;  %s2628_s5 = scalar_lea.vmem %s5389_s29, 32768 }
  0x3c   : > { %v148_v10 = vld [vmem:[%s2814_s30 + $0x58] sm:$0xff]  ;;  %v147_v11 = vld [vmem:[%s2814_s30 + $0x50] sm:$0xff]  ;;  %v150_v12 = vld [vmem:[%s2814_s30 + $0x68] sm:$0xff]  ;;  %p2629_p10 = scmp.ne.s32.totalorder %s5389_s29, %s2628_s5  ;;  %p5853_p11 = scmp.ne.s32.totalorder %s5443_s18, 0 }
  0x3d   : > { %399 = vrot.lane.b32.xlu1 %v140_v2, %s2697_s25  ;;  %395 = vrot.lane.b32.xlu0 %v138_v3, %s2697_s25  ;;  %v149_v13 = vld [vmem:[%s2814_s30 + $0x60] sm:$0xff]  ;;  %v152_v14 = vld [vmem:[%s2814_s30 + $0x78] sm:$0xff]  ;;  %s2699_s11 = smov [#allocation5]  }
  0x3e   : > { %v151_v15 = vld [vmem:[%s2814_s30 + $0x70] sm:$0xff]  ;;  %v154_v16 = vld [vmem:[%s2814_s30 + $0x88] sm:$0xff]  ;;  %v153_v17 = vld [vmem:[%s2814_s30 + $0x80] sm:$0xff]  ;;  %p2630_p12 = pnand %p2629_p10, %p5853_p11  ;;  %s2632_s13 = sshll.u32 %s2699_s11, 4  ;;  %s2633_s13 = int_to_ptr.vmem [resolvable:$false] %s2632_s13 }
  0x3f   : > { %v156_v18 = vld [vmem:[%s2814_s30 + $0x98] sm:$0xff]  ;;  %v155_v19 = vld [vmem:[%s2814_s30 + $0x90] sm:$0xff]  ;;  %v158_v20 = vld [vmem:[%s2814_s30 + $0xa8] sm:$0xff]  ;;  %s2634_s14 = scalar_lea.vmem %s2633_s13, 65536  ;;  %p2635_p5 = scmp.lt.s32.totalorder %s5389_s29, %s2633_s13 }
  0x40   : > { %v157_v21 = vld [vmem:[%s2814_s30 + $0xa0] sm:$0xff]  ;;  %v160_v22 = vld [vmem:[%s2814_s30 + $0xb8] sm:$0xff]  ;;  %v159_v23 = vld [vmem:[%s2814_s30 + $0xb0] sm:$0xff]  ;;  %p2631_p4 = pneg %p2630_p12  ;;  %p2636_p7 = scmp.lt.s32.totalorder %s2634_s14, %s2628_s5 }
  0x41   : > { %403 = vrot.lane.b32.xlu1 %v142_v4, %s2697_s25  ;;  %401 = vrot.lane.b32.xlu0 %v141_v5, %s2697_s25  ;;  %v162_v24 = vld [vmem:[%s2814_s30 + $0xc8] sm:$0xff]  ;;  %v161_v25 = vld [vmem:[%s2814_s30 + $0xc0] sm:$0xff] }
  0x42   : > { %v164_v26 = vld [vmem:[%s2814_s30 + $0xd8] sm:$0xff]  ;;  %v163_v27 = vld [vmem:[%s2814_s30 + $0xd0] sm:$0xff]  ;;  %v166_v28 = vld [vmem:[%s2814_s30 + $0xe8] sm:$0xff]  ;;  %p2637_p8 = por %p2636_p7, %p2635_p5 }
  0x43   : > { %v165_v29 = vld [vmem:[%s2814_s30 + $0xe0] sm:$0xff]  ;;  %v168_v30 = vld [vmem:[%s2814_s30 + $0xf8] sm:$0xff]  ;;  %v167_v31 = vld [vmem:[%s2814_s30 + $0xf0] sm:$0xff] }
  0x44   : > { %v170_v32 = vld [vmem:[%s2814_s30 + $0x108] sm:$0xff]  ;;  %v169_v33 = vld [vmem:[%s2814_s30 + $0x100] sm:$0xff]  ;;  %v172_v34 = vld [vmem:[%s2814_s30 + $0x118] sm:$0xff]  ;;  %p2638_p9 = pnand %p2637_p8, %p2631_p4 }
  0x45   : > { %407 = vrot.lane.b32.xlu1 %v144_v6, %s2697_s25  ;;  %405 = vrot.lane.b32.xlu0 %v143_v7, %s2697_s25  ;;  %v171_v35 = vld [vmem:[%s2814_s30 + $0x110] sm:$0xff]  ;;  %v174_v36 = vld [vmem:[%s2814_s30 + $0x128] sm:$0xff] }
  0x46   : > { %v173_v37 = vld [vmem:[%s2814_s30 + $0x120] sm:$0xff]  ;;  %v176_v38 = vld [vmem:[%s2814_s30 + $0x138] sm:$0xff]  ;;  %v175_v39 = vld [vmem:[%s2814_s30 + $0x130] sm:$0xff] }
  0x47   : > { %v178_v40 = vld [vmem:[%s2814_s30 + $0x148] sm:$0xff]  ;;  %v177_v41 = vld [vmem:[%s2814_s30 + $0x140] sm:$0xff]  ;;  %v180_v42 = vld [vmem:[%s2814_s30 + $0x158] sm:$0xff] }
  0x48   : > { %v179_v43 = vld [vmem:[%s2814_s30 + $0x150] sm:$0xff]  ;;  %v182_v44 = vld [vmem:[%s2814_s30 + $0x168] sm:$0xff]  ;;  %v181_v45 = vld [vmem:[%s2814_s30 + $0x160] sm:$0xff] }
  0x49   : > { %411 = vrot.lane.b32.xlu1 %v146_v8, %s2697_s25  ;;  %409 = vrot.lane.b32.xlu0 %v145_v9, %s2697_s25  ;;  %v184_v46 = vld [vmem:[%s2814_s30 + $0x178] sm:$0xff]  ;;  %v183_v47 = vld [vmem:[%s2814_s30 + $0x170] sm:$0xff] }
  0x4a   : > { %v186_v48 = vld [vmem:[%s2814_s30 + $0x188] sm:$0xff]  ;;  %v185_v49 = vld [vmem:[%s2814_s30 + $0x180] sm:$0xff]  ;;  %v188_v50 = vld [vmem:[%s2814_s30 + $0x198] sm:$0xff] }
  0x4b   : > { %v187_v51 = vld [vmem:[%s2814_s30 + $0x190] sm:$0xff]  ;;  %v190_v52 = vld [vmem:[%s2814_s30 + $0x1a8] sm:$0xff]  ;;  %v189_v53 = vld [vmem:[%s2814_s30 + $0x1a0] sm:$0xff] }
  0x4c   : > { %v192_v54 = vld [vmem:[%s2814_s30 + $0x1b8] sm:$0xff]  ;;  %v191_v55 = vld [vmem:[%s2814_s30 + $0x1b0] sm:$0xff]  ;;  %v194_v56 = vld [vmem:[%s2814_s30 + $0x1c8] sm:$0xff] }
  0x4d   : > { %415 = vrot.lane.b32.xlu1 %v148_v10, %s2697_s25  ;;  %413 = vrot.lane.b32.xlu0 %v147_v11, %s2697_s25  ;;  %v193_v57 = vld [vmem:[%s2814_s30 + $0x1c0] sm:$0xff]  ;;  %v196_v58 = vld [vmem:[%s2814_s30 + $0x1d8] sm:$0xff] }
  0x4e   : > { %v195_v59 = vld [vmem:[%s2814_s30 + $0x1d0] sm:$0xff]  ;;  %v198_v62 = vld [vmem:[%s2814_s30 + $0x1e8] sm:$0xff]  ;;  %v197_v63 = vld [vmem:[%s2814_s30 + $0x1e0] sm:$0xff] }
  0x4f   : > { %v200_v2 = vld [vmem:[%s2814_s30 + $0x1f8] sm:$0xff]  ;;  %v199_v3 = vld [vmem:[%s2814_s30 + $0x1f0] sm:$0xff]  ;;  %v202_v6 = vld [vmem:[%s2814_s30 + $0x208] sm:$0xff] }
  0x50   : > { %v201_v7 = vld [vmem:[%s2814_s30 + $0x200] sm:$0xff]  ;;  %v204_v10 = vld [vmem:[%s2814_s30 + $0x218] sm:$0xff]  ;;  %v203_v11 = vld [vmem:[%s2814_s30 + $0x210] sm:$0xff] }
  0x51   : > { %419 = vrot.lane.b32.xlu1 %v150_v12, %s2697_s25  ;;  %417 = vrot.lane.b32.xlu0 %v149_v13, %s2697_s25 }
  0x55   : > { %423 = vrot.lane.b32.xlu1 %v152_v14, %s2697_s25  ;;  %421 = vrot.lane.b32.xlu0 %v151_v15, %s2697_s25  ;;  %v206_v14 = vld [vmem:[%s2814_s30 + $0x228] sm:$0xff]  ;;  %v205_v15 = vld [vmem:[%s2814_s30 + $0x220] sm:$0xff] }
  0x59   : > { %427 = vrot.lane.b32.xlu1 %v154_v16, %s2697_s25  ;;  %425 = vrot.lane.b32.xlu0 %v153_v17, %s2697_s25 }
  0x5d   : > { %431 = vrot.lane.b32.xlu1 %v156_v18, %s2697_s25  ;;  %429 = vrot.lane.b32.xlu0 %v155_v19, %s2697_s25  ;;  %v208_v18 = vld [vmem:[%s2814_s30 + $0x238] sm:$0xff]  ;;  %v207_v19 = vld [vmem:[%s2814_s30 + $0x230] sm:$0xff] }
  0x61   : > { %435 = vrot.lane.b32.xlu1 %v158_v20, %s2697_s25  ;;  %433 = vrot.lane.b32.xlu0 %v157_v21, %s2697_s25 }
  0x65   : > { %439 = vrot.lane.b32.xlu1 %v160_v22, %s2697_s25  ;;  %437 = vrot.lane.b32.xlu0 %v159_v23, %s2697_s25  ;;  %v210_v22 = vld [vmem:[%s2814_s30 + $0x248] sm:$0xff]  ;;  %v209_v23 = vld [vmem:[%s2814_s30 + $0x240] sm:$0xff] }
  0x69   : > { %443 = vrot.lane.b32.xlu1 %v162_v24, %s2697_s25  ;;  %441 = vrot.lane.b32.xlu0 %v161_v25, %s2697_s25 }
  0x6d   : > { %447 = vrot.lane.b32.xlu1 %v164_v26, %s2697_s25  ;;  %445 = vrot.lane.b32.xlu0 %v163_v27, %s2697_s25  ;;  %v212_v26 = vld [vmem:[%s2814_s30 + $0x258] sm:$0xff]  ;;  %v211_v27 = vld [vmem:[%s2814_s30 + $0x250] sm:$0xff] }
  0x71   : > { %451 = vrot.lane.b32.xlu1 %v166_v28, %s2697_s25  ;;  %449 = vrot.lane.b32.xlu0 %v165_v29, %s2697_s25 }
  0x75   : > { %455 = vrot.lane.b32.xlu1 %v168_v30, %s2697_s25  ;;  %453 = vrot.lane.b32.xlu0 %v167_v31, %s2697_s25  ;;  %v214_v30 = vld [vmem:[%s2814_s30 + $0x268] sm:$0xff]  ;;  %v213_v31 = vld [vmem:[%s2814_s30 + $0x260] sm:$0xff] }
  0x79   : > { %459 = vrot.lane.b32.xlu1 %v170_v32, %s2697_s25  ;;  %457 = vrot.lane.b32.xlu0 %v169_v33, %s2697_s25 }
  0x7d   : > { %463 = vrot.lane.b32.xlu1 %v172_v34, %s2697_s25  ;;  %461 = vrot.lane.b32.xlu0 %v171_v35, %s2697_s25  ;;  %v216_v34 = vld [vmem:[%s2814_s30 + $0x278] sm:$0xff]  ;;  %v215_v35 = vld [vmem:[%s2814_s30 + $0x270] sm:$0xff] }
  0x81   : > { %467 = vrot.lane.b32.xlu1 %v174_v36, %s2697_s25  ;;  %465 = vrot.lane.b32.xlu0 %v173_v37, %s2697_s25 }
  0x85   : > { %471 = vrot.lane.b32.xlu1 %v176_v38, %s2697_s25  ;;  %469 = vrot.lane.b32.xlu0 %v175_v39, %s2697_s25  ;;  %v218_v38 = vld [vmem:[%s2814_s30 + $0x288] sm:$0xff]  ;;  %v217_v39 = vld [vmem:[%s2814_s30 + $0x280] sm:$0xff] }
  0x89   : > { %475 = vrot.lane.b32.xlu1 %v178_v40, %s2697_s25  ;;  %473 = vrot.lane.b32.xlu0 %v177_v41, %s2697_s25 }
  0x8d   : > { %479 = vrot.lane.b32.xlu1 %v180_v42, %s2697_s25  ;;  %477 = vrot.lane.b32.xlu0 %v179_v43, %s2697_s25  ;;  %v220_v42 = vld [vmem:[%s2814_s30 + $0x298] sm:$0xff]  ;;  %v219_v43 = vld [vmem:[%s2814_s30 + $0x290] sm:$0xff] }
  0x91   : > { %483 = vrot.lane.b32.xlu1 %v182_v44, %s2697_s25  ;;  %481 = vrot.lane.b32.xlu0 %v181_v45, %s2697_s25 }
  0x95   : > { %487 = vrot.lane.b32.xlu1 %v184_v46, %s2697_s25  ;;  %485 = vrot.lane.b32.xlu0 %v183_v47, %s2697_s25  ;;  %v222_v46 = vld [vmem:[%s2814_s30 + $0x2a8] sm:$0xff]  ;;  %v221_v47 = vld [vmem:[%s2814_s30 + $0x2a0] sm:$0xff] }
  0x99   : > { %491 = vrot.lane.b32.xlu1 %v186_v48, %s2697_s25  ;;  %489 = vrot.lane.b32.xlu0 %v185_v49, %s2697_s25 }
  0x9d   : > { %495 = vrot.lane.b32.xlu1 %v188_v50, %s2697_s25  ;;  %493 = vrot.lane.b32.xlu0 %v187_v51, %s2697_s25  ;;  %v224_v50 = vld [vmem:[%s2814_s30 + $0x2b8] sm:$0xff]  ;;  %v223_v51 = vld [vmem:[%s2814_s30 + $0x2b0] sm:$0xff] }
  0xa1   : > { %499 = vrot.lane.b32.xlu1 %v190_v52, %s2697_s25  ;;  %497 = vrot.lane.b32.xlu0 %v189_v53, %s2697_s25 }
  0xa5   : > { %503 = vrot.lane.b32.xlu1 %v192_v54, %s2697_s25  ;;  %501 = vrot.lane.b32.xlu0 %v191_v55, %s2697_s25  ;;  %v226_v54 = vld [vmem:[%s2814_s30 + $0x2c8] sm:$0xff]  ;;  %v225_v55 = vld [vmem:[%s2814_s30 + $0x2c0] sm:$0xff] }
  0xa9   : > { %507 = vrot.lane.b32.xlu1 %v194_v56, %s2697_s25  ;;  %505 = vrot.lane.b32.xlu0 %v193_v57, %s2697_s25 }
  0xab   : > { %v2938_v60 = vpop.permute.xlu1 %397  ;;  %v2940_v61 = vpop.permute.xlu0 %393 }
  0xad   : > { %511 = vrot.lane.b32.xlu1 %v196_v58, %s2697_s25  ;;  %509 = vrot.lane.b32.xlu0 %v195_v59, %s2697_s25  ;;  %v228_v58 = vld [vmem:[%s2814_s30 + $0x2d8] sm:$0xff]  ;;  %v227_v59 = vld [vmem:[%s2814_s30 + $0x2d0] sm:$0xff] }
  0xaf   : > { %v2946_v0 = vpop.permute.xlu1 %399  ;;  %v2948_v1 = vpop.permute.xlu0 %395 }
  0xb1   : > { %515 = vrot.lane.b32.xlu1 %v198_v62, %s2697_s25  ;;  %513 = vrot.lane.b32.xlu0 %v197_v63, %s2697_s25 }
  0xb3   : > { %v2954_v4 = vpop.permute.xlu1 %403  ;;  %v2956_v5 = vpop.permute.xlu0 %401 }
  0xb5   : > { %519 = vrot.lane.b32.xlu1 %v200_v2, %s2697_s25  ;;  %517 = vrot.lane.b32.xlu0 %v199_v3, %s2697_s25  ;;  %v230_v2 = vld [vmem:[%s2814_s30 + $0x2e8] sm:$0xff]  ;;  %v229_v3 = vld [vmem:[%s2814_s30 + $0x2e0] sm:$0xff] }
  0xb7   : > { %v2962_v8 = vpop.permute.xlu1 %407  ;;  %v2964_v9 = vpop.permute.xlu0 %405 }
  0xb9   : > { %523 = vrot.lane.b32.xlu1 %v202_v6, %s2697_s25  ;;  %521 = vrot.lane.b32.xlu0 %v201_v7, %s2697_s25 }
  0xbb   : > { %v2970_v12 = vpop.permute.xlu1 %411  ;;  %v2972_v13 = vpop.permute.xlu0 %409 }
  0xbd   : > { %527 = vrot.lane.b32.xlu1 %v204_v10, %s2697_s25  ;;  %525 = vrot.lane.b32.xlu0 %v203_v11, %s2697_s25  ;;  %v232_v10 = vld [vmem:[%s2814_s30 + $0x2f8] sm:$0xff]  ;;  %v231_v11 = vld [vmem:[%s2814_s30 + $0x2f0] sm:$0xff] }
  0xbf   : > { %v2978_v16 = vpop.permute.xlu1 %415  ;;  %v2980_v17 = vpop.permute.xlu0 %413 }
  0xc1   : > { %531 = vrot.lane.b32.xlu1 %v206_v14, %s2697_s25  ;;  %529 = vrot.lane.b32.xlu0 %v205_v15, %s2697_s25 }
  0xc3   : > { %v2986_v20 = vpop.permute.xlu1 %419  ;;  %v2988_v21 = vpop.permute.xlu0 %417 }
  0xc5   : > { %535 = vrot.lane.b32.xlu1 %v208_v18, %s2697_s25  ;;  %533 = vrot.lane.b32.xlu0 %v207_v19, %s2697_s25  ;;  %v234_v18 = vld [vmem:[%s2814_s30 + $0x308] sm:$0xff]  ;;  %v233_v19 = vld [vmem:[%s2814_s30 + $0x300] sm:$0xff] }
  0xc7   : > { %v2994_v24 = vpop.permute.xlu1 %423  ;;  %v2996_v25 = vpop.permute.xlu0 %421 }
  0xc9   : > { %539 = vrot.lane.b32.xlu1 %v210_v22, %s2697_s25  ;;  %537 = vrot.lane.b32.xlu0 %v209_v23, %s2697_s25 }
  0xcb   : > { %v3002_v28 = vpop.permute.xlu1 %427  ;;  %v3004_v29 = vpop.permute.xlu0 %425 }
  0xcd   : > { %543 = vrot.lane.b32.xlu1 %v212_v26, %s2697_s25  ;;  %541 = vrot.lane.b32.xlu0 %v211_v27, %s2697_s25  ;;  %v236_v26 = vld [vmem:[%s2814_s30 + $0x318] sm:$0xff]  ;;  %v235_v27 = vld [vmem:[%s2814_s30 + $0x310] sm:$0xff] }
  0xcf   : > { %v3010_v32 = vpop.permute.xlu1 %431  ;;  %v3012_v33 = vpop.permute.xlu0 %429 }
  0xd1   : > { %547 = vrot.lane.b32.xlu1 %v214_v30, %s2697_s25  ;;  %545 = vrot.lane.b32.xlu0 %v213_v31, %s2697_s25 }
  0xd3   : > { %v3018_v36 = vpop.permute.xlu1 %435  ;;  %v3020_v37 = vpop.permute.xlu0 %433 }
  0xd5   : > { %551 = vrot.lane.b32.xlu1 %v216_v34, %s2697_s25  ;;  %549 = vrot.lane.b32.xlu0 %v215_v35, %s2697_s25  ;;  %v238_v34 = vld [vmem:[%s2814_s30 + $0x328] sm:$0xff]  ;;  %v237_v35 = vld [vmem:[%s2814_s30 + $0x320] sm:$0xff] }
  0xd7   : > { %v3026_v40 = vpop.permute.xlu1 %439  ;;  %v3028_v41 = vpop.permute.xlu0 %437 }
  0xd9   : > { %555 = vrot.lane.b32.xlu1 %v218_v38, %s2697_s25  ;;  %553 = vrot.lane.b32.xlu0 %v217_v39, %s2697_s25 }
  0xdb   : > { %v3034_v44 = vpop.permute.xlu1 %443  ;;  %v3036_v45 = vpop.permute.xlu0 %441 }
  0xdd   : > { %559 = vrot.lane.b32.xlu1 %v220_v42, %s2697_s25  ;;  %557 = vrot.lane.b32.xlu0 %v219_v43, %s2697_s25  ;;  %v240_v42 = vld [vmem:[%s2814_s30 + $0x338] sm:$0xff]  ;;  %v239_v43 = vld [vmem:[%s2814_s30 + $0x330] sm:$0xff] }
  0xdf   : > { %v3042_v48 = vpop.permute.xlu1 %447  ;;  %v3044_v49 = vpop.permute.xlu0 %445 }
  0xe1   : > { %563 = vrot.lane.b32.xlu1 %v222_v46, %s2697_s25  ;;  %561 = vrot.lane.b32.xlu0 %v221_v47, %s2697_s25 }
  0xe3   : > { %v3050_v52 = vpop.permute.xlu1 %451  ;;  %v3052_v53 = vpop.permute.xlu0 %449 }
  0xe5   : > { %567 = vrot.lane.b32.xlu1 %v224_v50, %s2697_s25  ;;  %565 = vrot.lane.b32.xlu0 %v223_v51, %s2697_s25  ;;  %v242_v50 = vld [vmem:[%s2814_s30 + $0x348] sm:$0xff]  ;;  %v241_v51 = vld [vmem:[%s2814_s30 + $0x340] sm:$0xff] }
  0xe7   : > { %v3058_v56 = vpop.permute.xlu1 %455  ;;  %v3060_v57 = vpop.permute.xlu0 %453 }
  0xe9   : > { %571 = vrot.lane.b32.xlu1 %v226_v54, %s2697_s25  ;;  %569 = vrot.lane.b32.xlu0 %v225_v55, %s2697_s25 }
  0xeb   : > { %v3066_v62 = vpop.permute.xlu1 %459  ;;  %v3068_v63 = vpop.permute.xlu0 %457 }
  0xed   : > { %575 = vrot.lane.b32.xlu1 %v228_v58, %s2697_s25  ;;  %573 = vrot.lane.b32.xlu0 %v227_v59, %s2697_s25  ;;  %v244_v58 = vld [vmem:[%s2814_s30 + $0x358] sm:$0xff]  ;;  %v243_v59 = vld [vmem:[%s2814_s30 + $0x350] sm:$0xff] }
  0xef   : > { %v3074_v6 = vpop.permute.xlu1 %463  ;;  %v3076_v7 = vpop.permute.xlu0 %461 }
  0xf1   : > { %579 = vrot.lane.b32.xlu1 %v230_v2, %s2697_s25  ;;  %577 = vrot.lane.b32.xlu0 %v229_v3, %s2697_s25 }
  0xf3   : > { %v3082_v14 = vpop.permute.xlu1 %467  ;;  %v3084_v15 = vpop.permute.xlu0 %465 }
  0xf5   : > { %583 = vrot.lane.b32.xlu1 %v232_v10, %s2697_s25  ;;  %581 = vrot.lane.b32.xlu0 %v231_v11, %s2697_s25  ;;  %v246_v10 = vld [vmem:[%s2814_s30 + $0x368] sm:$0xff]  ;;  %v245_v11 = vld [vmem:[%s2814_s30 + $0x360] sm:$0xff] }
  0xf7   : > { %v3090_v22 = vpop.permute.xlu1 %471  ;;  %v3092_v23 = vpop.permute.xlu0 %469 }
  0xf9   : > { %587 = vrot.lane.b32.xlu1 %v234_v18, %s2697_s25  ;;  %585 = vrot.lane.b32.xlu0 %v233_v19, %s2697_s25 }
  0xfb   : > { %v3098_v30 = vpop.permute.xlu1 %475  ;;  %v3100_v31 = vpop.permute.xlu0 %473 }
  0xfd   : > { %591 = vrot.lane.b32.xlu1 %v236_v26, %s2697_s25  ;;  %589 = vrot.lane.b32.xlu0 %v235_v27, %s2697_s25  ;;  %v248_v26 = vld [vmem:[%s2814_s30 + $0x378] sm:$0xff]  ;;  %v247_v27 = vld [vmem:[%s2814_s30 + $0x370] sm:$0xff] }
  0xff   : > { %v3106_v38 = vpop.permute.xlu1 %479  ;;  %v3108_v39 = vpop.permute.xlu0 %477 }
 0x101   : > { %595 = vrot.lane.b32.xlu1 %v238_v34, %s2697_s25  ;;  %593 = vrot.lane.b32.xlu0 %v237_v35, %s2697_s25 }
 0x103   : > { %v3114_v46 = vpop.permute.xlu1 %483  ;;  %v3116_v47 = vpop.permute.xlu0 %481 }
 0x105   : > { %599 = vrot.lane.b32.xlu1 %v240_v42, %s2697_s25  ;;  %597 = vrot.lane.b32.xlu0 %v239_v43, %s2697_s25  ;;  %v250_v42 = vld [vmem:[%s2814_s30 + $0x388] sm:$0xff]  ;;  %v249_v43 = vld [vmem:[%s2814_s30 + $0x380] sm:$0xff] }
 0x107   : > { %v3122_v54 = vpop.permute.xlu1 %487  ;;  %v3124_v55 = vpop.permute.xlu0 %485 }
 0x109   : > { %603 = vrot.lane.b32.xlu1 %v242_v50, %s2697_s25  ;;  %601 = vrot.lane.b32.xlu0 %v241_v51, %s2697_s25 }
 0x10b   : > { %v3130_v2 = vpop.permute.xlu1 %491  ;;  %v3132_v3 = vpop.permute.xlu0 %489 }
 0x10d   : > { %607 = vrot.lane.b32.xlu1 %v244_v58, %s2697_s25  ;;  %605 = vrot.lane.b32.xlu0 %v243_v59, %s2697_s25  ;;  %v252_v58 = vld [vmem:[%s2814_s30 + $0x398] sm:$0xff]  ;;  %v251_v59 = vld [vmem:[%s2814_s30 + $0x390] sm:$0xff] }
 0x10f   : > { %v3138_v18 = vpop.permute.xlu1 %495  ;;  %v3140_v19 = vpop.permute.xlu0 %493 }
 0x111   : > { %611 = vrot.lane.b32.xlu1 %v246_v10, %s2697_s25  ;;  %609 = vrot.lane.b32.xlu0 %v245_v11, %s2697_s25 }
 0x113   : > { %v3146_v34 = vpop.permute.xlu1 %499  ;;  %v3148_v35 = vpop.permute.xlu0 %497 }
 0x114   : > { %5447 = vst [vmem:[#allocation8_spill] sm:$0xff] %v3148_v35  ;;  %v2400_v35 = vld [vmem:[%s2814_s30 + $0x1c8] sm:$0xff] }
 0x115   : > { %615 = vrot.lane.b32.xlu1 %v248_v26, %s2697_s25  ;;  %613 = vrot.lane.b32.xlu0 %v247_v27, %s2697_s25  ;;  %v254_v26 = vld [vmem:[%s2814_s30 + $0x3a8] sm:$0xff]  ;;  %v253_v27 = vld [vmem:[%s2814_s30 + $0x3a0] sm:$0xff] }
 0x117   : > { %v3154_v50 = vpop.permute.xlu1 %503  ;;  %v3156_v51 = vpop.permute.xlu0 %501 }
 0x118   : > { %5448 = vst [vmem:[#allocation9_spill] sm:$0xff] %v3154_v50  ;;  %5449 = vst [vmem:[#allocation10_spill] sm:$0xff] %v3156_v51 }
 0x119   : > { %619 = vrot.lane.b32.xlu1 %v250_v42, %s2697_s25  ;;  %617 = vrot.lane.b32.xlu0 %v249_v43, %s2697_s25  ;;  %v256_v43 = vld [vmem:[%s2814_s30 + $0x3b8] sm:$0xff] }
 0x11b   : > { %v3162_v10 = vpop.permute.xlu1 %507  ;;  %v3164_v11 = vpop.permute.xlu0 %505 }
 0x11c   : > { %5450 = vst [vmem:[#allocation11_spill] sm:$0xff] %v3162_v10  ;;  %5451 = vst [vmem:[#allocation12_spill] sm:$0xff] %v3164_v11  ;;  %v255_v10 = vld [vmem:[%s2814_s30 + $0x3b0] sm:$0xff] }
 0x11d   : > { %623 = vrot.lane.b32.xlu1 %v252_v58, %s2697_s25  ;;  %621 = vrot.lane.b32.xlu0 %v251_v59, %s2697_s25  ;;  %v258_v59 = vld [vmem:[%s2814_s30 + $0x3c8] sm:$0xff] }
 0x11f   : > { %v3170_v51 = vpop.permute.xlu1 %511  ;;  %v3172_v42 = vpop.permute.xlu0 %509 }
 0x120   : > { %5452 = vst [vmem:[#allocation13_spill] sm:$0xff] %v3170_v51  ;;  %5453 = vst [vmem:[#allocation14_spill] sm:$0xff] %v3172_v42  ;;  %v257_v51 = vld [vmem:[%s2814_s30 + $0x3c0] sm:$0xff] }
 0x121   : > { %627 = vrot.lane.b32.xlu1 %v254_v26, %s2697_s25  ;;  %625 = vrot.lane.b32.xlu0 %v253_v27, %s2697_s25  ;;  %v260_v27 = vld [vmem:[%s2814_s30 + $0x3d8] sm:$0xff] }
 0x123   : > { %v3178_v11 = vpop.permute.xlu1 %515  ;;  %v3180_v58 = vpop.permute.xlu0 %513 }
 0x124   : > { %5454 = vst [vmem:[#allocation15_spill] sm:$0xff] %v3178_v11  ;;  %5455 = vst [vmem:[#allocation16_spill] sm:$0xff] %v3180_v58  ;;  %v259_v11 = vld [vmem:[%s2814_s30 + $0x3d0] sm:$0xff] }
 0x125   : > { %631 = vrot.lane.b32.xlu1 %v256_v43, %s2697_s25  ;;  %629 = vrot.lane.b32.xlu0 %v255_v10, %s2697_s25  ;;  %v262_v10 = vld [vmem:[%s2814_s30 + $0x3e8] sm:$0xff] }
 0x127   : > { %v3186_v42 = vpop.permute.xlu1 %519  ;;  %v3188_v26 = vpop.permute.xlu0 %517 }
 0x128   : > { %5456 = vst [vmem:[#allocation17_spill] sm:$0xff] %v3186_v42  ;;  %5457 = vst [vmem:[#allocation18_spill] sm:$0xff] %v3188_v26  ;;  %v261_v42 = vld [vmem:[%s2814_s30 + $0x3e0] sm:$0xff] }
 0x129   : > { %635 = vrot.lane.b32.xlu1 %v258_v59, %s2697_s25  ;;  %633 = vrot.lane.b32.xlu0 %v257_v51, %s2697_s25  ;;  %v264_v51 = vld [vmem:[%s2814_s30 + $0x3f8] sm:$0xff] }
 0x12b   : > { %v3194_v58 = vpop.permute.xlu1 %523  ;;  %v3196_v43 = vpop.permute.xlu0 %521 }
 0x12c   : > { %5458 = vst [vmem:[#allocation19_spill] sm:$0xff] %v3194_v58  ;;  %5459 = vst [vmem:[#allocation20_spill] sm:$0xff] %v3196_v43  ;;  %v263_v58 = vld [vmem:[%s2814_s30 + $0x3f0] sm:$0xff] }
 0x12d   : > { %639 = vrot.lane.b32.xlu1 %v260_v27, %s2697_s25  ;;  %637 = vrot.lane.b32.xlu0 %v259_v11, %s2697_s25  ;;  %v266_v11 = vld [vmem:[%s2814_s30 + $0x408] sm:$0xff] }
 0x12f   : > { %v3202_v26 = vpop.permute.xlu1 %527  ;;  %v3204_v59 = vpop.permute.xlu0 %525 }
 0x130   : > { %5460 = vst [vmem:[#allocation21_spill] sm:$0xff] %v3202_v26  ;;  %5461 = vst [vmem:[#allocation22_spill] sm:$0xff] %v3204_v59  ;;  %v265_v26 = vld [vmem:[%s2814_s30 + $0x400] sm:$0xff] }
 0x131   : > { %643 = vrot.lane.b32.xlu1 %v262_v10, %s2697_s25  ;;  %641 = vrot.lane.b32.xlu0 %v261_v42, %s2697_s25  ;;  %v268_v42 = vld [vmem:[%s2814_s30 + $0x418] sm:$0xff] }
 0x133   : > { %v3210_v43 = vpop.permute.xlu1 %531  ;;  %v3212_v27 = vpop.permute.xlu0 %529 }
 0x134   : > { %5462 = vst [vmem:[#allocation23_spill] sm:$0xff] %v3210_v43  ;;  %5463 = vst [vmem:[#allocation24_spill] sm:$0xff] %v3212_v27  ;;  %v267_v43 = vld [vmem:[%s2814_s30 + $0x410] sm:$0xff] }
 0x135   : > { %647 = vrot.lane.b32.xlu1 %v264_v51, %s2697_s25  ;;  %645 = vrot.lane.b32.xlu0 %v263_v58, %s2697_s25  ;;  %v270_v58 = vld [vmem:[%s2814_s30 + $0x428] sm:$0xff] }
 0x137   : > { %v3218_v59 = vpop.permute.xlu1 %535  ;;  %v3220_v10 = vpop.permute.xlu0 %533 }
 0x138   : > { %5464 = vst [vmem:[#allocation25_spill] sm:$0xff] %v3218_v59  ;;  %5465 = vst [vmem:[#allocation26_spill] sm:$0xff] %v3220_v10  ;;  %v269_v59 = vld [vmem:[%s2814_s30 + $0x420] sm:$0xff] }
 0x139   : > { %651 = vrot.lane.b32.xlu1 %v266_v11, %s2697_s25  ;;  %649 = vrot.lane.b32.xlu0 %v265_v26, %s2697_s25  ;;  %v272_v26 = vld [vmem:[%s2814_s30 + $0x438] sm:$0xff] }
 0x13b   : > { %v3226_v27 = vpop.permute.xlu1 %539  ;;  %v3228_v51 = vpop.permute.xlu0 %537 }
 0x13c   : > { %5466 = vst [vmem:[#allocation27_spill] sm:$0xff] %v3226_v27  ;;  %5467 = vst [vmem:[#allocation28_spill] sm:$0xff] %v3228_v51  ;;  %v271_v27 = vld [vmem:[%s2814_s30 + $0x430] sm:$0xff] }
 0x13d   : > { %655 = vrot.lane.b32.xlu1 %v268_v42, %s2697_s25  ;;  %653 = vrot.lane.b32.xlu0 %v267_v43, %s2697_s25  ;;  %v274_v43 = vld [vmem:[%s2814_s30 + $0x448] sm:$0xff] }
 0x13f   : > { %v3234_v10 = vpop.permute.xlu1 %543  ;;  %v3236_v11 = vpop.permute.xlu0 %541 }
 0x140   : > { %5468 = vst [vmem:[#allocation29_spill] sm:$0xff] %v3234_v10  ;;  %5469 = vst [vmem:[#allocation30_spill] sm:$0xff] %v3236_v11  ;;  %v273_v10 = vld [vmem:[%s2814_s30 + $0x440] sm:$0xff] }
 0x141   : > { %659 = vrot.lane.b32.xlu1 %v270_v58, %s2697_s25  ;;  %657 = vrot.lane.b32.xlu0 %v269_v59, %s2697_s25  ;;  %v276_v59 = vld [vmem:[%s2814_s30 + $0x458] sm:$0xff] }
 0x143   : > { %v3242_v51 = vpop.permute.xlu1 %547  ;;  %v3244_v42 = vpop.permute.xlu0 %545 }
 0x144   : > { %5470 = vst [vmem:[#allocation31_spill] sm:$0xff] %v3242_v51  ;;  %5471 = vst [vmem:[#allocation32_spill] sm:$0xff] %v3244_v42  ;;  %v275_v51 = vld [vmem:[%s2814_s30 + $0x450] sm:$0xff] }
 0x145   : > { %663 = vrot.lane.b32.xlu1 %v272_v26, %s2697_s25  ;;  %661 = vrot.lane.b32.xlu0 %v271_v27, %s2697_s25  ;;  %v278_v27 = vld [vmem:[%s2814_s30 + $0x468] sm:$0xff] }
 0x147   : > { %v3250_v11 = vpop.permute.xlu1 %551  ;;  %v3252_v58 = vpop.permute.xlu0 %549 }
 0x148   : > { %5472 = vst [vmem:[#allocation33_spill] sm:$0xff] %v3250_v11  ;;  %5473 = vst [vmem:[#allocation34_spill] sm:$0xff] %v3252_v58  ;;  %v277_v11 = vld [vmem:[%s2814_s30 + $0x460] sm:$0xff] }
 0x149   : > { %667 = vrot.lane.b32.xlu1 %v274_v43, %s2697_s25  ;;  %665 = vrot.lane.b32.xlu0 %v273_v10, %s2697_s25  ;;  %v280_v10 = vld [vmem:[%s2814_s30 + $0x478] sm:$0xff] }
 0x14b   : > { %v3258_v42 = vpop.permute.xlu1 %555  ;;  %v3260_v26 = vpop.permute.xlu0 %553 }
 0x14c   : > { %5474 = vst [vmem:[#allocation35_spill] sm:$0xff] %v3258_v42  ;;  %5475 = vst [vmem:[#allocation36_spill] sm:$0xff] %v3260_v26  ;;  %v279_v42 = vld [vmem:[%s2814_s30 + $0x470] sm:$0xff] }
 0x14d   : > { %671 = vrot.lane.b32.xlu1 %v276_v59, %s2697_s25  ;;  %669 = vrot.lane.b32.xlu0 %v275_v51, %s2697_s25  ;;  %v282_v51 = vld [vmem:[%s2814_s30 + $0x488] sm:$0xff] }
 0x14f   : > { %v3266_v58 = vpop.permute.xlu1 %559  ;;  %v3268_v43 = vpop.permute.xlu0 %557 }
 0x150   : > { %5476 = vst [vmem:[#allocation37_spill] sm:$0xff] %v3266_v58  ;;  %5477 = vst [vmem:[#allocation38_spill] sm:$0xff] %v3268_v43  ;;  %v281_v58 = vld [vmem:[%s2814_s30 + $0x480] sm:$0xff] }
 0x151   : > { %675 = vrot.lane.b32.xlu1 %v278_v27, %s2697_s25  ;;  %673 = vrot.lane.b32.xlu0 %v277_v11, %s2697_s25  ;;  %v284_v11 = vld [vmem:[%s2814_s30 + $0x498] sm:$0xff] }
 0x153   : > { %v3274_v26 = vpop.permute.xlu1 %563  ;;  %v3276_v59 = vpop.permute.xlu0 %561 }
 0x154   : > { %5478 = vst [vmem:[#allocation39_spill] sm:$0xff] %v3274_v26  ;;  %5479 = vst [vmem:[#allocation40_spill] sm:$0xff] %v3276_v59  ;;  %v283_v26 = vld [vmem:[%s2814_s30 + $0x490] sm:$0xff] }
 0x155   : > { %679 = vrot.lane.b32.xlu1 %v280_v10, %s2697_s25  ;;  %677 = vrot.lane.b32.xlu0 %v279_v42, %s2697_s25  ;;  %v286_v42 = vld [vmem:[%s2814_s30 + $0x4a8] sm:$0xff] }
 0x157   : > { %v3282_v43 = vpop.permute.xlu1 %567  ;;  %v3284_v27 = vpop.permute.xlu0 %565 }
 0x158   : > { %5480 = vst [vmem:[#allocation41_spill] sm:$0xff] %v3282_v43  ;;  %5481 = vst [vmem:[#allocation42_spill] sm:$0xff] %v3284_v27  ;;  %v285_v43 = vld [vmem:[%s2814_s30 + $0x4a0] sm:$0xff] }
 0x159   : > { %683 = vrot.lane.b32.xlu1 %v282_v51, %s2697_s25  ;;  %681 = vrot.lane.b32.xlu0 %v281_v58, %s2697_s25  ;;  %v288_v58 = vld [vmem:[%s2814_s30 + $0x4b8] sm:$0xff] }
 0x15b   : > { %v3290_v59 = vpop.permute.xlu1 %571  ;;  %v3292_v10 = vpop.permute.xlu0 %569 }
 0x15c   : > { %5482 = vst [vmem:[#allocation43_spill] sm:$0xff] %v3290_v59  ;;  %5483 = vst [vmem:[#allocation44_spill] sm:$0xff] %v3292_v10  ;;  %v287_v59 = vld [vmem:[%s2814_s30 + $0x4b0] sm:$0xff] }
 0x15d   : > { %687 = vrot.lane.b32.xlu1 %v284_v11, %s2697_s25  ;;  %685 = vrot.lane.b32.xlu0 %v283_v26, %s2697_s25  ;;  %v290_v26 = vld [vmem:[%s2814_s30 + $0x4c8] sm:$0xff] }
 0x15f   : > { %v3298_v27 = vpop.permute.xlu1 %575  ;;  %v3300_v51 = vpop.permute.xlu0 %573 }
 0x160   : > { %5484 = vst [vmem:[#allocation45_spill] sm:$0xff] %v3298_v27  ;;  %5485 = vst [vmem:[#allocation46_spill] sm:$0xff] %v3300_v51  ;;  %v289_v27 = vld [vmem:[%s2814_s30 + $0x4c0] sm:$0xff] }
 0x161   : > { %691 = vrot.lane.b32.xlu1 %v286_v42, %s2697_s25  ;;  %689 = vrot.lane.b32.xlu0 %v285_v43, %s2697_s25  ;;  %v292_v43 = vld [vmem:[%s2814_s30 + $0x4d8] sm:$0xff] }
 0x163   : > { %v3306_v10 = vpop.permute.xlu1 %579  ;;  %v3308_v11 = vpop.permute.xlu0 %577 }
 0x164   : > { %5486 = vst [vmem:[#allocation47_spill] sm:$0xff] %v3306_v10  ;;  %5487 = vst [vmem:[#allocation48_spill] sm:$0xff] %v3308_v11  ;;  %v291_v10 = vld [vmem:[%s2814_s30 + $0x4d0] sm:$0xff] }
 0x165   : > { %695 = vrot.lane.b32.xlu1 %v288_v58, %s2697_s25  ;;  %693 = vrot.lane.b32.xlu0 %v287_v59, %s2697_s25  ;;  %v294_v59 = vld [vmem:[%s2814_s30 + $0x4e8] sm:$0xff] }
 0x167   : > { %v3314_v51 = vpop.permute.xlu1 %583  ;;  %v3316_v42 = vpop.permute.xlu0 %581 }
 0x168   : > { %5488 = vst [vmem:[#allocation49_spill] sm:$0xff] %v3314_v51  ;;  %5489 = vst [vmem:[#allocation50_spill] sm:$0xff] %v3316_v42  ;;  %v293_v51 = vld [vmem:[%s2814_s30 + $0x4e0] sm:$0xff] }
 0x169   : > { %699 = vrot.lane.b32.xlu1 %v290_v26, %s2697_s25  ;;  %697 = vrot.lane.b32.xlu0 %v289_v27, %s2697_s25  ;;  %v296_v27 = vld [vmem:[%s2814_s30 + $0x4f8] sm:$0xff] }
 0x16b   : > { %v3322_v11 = vpop.permute.xlu1 %587  ;;  %v3324_v58 = vpop.permute.xlu0 %585 }
 0x16c   : > { %5490 = vst [vmem:[#allocation51_spill] sm:$0xff] %v3322_v11  ;;  %5491 = vst [vmem:[#allocation52_spill] sm:$0xff] %v3324_v58  ;;  %v295_v11 = vld [vmem:[%s2814_s30 + $0x4f0] sm:$0xff] }
 0x16d   : > { %703 = vrot.lane.b32.xlu1 %v292_v43, %s2697_s25  ;;  %701 = vrot.lane.b32.xlu0 %v291_v10, %s2697_s25  ;;  %v298_v10 = vld [vmem:[%s2814_s30 + $0x508] sm:$0xff] }
 0x16f   : > { %v3330_v42 = vpop.permute.xlu1 %591  ;;  %v3332_v26 = vpop.permute.xlu0 %589 }
 0x170   : > { %5492 = vst [vmem:[#allocation53_spill] sm:$0xff] %v3330_v42  ;;  %5493 = vst [vmem:[#allocation54_spill] sm:$0xff] %v3332_v26  ;;  %v297_v42 = vld [vmem:[%s2814_s30 + $0x500] sm:$0xff] }
 0x171   : > { %707 = vrot.lane.b32.xlu1 %v294_v59, %s2697_s25  ;;  %705 = vrot.lane.b32.xlu0 %v293_v51, %s2697_s25  ;;  %v300_v51 = vld [vmem:[%s2814_s30 + $0x518] sm:$0xff] }
 0x173   : > { %v3338_v58 = vpop.permute.xlu1 %595  ;;  %v3340_v43 = vpop.permute.xlu0 %593 }
 0x174   : > { %5494 = vst [vmem:[#allocation55_spill] sm:$0xff] %v3338_v58  ;;  %5495 = vst [vmem:[#allocation56_spill] sm:$0xff] %v3340_v43  ;;  %v299_v58 = vld [vmem:[%s2814_s30 + $0x510] sm:$0xff] }
 0x175   : > { %711 = vrot.lane.b32.xlu1 %v296_v27, %s2697_s25  ;;  %709 = vrot.lane.b32.xlu0 %v295_v11, %s2697_s25  ;;  %v302_v11 = vld [vmem:[%s2814_s30 + $0x528] sm:$0xff] }
 0x177   : > { %v3346_v26 = vpop.permute.xlu1 %599  ;;  %v3348_v59 = vpop.permute.xlu0 %597 }
 0x178   : > { %5496 = vst [vmem:[#allocation57_spill] sm:$0xff] %v3346_v26  ;;  %5497 = vst [vmem:[#allocation58_spill] sm:$0xff] %v3348_v59  ;;  %v301_v26 = vld [vmem:[%s2814_s30 + $0x520] sm:$0xff] }
 0x179   : > { %715 = vrot.lane.b32.xlu1 %v298_v10, %s2697_s25  ;;  %713 = vrot.lane.b32.xlu0 %v297_v42, %s2697_s25  ;;  %v304_v42 = vld [vmem:[%s2814_s30 + $0x538] sm:$0xff] }
 0x17b   : > { %v3354_v43 = vpop.permute.xlu1 %603  ;;  %v3356_v27 = vpop.permute.xlu0 %601 }
 0x17c   : > { %5498 = vst [vmem:[#allocation59_spill] sm:$0xff] %v3354_v43  ;;  %5499 = vst [vmem:[#allocation60_spill] sm:$0xff] %v3356_v27  ;;  %v303_v43 = vld [vmem:[%s2814_s30 + $0x530] sm:$0xff] }
 0x17d   : > { %719 = vrot.lane.b32.xlu1 %v300_v51, %s2697_s25  ;;  %717 = vrot.lane.b32.xlu0 %v299_v58, %s2697_s25  ;;  %v306_v58 = vld [vmem:[%s2814_s30 + $0x548] sm:$0xff] }
 0x17f   : > { %v3362_v59 = vpop.permute.xlu1 %607  ;;  %v3364_v10 = vpop.permute.xlu0 %605 }
 0x180   : > { %5500 = vst [vmem:[#allocation61_spill] sm:$0xff] %v3362_v59  ;;  %5501 = vst [vmem:[#allocation62_spill] sm:$0xff] %v3364_v10  ;;  %v305_v59 = vld [vmem:[%s2814_s30 + $0x540] sm:$0xff] }
 0x181   : > { %723 = vrot.lane.b32.xlu1 %v302_v11, %s2697_s25  ;;  %721 = vrot.lane.b32.xlu0 %v301_v26, %s2697_s25  ;;  %v308_v26 = vld [vmem:[%s2814_s30 + $0x558] sm:$0xff] }
 0x183   : > { %v3370_v27 = vpop.permute.xlu1 %611  ;;  %v3372_v51 = vpop.permute.xlu0 %609 }
 0x184   : > { %5502 = vst [vmem:[#allocation63_spill] sm:$0xff] %v3370_v27  ;;  %5503 = vst [vmem:[#allocation64_spill] sm:$0xff] %v3372_v51  ;;  %v307_v27 = vld [vmem:[%s2814_s30 + $0x550] sm:$0xff] }
 0x185   : > { %727 = vrot.lane.b32.xlu1 %v304_v42, %s2697_s25  ;;  %725 = vrot.lane.b32.xlu0 %v303_v43, %s2697_s25  ;;  %v310_v43 = vld [vmem:[%s2814_s30 + $0x568] sm:$0xff] }
 0x187   : > { %v3378_v10 = vpop.permute.xlu1 %615  ;;  %v3380_v11 = vpop.permute.xlu0 %613 }
 0x188   : > { %5504 = vst [vmem:[#allocation65_spill] sm:$0xff] %v3378_v10  ;;  %5505 = vst [vmem:[#allocation66_spill] sm:$0xff] %v3380_v11  ;;  %v309_v10 = vld [vmem:[%s2814_s30 + $0x560] sm:$0xff] }
 0x189   : > { %731 = vrot.lane.b32.xlu1 %v306_v58, %s2697_s25  ;;  %729 = vrot.lane.b32.xlu0 %v305_v59, %s2697_s25  ;;  %v312_v59 = vld [vmem:[%s2814_s30 + $0x578] sm:$0xff] }
 0x18b   : > { %v3386_v51 = vpop.permute.xlu1 %619  ;;  %v3388_v42 = vpop.permute.xlu0 %617 }
 0x18c   : > { %5506 = vst [vmem:[#allocation67_spill] sm:$0xff] %v3386_v51  ;;  %5507 = vst [vmem:[#allocation68_spill] sm:$0xff] %v3388_v42  ;;  %v311_v51 = vld [vmem:[%s2814_s30 + $0x570] sm:$0xff] }
 0x18d   : > { %735 = vrot.lane.b32.xlu1 %v308_v26, %s2697_s25  ;;  %733 = vrot.lane.b32.xlu0 %v307_v27, %s2697_s25  ;;  %v314_v27 = vld [vmem:[%s2814_s30 + $0x588] sm:$0xff] }
 0x18f   : > { %v3394_v11 = vpop.permute.xlu1 %623  ;;  %v3396_v58 = vpop.permute.xlu0 %621 }
 0x190   : > { %5508 = vst [vmem:[#allocation69_spill] sm:$0xff] %v3394_v11  ;;  %5509 = vst [vmem:[#allocation70_spill] sm:$0xff] %v3396_v58  ;;  %v313_v11 = vld [vmem:[%s2814_s30 + $0x580] sm:$0xff] }
 0x191   : > { %739 = vrot.lane.b32.xlu1 %v310_v43, %s2697_s25  ;;  %737 = vrot.lane.b32.xlu0 %v309_v10, %s2697_s25  ;;  %v316_v10 = vld [vmem:[%s2814_s30 + $0x598] sm:$0xff] }
 0x193   : > { %v3402_v42 = vpop.permute.xlu1 %627  ;;  %v3404_v26 = vpop.permute.xlu0 %625 }
 0x194   : > { %5510 = vst [vmem:[#allocation71_spill] sm:$0xff] %v3402_v42  ;;  %5511 = vst [vmem:[#allocation72_spill] sm:$0xff] %v3404_v26  ;;  %v315_v42 = vld [vmem:[%s2814_s30 + $0x590] sm:$0xff] }
 0x195   : > { %743 = vrot.lane.b32.xlu1 %v312_v59, %s2697_s25  ;;  %741 = vrot.lane.b32.xlu0 %v311_v51, %s2697_s25  ;;  %v318_v51 = vld [vmem:[%s2814_s30 + $0x5a8] sm:$0xff] }
 0x197   : > { %v3410_v58 = vpop.permute.xlu1 %631  ;;  %v3412_v43 = vpop.permute.xlu0 %629 }
 0x198   : > { %5512 = vst [vmem:[#allocation73_spill] sm:$0xff] %v3410_v58  ;;  %5513 = vst [vmem:[#allocation74_spill] sm:$0xff] %v3412_v43  ;;  %v317_v58 = vld [vmem:[%s2814_s30 + $0x5a0] sm:$0xff] }
 0x199   : > { %747 = vrot.lane.b32.xlu1 %v314_v27, %s2697_s25  ;;  %745 = vrot.lane.b32.xlu0 %v313_v11, %s2697_s25  ;;  %v320_v11 = vld [vmem:[%s2814_s30 + $0x5b8] sm:$0xff] }
 0x19b   : > { %v3418_v26 = vpop.permute.xlu1 %635  ;;  %v3420_v59 = vpop.permute.xlu0 %633 }
 0x19c   : > { %5514 = vst [vmem:[#allocation75_spill] sm:$0xff] %v3418_v26  ;;  %5515 = vst [vmem:[#allocation76_spill] sm:$0xff] %v3420_v59  ;;  %v319_v26 = vld [vmem:[%s2814_s30 + $0x5b0] sm:$0xff] }
 0x19d   : > { %751 = vrot.lane.b32.xlu1 %v316_v10, %s2697_s25  ;;  %749 = vrot.lane.b32.xlu0 %v315_v42, %s2697_s25  ;;  %v322_v42 = vld [vmem:[%s2814_s30 + $0x5c8] sm:$0xff] }
 0x19f   : > { %v3426_v43 = vpop.permute.xlu1 %639  ;;  %v3428_v27 = vpop.permute.xlu0 %637 }
 0x1a0   : > { %5516 = vst [vmem:[#allocation77_spill] sm:$0xff] %v3426_v43  ;;  %5517 = vst [vmem:[#allocation78_spill] sm:$0xff] %v3428_v27  ;;  %v321_v43 = vld [vmem:[%s2814_s30 + $0x5c0] sm:$0xff] }
 0x1a1   : > { %755 = vrot.lane.b32.xlu1 %v318_v51, %s2697_s25  ;;  %753 = vrot.lane.b32.xlu0 %v317_v58, %s2697_s25  ;;  %v324_v58 = vld [vmem:[%s2814_s30 + $0x5d8] sm:$0xff] }
 0x1a3   : > { %v3434_v59 = vpop.permute.xlu1 %643  ;;  %v3436_v10 = vpop.permute.xlu0 %641 }
 0x1a4   : > { %5518 = vst [vmem:[#allocation79_spill] sm:$0xff] %v3434_v59  ;;  %5519 = vst [vmem:[#allocation80_spill] sm:$0xff] %v3436_v10  ;;  %v323_v59 = vld [vmem:[%s2814_s30 + $0x5d0] sm:$0xff] }
 0x1a5   : > { %759 = vrot.lane.b32.xlu1 %v320_v11, %s2697_s25  ;;  %757 = vrot.lane.b32.xlu0 %v319_v26, %s2697_s25  ;;  %v326_v26 = vld [vmem:[%s2814_s30 + $0x5e8] sm:$0xff] }
 0x1a7   : > { %v3442_v27 = vpop.permute.xlu1 %647  ;;  %v3444_v51 = vpop.permute.xlu0 %645 }
 0x1a8   : > { %5520 = vst [vmem:[#allocation81_spill] sm:$0xff] %v3442_v27  ;;  %5521 = vst [vmem:[#allocation82_spill] sm:$0xff] %v3444_v51  ;;  %v325_v27 = vld [vmem:[%s2814_s30 + $0x5e0] sm:$0xff] }
 0x1a9   : > { %763 = vrot.lane.b32.xlu1 %v322_v42, %s2697_s25  ;;  %761 = vrot.lane.b32.xlu0 %v321_v43, %s2697_s25  ;;  %v328_v43 = vld [vmem:[%s2814_s30 + $0x5f8] sm:$0xff] }
 0x1ab   : > { %v3450_v10 = vpop.permute.xlu1 %651  ;;  %v3452_v11 = vpop.permute.xlu0 %649 }
 0x1ac   : > { %5522 = vst [vmem:[#allocation83_spill] sm:$0xff] %v3450_v10  ;;  %5523 = vst [vmem:[#allocation84_spill] sm:$0xff] %v3452_v11  ;;  %v327_v10 = vld [vmem:[%s2814_s30 + $0x5f0] sm:$0xff] }
 0x1ad   : > { %767 = vrot.lane.b32.xlu1 %v324_v58, %s2697_s25  ;;  %765 = vrot.lane.b32.xlu0 %v323_v59, %s2697_s25  ;;  %v330_v59 = vld [vmem:[%s2814_s30 + $0x608] sm:$0xff] }
 0x1af   : > { %v3458_v51 = vpop.permute.xlu1 %655  ;;  %v3460_v42 = vpop.permute.xlu0 %653 }
 0x1b0   : > { %5524 = vst [vmem:[#allocation85_spill] sm:$0xff] %v3458_v51  ;;  %5525 = vst [vmem:[#allocation86_spill] sm:$0xff] %v3460_v42  ;;  %v329_v51 = vld [vmem:[%s2814_s30 + $0x600] sm:$0xff] }
 0x1b1   : > { %771 = vrot.lane.b32.xlu1 %v326_v26, %s2697_s25  ;;  %769 = vrot.lane.b32.xlu0 %v325_v27, %s2697_s25  ;;  %v332_v27 = vld [vmem:[%s2814_s30 + $0x618] sm:$0xff] }
 0x1b3   : > { %v3466_v11 = vpop.permute.xlu1 %659  ;;  %v3468_v58 = vpop.permute.xlu0 %657 }
 0x1b4   : > { %5526 = vst [vmem:[#allocation87_spill] sm:$0xff] %v3466_v11  ;;  %5527 = vst [vmem:[#allocation88_spill] sm:$0xff] %v3468_v58  ;;  %v331_v11 = vld [vmem:[%s2814_s30 + $0x610] sm:$0xff] }
 0x1b5   : > { %775 = vrot.lane.b32.xlu1 %v328_v43, %s2697_s25  ;;  %773 = vrot.lane.b32.xlu0 %v327_v10, %s2697_s25  ;;  %v334_v10 = vld [vmem:[%s2814_s30 + $0x628] sm:$0xff] }
 0x1b7   : > { %v3474_v42 = vpop.permute.xlu1 %663  ;;  %v3476_v26 = vpop.permute.xlu0 %661 }
 0x1b8   : > { %5528 = vst [vmem:[#allocation89_spill] sm:$0xff] %v3474_v42  ;;  %5529 = vst [vmem:[#allocation90_spill] sm:$0xff] %v3476_v26  ;;  %v333_v42 = vld [vmem:[%s2814_s30 + $0x620] sm:$0xff] }
 0x1b9   : > { %779 = vrot.lane.b32.xlu1 %v330_v59, %s2697_s25  ;;  %777 = vrot.lane.b32.xlu0 %v329_v51, %s2697_s25  ;;  %v336_v51 = vld [vmem:[%s2814_s30 + $0x638] sm:$0xff] }
 0x1bb   : > { %v3482_v58 = vpop.permute.xlu1 %667  ;;  %v3484_v43 = vpop.permute.xlu0 %665 }
 0x1bc   : > { %5530 = vst [vmem:[#allocation91_spill] sm:$0xff] %v3482_v58  ;;  %5531 = vst [vmem:[#allocation92_spill] sm:$0xff] %v3484_v43  ;;  %v335_v58 = vld [vmem:[%s2814_s30 + $0x630] sm:$0xff] }
 0x1bd   : > { %783 = vrot.lane.b32.xlu1 %v332_v27, %s2697_s25  ;;  %781 = vrot.lane.b32.xlu0 %v331_v11, %s2697_s25  ;;  %v338_v11 = vld [vmem:[%s2814_s30 + $0x648] sm:$0xff] }
 0x1bf   : > { %v3490_v26 = vpop.permute.xlu1 %671  ;;  %v3492_v59 = vpop.permute.xlu0 %669 }
 0x1c0   : > { %5532 = vst [vmem:[#allocation93_spill] sm:$0xff] %v3490_v26  ;;  %5533 = vst [vmem:[#allocation94_spill] sm:$0xff] %v3492_v59  ;;  %v337_v26 = vld [vmem:[%s2814_s30 + $0x640] sm:$0xff] }
 0x1c1   : > { %787 = vrot.lane.b32.xlu1 %v334_v10, %s2697_s25  ;;  %785 = vrot.lane.b32.xlu0 %v333_v42, %s2697_s25  ;;  %v340_v42 = vld [vmem:[%s2814_s30 + $0x658] sm:$0xff] }
 0x1c3   : > { %v3498_v43 = vpop.permute.xlu1 %675  ;;  %v3500_v27 = vpop.permute.xlu0 %673 }
 0x1c4   : > { %5534 = vst [vmem:[#allocation95_spill] sm:$0xff] %v3498_v43  ;;  %5535 = vst [vmem:[#allocation96_spill] sm:$0xff] %v3500_v27  ;;  %v339_v43 = vld [vmem:[%s2814_s30 + $0x650] sm:$0xff] }
 0x1c5   : > { %791 = vrot.lane.b32.xlu1 %v336_v51, %s2697_s25  ;;  %789 = vrot.lane.b32.xlu0 %v335_v58, %s2697_s25  ;;  %v342_v58 = vld [vmem:[%s2814_s30 + $0x668] sm:$0xff] }
 0x1c7   : > { %v3506_v59 = vpop.permute.xlu1 %679  ;;  %v3508_v10 = vpop.permute.xlu0 %677 }
 0x1c8   : > { %5536 = vst [vmem:[#allocation97_spill] sm:$0xff] %v3506_v59  ;;  %5537 = vst [vmem:[#allocation98_spill] sm:$0xff] %v3508_v10  ;;  %v341_v59 = vld [vmem:[%s2814_s30 + $0x660] sm:$0xff] }
 0x1c9   : > { %795 = vrot.lane.b32.xlu1 %v338_v11, %s2697_s25  ;;  %793 = vrot.lane.b32.xlu0 %v337_v26, %s2697_s25  ;;  %v344_v26 = vld [vmem:[%s2814_s30 + $0x678] sm:$0xff] }
 0x1cb   : > { %v3514_v27 = vpop.permute.xlu1 %683  ;;  %v3516_v51 = vpop.permute.xlu0 %681 }
 0x1cc   : > { %5538 = vst [vmem:[#allocation99_spill] sm:$0xff] %v3514_v27  ;;  %5539 = vst [vmem:[#allocation100_spill] sm:$0xff] %v3516_v51  ;;  %v343_v27 = vld [vmem:[%s2814_s30 + $0x670] sm:$0xff] }
 0x1cd   : > { %799 = vrot.lane.b32.xlu1 %v340_v42, %s2697_s25  ;;  %797 = vrot.lane.b32.xlu0 %v339_v43, %s2697_s25  ;;  %v346_v43 = vld [vmem:[%s2814_s30 + $0x688] sm:$0xff] }
 0x1cf   : > { %v3522_v10 = vpop.permute.xlu1 %687  ;;  %v3524_v11 = vpop.permute.xlu0 %685 }
 0x1d0   : > { %5540 = vst [vmem:[#allocation101_spill] sm:$0xff] %v3522_v10  ;;  %5541 = vst [vmem:[#allocation102_spill] sm:$0xff] %v3524_v11  ;;  %v345_v10 = vld [vmem:[%s2814_s30 + $0x680] sm:$0xff] }
 0x1d1   : > { %803 = vrot.lane.b32.xlu1 %v342_v58, %s2697_s25  ;;  %801 = vrot.lane.b32.xlu0 %v341_v59, %s2697_s25  ;;  %v348_v59 = vld [vmem:[%s2814_s30 + $0x698] sm:$0xff] }
 0x1d3   : > { %v3530_v51 = vpop.permute.xlu1 %691  ;;  %v3532_v42 = vpop.permute.xlu0 %689 }
 0x1d4   : > { %5542 = vst [vmem:[#allocation103_spill] sm:$0xff] %v3530_v51  ;;  %5543 = vst [vmem:[#allocation104_spill] sm:$0xff] %v3532_v42  ;;  %v347_v51 = vld [vmem:[%s2814_s30 + $0x690] sm:$0xff] }
 0x1d5   : > { %807 = vrot.lane.b32.xlu1 %v344_v26, %s2697_s25  ;;  %805 = vrot.lane.b32.xlu0 %v343_v27, %s2697_s25  ;;  %v350_v27 = vld [vmem:[%s2814_s30 + $0x6a8] sm:$0xff] }
 0x1d7   : > { %v3538_v11 = vpop.permute.xlu1 %695  ;;  %v3540_v58 = vpop.permute.xlu0 %693 }
 0x1d8   : > { %5544 = vst [vmem:[#allocation105_spill] sm:$0xff] %v3538_v11  ;;  %5545 = vst [vmem:[#allocation106_spill] sm:$0xff] %v3540_v58  ;;  %v349_v11 = vld [vmem:[%s2814_s30 + $0x6a0] sm:$0xff] }
 0x1d9   : > { %811 = vrot.lane.b32.xlu1 %v346_v43, %s2697_s25  ;;  %809 = vrot.lane.b32.xlu0 %v345_v10, %s2697_s25  ;;  %v352_v10 = vld [vmem:[%s2814_s30 + $0x6b8] sm:$0xff] }
 0x1db   : > { %v3546_v42 = vpop.permute.xlu1 %699  ;;  %v3548_v26 = vpop.permute.xlu0 %697 }
 0x1dc   : > { %5546 = vst [vmem:[#allocation107_spill] sm:$0xff] %v3546_v42  ;;  %5547 = vst [vmem:[#allocation108_spill] sm:$0xff] %v3548_v26  ;;  %v351_v42 = vld [vmem:[%s2814_s30 + $0x6b0] sm:$0xff] }
 0x1dd   : > { %815 = vrot.lane.b32.xlu1 %v348_v59, %s2697_s25  ;;  %813 = vrot.lane.b32.xlu0 %v347_v51, %s2697_s25  ;;  %v354_v51 = vld [vmem:[%s2814_s30 + $0x6c8] sm:$0xff] }
 0x1df   : > { %v3554_v58 = vpop.permute.xlu1 %703  ;;  %v3556_v43 = vpop.permute.xlu0 %701 }
 0x1e0   : > { %5548 = vst [vmem:[#allocation109_spill] sm:$0xff] %v3554_v58  ;;  %5549 = vst [vmem:[#allocation110_spill] sm:$0xff] %v3556_v43  ;;  %v353_v58 = vld [vmem:[%s2814_s30 + $0x6c0] sm:$0xff] }
 0x1e1   : > { %819 = vrot.lane.b32.xlu1 %v350_v27, %s2697_s25  ;;  %817 = vrot.lane.b32.xlu0 %v349_v11, %s2697_s25  ;;  %v356_v11 = vld [vmem:[%s2814_s30 + $0x6d8] sm:$0xff] }
 0x1e3   : > { %v3562_v26 = vpop.permute.xlu1 %707  ;;  %v3564_v59 = vpop.permute.xlu0 %705 }
 0x1e4   : > { %5550 = vst [vmem:[#allocation111_spill] sm:$0xff] %v3562_v26  ;;  %5551 = vst [vmem:[#allocation112_spill] sm:$0xff] %v3564_v59  ;;  %v355_v26 = vld [vmem:[%s2814_s30 + $0x6d0] sm:$0xff] }
 0x1e5   : > { %823 = vrot.lane.b32.xlu1 %v352_v10, %s2697_s25  ;;  %821 = vrot.lane.b32.xlu0 %v351_v42, %s2697_s25  ;;  %v358_v42 = vld [vmem:[%s2814_s30 + $0x6e8] sm:$0xff] }
 0x1e7   : > { %v3570_v43 = vpop.permute.xlu1 %711  ;;  %v3572_v27 = vpop.permute.xlu0 %709 }
 0x1e8   : > { %5552 = vst [vmem:[#allocation113_spill] sm:$0xff] %v3570_v43  ;;  %5553 = vst [vmem:[#allocation114_spill] sm:$0xff] %v3572_v27  ;;  %v357_v43 = vld [vmem:[%s2814_s30 + $0x6e0] sm:$0xff] }
 0x1e9   : > { %827 = vrot.lane.b32.xlu1 %v354_v51, %s2697_s25  ;;  %825 = vrot.lane.b32.xlu0 %v353_v58, %s2697_s25  ;;  %v360_v58 = vld [vmem:[%s2814_s30 + $0x6f8] sm:$0xff] }
 0x1eb   : > { %v3578_v59 = vpop.permute.xlu1 %715  ;;  %v3580_v10 = vpop.permute.xlu0 %713 }
 0x1ec   : > { %5554 = vst [vmem:[#allocation115_spill] sm:$0xff] %v3578_v59  ;;  %5555 = vst [vmem:[#allocation116_spill] sm:$0xff] %v3580_v10  ;;  %v359_v59 = vld [vmem:[%s2814_s30 + $0x6f0] sm:$0xff] }
 0x1ed   : > { %831 = vrot.lane.b32.xlu1 %v356_v11, %s2697_s25  ;;  %829 = vrot.lane.b32.xlu0 %v355_v26, %s2697_s25  ;;  %v362_v26 = vld [vmem:[%s2814_s30 + $0x708] sm:$0xff] }
 0x1ef   : > { %v3586_v27 = vpop.permute.xlu1 %719  ;;  %v3588_v51 = vpop.permute.xlu0 %717 }
 0x1f0   : > { %5556 = vst [vmem:[#allocation117_spill] sm:$0xff] %v3586_v27  ;;  %5557 = vst [vmem:[#allocation118_spill] sm:$0xff] %v3588_v51  ;;  %v361_v27 = vld [vmem:[%s2814_s30 + $0x700] sm:$0xff] }
 0x1f1   : > { %835 = vrot.lane.b32.xlu1 %v358_v42, %s2697_s25  ;;  %833 = vrot.lane.b32.xlu0 %v357_v43, %s2697_s25  ;;  %v364_v43 = vld [vmem:[%s2814_s30 + $0x718] sm:$0xff] }
 0x1f3   : > { %v3594_v10 = vpop.permute.xlu1 %723  ;;  %v3596_v11 = vpop.permute.xlu0 %721 }
 0x1f4   : > { %5558 = vst [vmem:[#allocation119_spill] sm:$0xff] %v3594_v10  ;;  %5559 = vst [vmem:[#allocation120_spill] sm:$0xff] %v3596_v11  ;;  %v363_v10 = vld [vmem:[%s2814_s30 + $0x710] sm:$0xff] }
 0x1f5   : > { %839 = vrot.lane.b32.xlu1 %v360_v58, %s2697_s25  ;;  %837 = vrot.lane.b32.xlu0 %v359_v59, %s2697_s25  ;;  %v366_v59 = vld [vmem:[%s2814_s30 + $0x728] sm:$0xff] }
 0x1f7   : > { %v3602_v51 = vpop.permute.xlu1 %727  ;;  %v3604_v42 = vpop.permute.xlu0 %725 }
 0x1f8   : > { %5560 = vst [vmem:[#allocation121_spill] sm:$0xff] %v3602_v51  ;;  %5561 = vst [vmem:[#allocation122_spill] sm:$0xff] %v3604_v42  ;;  %v365_v51 = vld [vmem:[%s2814_s30 + $0x720] sm:$0xff] }
 0x1f9   : > { %843 = vrot.lane.b32.xlu1 %v362_v26, %s2697_s25  ;;  %841 = vrot.lane.b32.xlu0 %v361_v27, %s2697_s25  ;;  %v368_v27 = vld [vmem:[%s2814_s30 + $0x738] sm:$0xff] }
 0x1fb   : > { %v3610_v11 = vpop.permute.xlu1 %731  ;;  %v3612_v58 = vpop.permute.xlu0 %729 }
 0x1fc   : > { %5562 = vst [vmem:[#allocation123_spill] sm:$0xff] %v3610_v11  ;;  %5563 = vst [vmem:[#allocation124_spill] sm:$0xff] %v3612_v58  ;;  %v367_v11 = vld [vmem:[%s2814_s30 + $0x730] sm:$0xff] }
 0x1fd   : > { %847 = vrot.lane.b32.xlu1 %v364_v43, %s2697_s25  ;;  %845 = vrot.lane.b32.xlu0 %v363_v10, %s2697_s25  ;;  %v370_v10 = vld [vmem:[%s2814_s30 + $0x748] sm:$0xff] }
 0x1ff   : > { %v3618_v42 = vpop.permute.xlu1 %735  ;;  %v3620_v26 = vpop.permute.xlu0 %733 }
 0x200   : > { %5564 = vst [vmem:[#allocation125_spill] sm:$0xff] %v3618_v42  ;;  %5565 = vst [vmem:[#allocation126_spill] sm:$0xff] %v3620_v26  ;;  %v369_v42 = vld [vmem:[%s2814_s30 + $0x740] sm:$0xff] }
 0x201   : > { %851 = vrot.lane.b32.xlu1 %v366_v59, %s2697_s25  ;;  %849 = vrot.lane.b32.xlu0 %v365_v51, %s2697_s25  ;;  %v372_v51 = vld [vmem:[%s2814_s30 + $0x758] sm:$0xff] }
 0x203   : > { %v3626_v58 = vpop.permute.xlu1 %739  ;;  %v3628_v43 = vpop.permute.xlu0 %737 }
 0x204   : > { %5566 = vst [vmem:[#allocation127_spill] sm:$0xff] %v3626_v58  ;;  %5567 = vst [vmem:[#allocation128_spill] sm:$0xff] %v3628_v43  ;;  %v371_v58 = vld [vmem:[%s2814_s30 + $0x750] sm:$0xff] }
 0x205   : > { %855 = vrot.lane.b32.xlu1 %v368_v27, %s2697_s25  ;;  %853 = vrot.lane.b32.xlu0 %v367_v11, %s2697_s25  ;;  %v374_v11 = vld [vmem:[%s2814_s30 + $0x768] sm:$0xff] }
 0x207   : > { %v3634_v26 = vpop.permute.xlu1 %743  ;;  %v3636_v59 = vpop.permute.xlu0 %741 }
 0x208   : > { %5568 = vst [vmem:[#allocation129_spill] sm:$0xff] %v3634_v26  ;;  %5569 = vst [vmem:[#allocation130_spill] sm:$0xff] %v3636_v59  ;;  %v373_v26 = vld [vmem:[%s2814_s30 + $0x760] sm:$0xff] }
 0x209   : > { %859 = vrot.lane.b32.xlu1 %v370_v10, %s2697_s25  ;;  %857 = vrot.lane.b32.xlu0 %v369_v42, %s2697_s25  ;;  %v376_v42 = vld [vmem:[%s2814_s30 + $0x778] sm:$0xff] }
 0x20b   : > { %v3642_v43 = vpop.permute.xlu1 %747  ;;  %v3644_v27 = vpop.permute.xlu0 %745 }
 0x20c   : > { %5570 = vst [vmem:[#allocation131_spill] sm:$0xff] %v3642_v43  ;;  %5571 = vst [vmem:[#allocation132_spill] sm:$0xff] %v3644_v27  ;;  %v375_v43 = vld [vmem:[%s2814_s30 + $0x770] sm:$0xff] }
 0x20d   : > { %863 = vrot.lane.b32.xlu1 %v372_v51, %s2697_s25  ;;  %861 = vrot.lane.b32.xlu0 %v371_v58, %s2697_s25  ;;  %v378_v58 = vld [vmem:[%s2814_s30 + $0x788] sm:$0xff] }
 0x20f   : > { %v3650_v59 = vpop.permute.xlu1 %751  ;;  %v3652_v10 = vpop.permute.xlu0 %749 }
 0x210   : > { %5572 = vst [vmem:[#allocation133_spill] sm:$0xff] %v3650_v59  ;;  %5573 = vst [vmem:[#allocation134_spill] sm:$0xff] %v3652_v10  ;;  %v377_v59 = vld [vmem:[%s2814_s30 + $0x780] sm:$0xff] }
 0x211   : > { %867 = vrot.lane.b32.xlu1 %v374_v11, %s2697_s25  ;;  %865 = vrot.lane.b32.xlu0 %v373_v26, %s2697_s25  ;;  %v380_v26 = vld [vmem:[%s2814_s30 + $0x798] sm:$0xff] }
 0x213   : > { %v3658_v27 = vpop.permute.xlu1 %755  ;;  %v3660_v51 = vpop.permute.xlu0 %753 }
 0x214   : > { %5574 = vst [vmem:[#allocation135_spill] sm:$0xff] %v3658_v27  ;;  %5575 = vst [vmem:[#allocation136_spill] sm:$0xff] %v3660_v51  ;;  %v379_v27 = vld [vmem:[%s2814_s30 + $0x790] sm:$0xff] }
 0x215   : > { %871 = vrot.lane.b32.xlu1 %v376_v42, %s2697_s25  ;;  %869 = vrot.lane.b32.xlu0 %v375_v43, %s2697_s25  ;;  %v382_v43 = vld [vmem:[%s2814_s30 + $0x7a8] sm:$0xff] }
 0x217   : > { %v3666_v10 = vpop.permute.xlu1 %759  ;;  %v3668_v11 = vpop.permute.xlu0 %757 }
 0x218   : > { %5576 = vst [vmem:[#allocation137_spill] sm:$0xff] %v3666_v10  ;;  %5577 = vst [vmem:[#allocation138_spill] sm:$0xff] %v3668_v11  ;;  %v381_v10 = vld [vmem:[%s2814_s30 + $0x7a0] sm:$0xff] }
 0x219   : > { %875 = vrot.lane.b32.xlu1 %v378_v58, %s2697_s25  ;;  %873 = vrot.lane.b32.xlu0 %v377_v59, %s2697_s25  ;;  %v384_v59 = vld [vmem:[%s2814_s30 + $0x7b8] sm:$0xff] }
 0x21b   : > { %v3674_v51 = vpop.permute.xlu1 %763  ;;  %v3676_v42 = vpop.permute.xlu0 %761 }
 0x21c   : > { %5578 = vst [vmem:[#allocation139_spill] sm:$0xff] %v3674_v51  ;;  %5579 = vst [vmem:[#allocation140_spill] sm:$0xff] %v3676_v42  ;;  %v383_v51 = vld [vmem:[%s2814_s30 + $0x7b0] sm:$0xff] }
 0x21d   : > { %879 = vrot.lane.b32.xlu1 %v380_v26, %s2697_s25  ;;  %877 = vrot.lane.b32.xlu0 %v379_v27, %s2697_s25  ;;  %v386_v27 = vld [vmem:[%s2814_s30 + $0x7c8] sm:$0xff] }
 0x21f   : > { %v3682_v11 = vpop.permute.xlu1 %767  ;;  %v3684_v58 = vpop.permute.xlu0 %765 }
 0x220   : > { %5580 = vst [vmem:[#allocation141_spill] sm:$0xff] %v3682_v11  ;;  %5581 = vst [vmem:[#allocation142_spill] sm:$0xff] %v3684_v58  ;;  %v385_v11 = vld [vmem:[%s2814_s30 + $0x7c0] sm:$0xff] }
 0x221   : > { %883 = vrot.lane.b32.xlu1 %v382_v43, %s2697_s25  ;;  %881 = vrot.lane.b32.xlu0 %v381_v10, %s2697_s25  ;;  %v388_v10 = vld [vmem:[%s2814_s30 + $0x7d8] sm:$0xff] }
 0x223   : > { %v3690_v42 = vpop.permute.xlu1 %771  ;;  %v3692_v26 = vpop.permute.xlu0 %769 }
 0x224   : > { %5582 = vst [vmem:[#allocation143_spill] sm:$0xff] %v3690_v42  ;;  %5583 = vst [vmem:[#allocation144_spill] sm:$0xff] %v3692_v26  ;;  %v387_v42 = vld [vmem:[%s2814_s30 + $0x7d0] sm:$0xff] }
 0x225   : > { %887 = vrot.lane.b32.xlu1 %v384_v59, %s2697_s25  ;;  %885 = vrot.lane.b32.xlu0 %v383_v51, %s2697_s25  ;;  %v390_v51 = vld [vmem:[%s2814_s30 + $0x7e8] sm:$0xff]  ;;  %v389_v59 = vld [vmem:[%s2814_s30 + $0x7e0] sm:$0xff] }
 0x227   : > { %v3698_v58 = vpop.permute.xlu1 %775  ;;  %v3700_v43 = vpop.permute.xlu0 %773 }
 0x228   : > { %5584 = vst [vmem:[#allocation145_spill] sm:$0xff] %v3698_v58  ;;  %5585 = vst [vmem:[#allocation146_spill] sm:$0xff] %v3700_v43 }
 0x229   : > { %891 = vrot.lane.b32.xlu1 %v386_v27, %s2697_s25  ;;  %889 = vrot.lane.b32.xlu0 %v385_v11, %s2697_s25  ;;  %v392_v11 = vld [vmem:[%s2814_s30 + $0x7f8] sm:$0xff]  ;;  %v391_v27 = vld [vmem:[%s2814_s30 + $0x7f0] sm:$0xff] }
 0x22b   : > { %v3706_v26 = vpop.permute.xlu1 %779  ;;  %v3708_v50 = vpop.permute.xlu0 %777 }
 0x22c   : > { %5586 = vst [vmem:[#allocation147_spill] sm:$0xff] %v3706_v26  ;;  %5587 = vst [vmem:[#allocation148_spill] sm:$0xff] %v3708_v50  ;;  %v2398_v26 = vld [vmem:[%s2814_s30 + $0x1b8] sm:$0xff] }
 0x22d   : > { %895 = vrot.lane.b32.xlu1 %v388_v10, %s2697_s25  ;;  %893 = vrot.lane.b32.xlu0 %v387_v42, %s2697_s25 }
 0x22f   : > { %v3714_v43 = vpop.permute.xlu1 %783  ;;  %v3716_v58 = vpop.permute.xlu0 %781 }
 0x230   : > { %5588 = vst [vmem:[#allocation149_spill] sm:$0xff] %v3714_v43  ;;  %5589 = vst [vmem:[#allocation150_spill] sm:$0xff] %v3716_v58  ;;  %v2396_v43 = vld [vmem:[%s2814_s30 + $0x1a8] sm:$0xff] }
 0x231   : > { %899 = vrot.lane.b32.xlu1 %v390_v51, %s2697_s25  ;;  %897 = vrot.lane.b32.xlu0 %v389_v59, %s2697_s25  ;;  %v2344_v51 = vld [vmem:[%s2814_s30 + $0x8] sm:$0xff]  ;;  %v2345_v59 = vld [vmem:[%s2814_s30] sm:$0xff] }
 0x233   : > { %v3722_v50 = vpop.permute.xlu1 %787  ;;  %v3724_v10 = vpop.permute.xlu0 %785 }
 0x234   : > { %5590 = vst [vmem:[#allocation151_spill] sm:$0xff] %v3722_v50  ;;  %5591 = vst [vmem:[#allocation152_spill] sm:$0xff] %v3724_v10  ;;  %v2348_v10 = vld [vmem:[%s2814_s30 + $0x28] sm:$0xff] }
 0x235   : > { %903 = vrot.lane.b32.xlu1 %v392_v11, %s2697_s25  ;;  %901 = vrot.lane.b32.xlu0 %v391_v27, %s2697_s25  ;;  %v2346_v27 = vld [vmem:[%s2814_s30 + $0x18] sm:$0xff] }
 0x237   : > { %v3728_v42 = vpop.permute.xlu1 %791  ;;  %v3730_v58 = vpop.permute.xlu0 %789 }
 0x238   : > { %5592 = vst [vmem:[#allocation153_spill] sm:$0xff] %v3728_v42  ;;  %5593 = vst [vmem:[#allocation154_spill] sm:$0xff] %v3730_v58  ;;  %v2347_v42 = vld [vmem:[%s2814_s30 + $0x10] sm:$0xff] }
 0x239   : > { %907 = vrot.lane.b32.xlu1 %v2344_v51, %s2698_s17  ;;  %905 = vrot.lane.b32.xlu0 %v2345_v59, %s2698_s17  ;;  %v2349_v59 = vld [vmem:[%s2814_s30 + $0x20] sm:$0xff] }
 0x23b   : > { %v3736_v50 = vpop.permute.xlu1 %795  ;;  %v3738_v11 = vpop.permute.xlu0 %793 }
 0x23c   : > { %5594 = vst [vmem:[#allocation155_spill] sm:$0xff] %v3736_v50  ;;  %5595 = vst [vmem:[#allocation156_spill] sm:$0xff] %v3738_v11  ;;  %v2350_v50 = vld [vmem:[%s2814_s30 + $0x38] sm:$0xff] }
 0x23d   : > { %911 = vrot.lane.b32.xlu1 %v2346_v27, %s2698_s17  ;;  %909 = vrot.lane.b32.xlu0 %v2347_v42, %s2698_s17  ;;  %v2351_v42 = vld [vmem:[%s2814_s30 + $0x30] sm:$0xff] }
 0x23f   : > { %v3744_v58 = vpop.permute.xlu1 %799  ;;  %v3746_v51 = vpop.permute.xlu0 %797 }
 0x240   : > { %5596 = vst [vmem:[#allocation157_spill] sm:$0xff] %v3744_v58  ;;  %5597 = vst [vmem:[#allocation158_spill] sm:$0xff] %v3746_v51  ;;  %v2352_v58 = vld [vmem:[%s2814_s30 + $0x48] sm:$0xff] }
 0x241   : > { %915 = vrot.lane.b32.xlu1 %v2348_v10, %s2698_s17  ;;  %913 = vrot.lane.b32.xlu0 %v2349_v59, %s2698_s17  ;;  %v2353_v59 = vld [vmem:[%s2814_s30 + $0x40] sm:$0xff] }
 0x243   : > { %v3752_v11 = vpop.permute.xlu1 %803  ;;  %v3754_v27 = vpop.permute.xlu0 %801 }
 0x244   : > { %5598 = vst [vmem:[#allocation159_spill] sm:$0xff] %v3752_v11  ;;  %5599 = vst [vmem:[#allocation160_spill] sm:$0xff] %v3754_v27  ;;  %v2354_v11 = vld [vmem:[%s2814_s30 + $0x58] sm:$0xff] }
 0x245   : > { %919 = vrot.lane.b32.xlu1 %v2350_v50, %s2698_s17  ;;  %917 = vrot.lane.b32.xlu0 %v2351_v42, %s2698_s17  ;;  %v2355_v42 = vld [vmem:[%s2814_s30 + $0x50] sm:$0xff] }
 0x247   : > { %v3760_v51 = vpop.permute.xlu1 %807  ;;  %v3762_v10 = vpop.permute.xlu0 %805 }
 0x248   : > { %5600 = vst [vmem:[#allocation161_spill] sm:$0xff] %v3760_v51  ;;  %5601 = vst [vmem:[#allocation162_spill] sm:$0xff] %v3762_v10  ;;  %v2356_v51 = vld [vmem:[%s2814_s30 + $0x68] sm:$0xff] }
 0x249   : > { %923 = vrot.lane.b32.xlu1 %v2352_v58, %s2698_s17  ;;  %921 = vrot.lane.b32.xlu0 %v2353_v59, %s2698_s17  ;;  %v2357_v59 = vld [vmem:[%s2814_s30 + $0x60] sm:$0xff] }
 0x24b   : > { %v3768_v27 = vpop.permute.xlu1 %811  ;;  %v3770_v50 = vpop.permute.xlu0 %809 }
 0x24c   : > { %5602 = vst [vmem:[#allocation163_spill] sm:$0xff] %v3768_v27  ;;  %5603 = vst [vmem:[#allocation164_spill] sm:$0xff] %v3770_v50  ;;  %v2358_v27 = vld [vmem:[%s2814_s30 + $0x78] sm:$0xff] }
 0x24d   : > { %927 = vrot.lane.b32.xlu1 %v2354_v11, %s2698_s17  ;;  %925 = vrot.lane.b32.xlu0 %v2355_v42, %s2698_s17  ;;  %v2359_v42 = vld [vmem:[%s2814_s30 + $0x70] sm:$0xff] }
 0x24f   : > { %v3776_v10 = vpop.permute.xlu1 %815  ;;  %v3778_v58 = vpop.permute.xlu0 %813 }
 0x250   : > { %5604 = vst [vmem:[#allocation165_spill] sm:$0xff] %v3776_v10  ;;  %5605 = vst [vmem:[#allocation166_spill] sm:$0xff] %v3778_v58  ;;  %v2360_v10 = vld [vmem:[%s2814_s30 + $0x88] sm:$0xff] }
 0x251   : > { %931 = vrot.lane.b32.xlu1 %v2356_v51, %s2698_s17  ;;  %929 = vrot.lane.b32.xlu0 %v2357_v59, %s2698_s17  ;;  %v2361_v59 = vld [vmem:[%s2814_s30 + $0x80] sm:$0xff] }
 0x253   : > { %v3784_v50 = vpop.permute.xlu1 %819  ;;  %v3786_v11 = vpop.permute.xlu0 %817 }
 0x254   : > { %5606 = vst [vmem:[#allocation167_spill] sm:$0xff] %v3784_v50  ;;  %5607 = vst [vmem:[#allocation168_spill] sm:$0xff] %v3786_v11  ;;  %v2362_v50 = vld [vmem:[%s2814_s30 + $0x98] sm:$0xff] }
 0x255   : > { %935 = vrot.lane.b32.xlu1 %v2358_v27, %s2698_s17  ;;  %933 = vrot.lane.b32.xlu0 %v2359_v42, %s2698_s17  ;;  %v2363_v42 = vld [vmem:[%s2814_s30 + $0x90] sm:$0xff] }
 0x257   : > { %v3792_v58 = vpop.permute.xlu1 %823  ;;  %v3794_v51 = vpop.permute.xlu0 %821 }
 0x258   : > { %5608 = vst [vmem:[#allocation169_spill] sm:$0xff] %v3792_v58  ;;  %5609 = vst [vmem:[#allocation170_spill] sm:$0xff] %v3794_v51  ;;  %v2364_v58 = vld [vmem:[%s2814_s30 + $0xa8] sm:$0xff] }
 0x259   : > { %939 = vrot.lane.b32.xlu1 %v2360_v10, %s2698_s17  ;;  %937 = vrot.lane.b32.xlu0 %v2361_v59, %s2698_s17  ;;  %v2365_v59 = vld [vmem:[%s2814_s30 + $0xa0] sm:$0xff] }
 0x25b   : > { %v3800_v11 = vpop.permute.xlu1 %827  ;;  %v3802_v27 = vpop.permute.xlu0 %825 }
 0x25c   : > { %5610 = vst [vmem:[#allocation171_spill] sm:$0xff] %v3800_v11  ;;  %5611 = vst [vmem:[#allocation172_spill] sm:$0xff] %v3802_v27  ;;  %v2366_v11 = vld [vmem:[%s2814_s30 + $0xb8] sm:$0xff] }
 0x25d   : > { %943 = vrot.lane.b32.xlu1 %v2362_v50, %s2698_s17  ;;  %941 = vrot.lane.b32.xlu0 %v2363_v42, %s2698_s17  ;;  %v2367_v42 = vld [vmem:[%s2814_s30 + $0xb0] sm:$0xff] }
 0x25f   : > { %v3808_v51 = vpop.permute.xlu1 %831  ;;  %v3810_v10 = vpop.permute.xlu0 %829 }
 0x260   : > { %5612 = vst [vmem:[#allocation173_spill] sm:$0xff] %v3808_v51  ;;  %5613 = vst [vmem:[#allocation174_spill] sm:$0xff] %v3810_v10  ;;  %v2368_v51 = vld [vmem:[%s2814_s30 + $0xc8] sm:$0xff] }
 0x261   : > { %947 = vrot.lane.b32.xlu1 %v2364_v58, %s2698_s17  ;;  %945 = vrot.lane.b32.xlu0 %v2365_v59, %s2698_s17  ;;  %v2369_v59 = vld [vmem:[%s2814_s30 + $0xc0] sm:$0xff] }
 0x263   : > { %v3816_v27 = vpop.permute.xlu1 %835  ;;  %v3818_v50 = vpop.permute.xlu0 %833 }
 0x264   : > { %5614 = vst [vmem:[#allocation175_spill] sm:$0xff] %v3816_v27  ;;  %5615 = vst [vmem:[#allocation176_spill] sm:$0xff] %v3818_v50  ;;  %v2370_v27 = vld [vmem:[%s2814_s30 + $0xd8] sm:$0xff] }
 0x265   : > { %951 = vrot.lane.b32.xlu1 %v2366_v11, %s2698_s17  ;;  %949 = vrot.lane.b32.xlu0 %v2367_v42, %s2698_s17  ;;  %v2371_v42 = vld [vmem:[%s2814_s30 + $0xd0] sm:$0xff] }
 0x267   : > { %v3824_v10 = vpop.permute.xlu1 %839  ;;  %v3826_v58 = vpop.permute.xlu0 %837 }
 0x268   : > { %5616 = vst [vmem:[#allocation177_spill] sm:$0xff] %v3824_v10  ;;  %5617 = vst [vmem:[#allocation178_spill] sm:$0xff] %v3826_v58  ;;  %v2372_v10 = vld [vmem:[%s2814_s30 + $0xe8] sm:$0xff] }
 0x269   : > { %955 = vrot.lane.b32.xlu1 %v2368_v51, %s2698_s17  ;;  %953 = vrot.lane.b32.xlu0 %v2369_v59, %s2698_s17  ;;  %v2373_v59 = vld [vmem:[%s2814_s30 + $0xe0] sm:$0xff] }
 0x26b   : > { %v3832_v50 = vpop.permute.xlu1 %843  ;;  %v3834_v11 = vpop.permute.xlu0 %841 }
 0x26c   : > { %5618 = vst [vmem:[#allocation179_spill] sm:$0xff] %v3832_v50  ;;  %5619 = vst [vmem:[#allocation180_spill] sm:$0xff] %v3834_v11  ;;  %v2374_v50 = vld [vmem:[%s2814_s30 + $0xf8] sm:$0xff] }
 0x26d   : > { %959 = vrot.lane.b32.xlu1 %v2370_v27, %s2698_s17  ;;  %957 = vrot.lane.b32.xlu0 %v2371_v42, %s2698_s17  ;;  %v2375_v42 = vld [vmem:[%s2814_s30 + $0xf0] sm:$0xff] }
 0x26f   : > { %v3840_v58 = vpop.permute.xlu1 %847  ;;  %v3842_v51 = vpop.permute.xlu0 %845 }
 0x270   : > { %5620 = vst [vmem:[#allocation181_spill] sm:$0xff] %v3840_v58  ;;  %5621 = vst [vmem:[#allocation182_spill] sm:$0xff] %v3842_v51  ;;  %v2376_v58 = vld [vmem:[%s2814_s30 + $0x108] sm:$0xff] }
 0x271   : > { %963 = vrot.lane.b32.xlu1 %v2372_v10, %s2698_s17  ;;  %961 = vrot.lane.b32.xlu0 %v2373_v59, %s2698_s17  ;;  %v2377_v59 = vld [vmem:[%s2814_s30 + $0x100] sm:$0xff] }
 0x273   : > { %v3848_v11 = vpop.permute.xlu1 %851  ;;  %v3850_v27 = vpop.permute.xlu0 %849 }
 0x274   : > { %5622 = vst [vmem:[#allocation183_spill] sm:$0xff] %v3848_v11  ;;  %5623 = vst [vmem:[#allocation184_spill] sm:$0xff] %v3850_v27  ;;  %v2378_v11 = vld [vmem:[%s2814_s30 + $0x118] sm:$0xff] }
 0x275   : > { %967 = vrot.lane.b32.xlu1 %v2374_v50, %s2698_s17  ;;  %965 = vrot.lane.b32.xlu0 %v2375_v42, %s2698_s17  ;;  %v2379_v42 = vld [vmem:[%s2814_s30 + $0x110] sm:$0xff] }
 0x277   : > { %v3856_v51 = vpop.permute.xlu1 %855  ;;  %v3858_v10 = vpop.permute.xlu0 %853 }
 0x278   : > { %5624 = vst [vmem:[#allocation185_spill] sm:$0xff] %v3856_v51  ;;  %5625 = vst [vmem:[#allocation186_spill] sm:$0xff] %v3858_v10  ;;  %v2380_v51 = vld [vmem:[%s2814_s30 + $0x128] sm:$0xff] }
 0x279   : > { %971 = vrot.lane.b32.xlu1 %v2376_v58, %s2698_s17  ;;  %969 = vrot.lane.b32.xlu0 %v2377_v59, %s2698_s17  ;;  %v2381_v59 = vld [vmem:[%s2814_s30 + $0x120] sm:$0xff] }
 0x27b   : > { %v3864_v27 = vpop.permute.xlu1 %859  ;;  %v3866_v50 = vpop.permute.xlu0 %857 }
 0x27c   : > { %5626 = vst [vmem:[#allocation187_spill] sm:$0xff] %v3864_v27  ;;  %5627 = vst [vmem:[#allocation188_spill] sm:$0xff] %v3866_v50  ;;  %v2382_v27 = vld [vmem:[%s2814_s30 + $0x138] sm:$0xff] }
 0x27d   : > { %975 = vrot.lane.b32.xlu1 %v2378_v11, %s2698_s17  ;;  %973 = vrot.lane.b32.xlu0 %v2379_v42, %s2698_s17  ;;  %v2383_v42 = vld [vmem:[%s2814_s30 + $0x130] sm:$0xff] }
 0x27f   : > { %v3872_v10 = vpop.permute.xlu1 %863  ;;  %v3874_v58 = vpop.permute.xlu0 %861 }
 0x280   : > { %5628 = vst [vmem:[#allocation189_spill] sm:$0xff] %v3872_v10  ;;  %5629 = vst [vmem:[#allocation190_spill] sm:$0xff] %v3874_v58  ;;  %v2384_v10 = vld [vmem:[%s2814_s30 + $0x148] sm:$0xff] }
 0x281   : > { %979 = vrot.lane.b32.xlu1 %v2380_v51, %s2698_s17  ;;  %977 = vrot.lane.b32.xlu0 %v2381_v59, %s2698_s17  ;;  %v2385_v59 = vld [vmem:[%s2814_s30 + $0x140] sm:$0xff] }
 0x283   : > { %v3880_v50 = vpop.permute.xlu1 %867  ;;  %v3882_v11 = vpop.permute.xlu0 %865 }
 0x284   : > { %5630 = vst [vmem:[#allocation191_spill] sm:$0xff] %v3880_v50  ;;  %5631 = vst [vmem:[#allocation192_spill] sm:$0xff] %v3882_v11  ;;  %v2386_v50 = vld [vmem:[%s2814_s30 + $0x158] sm:$0xff] }
 0x285   : > { %983 = vrot.lane.b32.xlu1 %v2382_v27, %s2698_s17  ;;  %981 = vrot.lane.b32.xlu0 %v2383_v42, %s2698_s17  ;;  %v2387_v42 = vld [vmem:[%s2814_s30 + $0x150] sm:$0xff] }
 0x287   : > { %v3888_v58 = vpop.permute.xlu1 %871  ;;  %v3890_v51 = vpop.permute.xlu0 %869 }
 0x288   : > { %5632 = vst [vmem:[#allocation193_spill] sm:$0xff] %v3888_v58  ;;  %5633 = vst [vmem:[#allocation194_spill] sm:$0xff] %v3890_v51  ;;  %v2388_v58 = vld [vmem:[%s2814_s30 + $0x168] sm:$0xff] }
 0x289   : > { %987 = vrot.lane.b32.xlu1 %v2384_v10, %s2698_s17  ;;  %985 = vrot.lane.b32.xlu0 %v2385_v59, %s2698_s17  ;;  %v2389_v59 = vld [vmem:[%s2814_s30 + $0x160] sm:$0xff] }
 0x28b   : > { %v3896_v11 = vpop.permute.xlu1 %875  ;;  %v3898_v27 = vpop.permute.xlu0 %873 }
 0x28c   : > { %5634 = vst [vmem:[#allocation195_spill] sm:$0xff] %v3896_v11  ;;  %5635 = vst [vmem:[#allocation196_spill] sm:$0xff] %v3898_v27  ;;  %v2390_v11 = vld [vmem:[%s2814_s30 + $0x178] sm:$0xff] }
 0x28d   : > { %991 = vrot.lane.b32.xlu1 %v2386_v50, %s2698_s17  ;;  %989 = vrot.lane.b32.xlu0 %v2387_v42, %s2698_s17  ;;  %v2391_v42 = vld [vmem:[%s2814_s30 + $0x170] sm:$0xff] }
 0x28f   : > { %v3904_v51 = vpop.permute.xlu1 %879  ;;  %v3906_v10 = vpop.permute.xlu0 %877 }
 0x290   : > { %5636 = vst [vmem:[#allocation197_spill] sm:$0xff] %v3904_v51  ;;  %5637 = vst [vmem:[#allocation198_spill] sm:$0xff] %v3906_v10 }
 0x291   : > { %995 = vrot.lane.b32.xlu1 %v2388_v58, %s2698_s17  ;;  %993 = vrot.lane.b32.xlu0 %v2389_v59, %s2698_s17  ;;  %v2392_v58 = vld [vmem:[%s2814_s30 + $0x188] sm:$0xff]  ;;  %v2393_v59 = vld [vmem:[%s2814_s30 + $0x180] sm:$0xff] }
 0x293   : > { %v3912_v27 = vpop.permute.xlu1 %883  ;;  %v3914_v50 = vpop.permute.xlu0 %881 }
 0x294   : > { %5638 = vst [vmem:[#allocation199_spill] sm:$0xff] %v3912_v27  ;;  %5639 = vst [vmem:[#allocation200_spill] sm:$0xff] %v3914_v50 }
 0x295   : > { %999 = vrot.lane.b32.xlu1 %v2390_v11, %s2698_s17  ;;  %997 = vrot.lane.b32.xlu0 %v2391_v42, %s2698_s17  ;;  %v2394_v11 = vld [vmem:[%s2814_s30 + $0x198] sm:$0xff]  ;;  %v2395_v42 = vld [vmem:[%s2814_s30 + $0x190] sm:$0xff] }
 0x297   : > { %v3920_v10 = vpop.permute.xlu1 %887  ;;  %v3922_v51 = vpop.permute.xlu0 %885 }
 0x298   : > { %5640 = vst [vmem:[#allocation201_spill] sm:$0xff] %v3920_v10  ;;  %5641 = vst [vmem:[#allocation202_spill] sm:$0xff] %v3922_v51  ;;  %v1417_v51 = vlaneseq }
 0x299   : > { %1003 = vrot.lane.b32.xlu1 %v2392_v58, %s2698_s17  ;;  %1001 = vrot.lane.b32.xlu0 %v2393_v59, %s2698_s17  ;;  %v2397_v59 = vld [vmem:[%s2814_s30 + $0x1a0] sm:$0xff] }
 0x29b   : > { %v3928_v27 = vpop.permute.xlu1 %891  ;;  %v3930_v50 = vpop.permute.xlu0 %889 }
 0x29c   : > { %5642 = vst [vmem:[#allocation203_spill] sm:$0xff] %v3928_v27  ;;  %5643 = vst [vmem:[#allocation204_spill] sm:$0xff] %v3930_v50  ;;  %v1418_v50 = vand.u32 127, %v1417_v51  ;;  %v2401_v51 = vld [vmem:[%s2814_s30 + $0x1c0] sm:$0xff] }
 0x29d   : > { %1007 = vrot.lane.b32.xlu1 %v2394_v11, %s2698_s17  ;;  %1005 = vrot.lane.b32.xlu0 %v2395_v42, %s2698_s17  ;;  %v2399_v42 = vld [vmem:[%s2814_s30 + $0x1b0] sm:$0xff] }
 0x29f   : > { %v3936_v10 = vpop.permute.xlu1 %895  ;;  %v3938_v58 = vpop.permute.xlu0 %893 }
 0x2a0   : > { %5644 = vst [vmem:[#allocation205_spill] sm:$0xff] %v3936_v10  ;;  %5645 = vst [vmem:[#allocation206_spill] sm:$0xff] %v3938_v58  ;;  %v1419_v58 = vand.u32 1, %v1418_v50  ;;  %v1422_v50 = vsub.f32 0.0, %v2948_v1  ;;  %v2403_v1 = vld [vmem:[%s2814_s30 + $0x1d0] sm:$0xff] }
 0x2a1   : > { %1011 = vrot.lane.b32.xlu1 %v2396_v43, %s2698_s17  ;;  %1009 = vrot.lane.b32.xlu0 %v2397_v59, %s2698_s17 }
 0x2a2   : > { %vm3960_vm0 = vcmp.eq.s32.totalorder %v1419_v58, 0 }
 0x2a3   : > { %v3944_v27 = vpop.permute.xlu1 %899  ;;  %v3946_v11 = vpop.permute.xlu0 %897 }
 0x2a4   : > { %5646 = vst [vmem:[#allocation207_spill] sm:$0xff] %v3946_v11 }
 0x2a5   : > { %1015 = vrot.lane.b32.xlu1 %v2398_v26, %s2698_s17  ;;  %1013 = vrot.lane.b32.xlu0 %v2399_v42, %s2698_s17  ;;  %v1421_v26 = vsub.f32 0.0, %v2940_v61  ;;  %v2402_v61 = vld [vmem:[%s2814_s30 + $0x1d8] sm:$0xff] }
 0x2a7   : > { %v3952_v10 = vpop.permute.xlu1 %903  ;;  %v3954_v43 = vpop.permute.xlu0 %901 }
 0x2a8   : > { %5647 = vst [vmem:[#allocation208_spill] sm:$0xff] %v3952_v10  ;;  %5648 = vst [vmem:[#allocation209_spill] sm:$0xff] %v3954_v43 }
 0x2a9   : > { %1019 = vrot.lane.b32.xlu1 %v2400_v35, %s2698_s17  ;;  %1017 = vrot.lane.b32.xlu0 %v2401_v51, %s2698_s17  ;;  %v1423_v35 = vsub.f32 0.0, %v2938_v60  ;;  %v2405_v60 = vld [vmem:[%s2814_s30 + $0x1e0] sm:$0xff] }
 0x2ab   : > { %v908_v42 = vpop.permute.xlu1 %907  ;;  %v906_v10 = vpop.permute.xlu0 %905 }
 0x2ac   : > { %v1678_v43 = vsel %vm3960_vm0, %v1422_v50, %v908_v42  ;;  %v1677_v11 = vsel %vm3960_vm0, %v1421_v26, %v906_v10  ;;  %v1424_v10 = vsub.f32 0.0, %v2946_v0  ;;  %v1426_v0 = vsub.f32 0.0, %v2954_v4  ;;  %v2407_v4 = vld [vmem:[%s2814_s30 + $0x1f0] sm:$0xff] }
 0x2ad   : > { %1934 = vst [vmem:[%s3972_s27 + $0x8] sm:$0xff] %v1678_v43  ;;  %1933 = vst [vmem:[%s3972_s27] sm:$0xff] %v1677_v11  ;;  %1023 = vrot.lane.b32.xlu1 %v2402_v61, %s2698_s17  ;;  %1021 = vrot.lane.b32.xlu0 %v2403_v1, %s2698_s17  ;;  %v1425_v50 = vsub.f32 0.0, %v2956_v5  ;;  %v1428_v5 = vsub.f32 0.0, %v2962_v8 }
 0x2ae   : > { %v2404_v43 = vld [vmem:[%s2814_s30 + $0x1e8] sm:$0xff]  ;;  %v2409_v8 = vld [vmem:[%s2814_s30 + $0x200] sm:$0xff] }
 0x2af   : > { %v912_v58 = vpop.permute.xlu1 %911  ;;  %v910_v51 = vpop.permute.xlu0 %909 }
 0x2b0   : > { %v1680_v26 = vsel %vm3960_vm0, %v1424_v10, %v912_v58  ;;  %v1679_v11 = vsel %vm3960_vm0, %v1423_v35, %v910_v51  ;;  %v2406_v10 = vld [vmem:[%s2814_s30 + $0x1f8] sm:$0xff]  ;;  %v1427_v58 = vsub.f32 0.0, %v2964_v9  ;;  %v1430_v9 = vsub.f32 0.0, %v2970_v12  ;;  %v2411_v12 = vld [vmem:[%s2814_s30 + $0x210] sm:$0xff] }
 0x2b1   : > { %1936 = vst [vmem:[%s3972_s27 + $0x18] sm:$0xff] %v1680_v26  ;;  %1935 = vst [vmem:[%s3972_s27 + $0x10] sm:$0xff] %v1679_v11  ;;  %1027 = vrot.lane.b32.xlu1 %v2404_v43, %s2698_s17  ;;  %1025 = vrot.lane.b32.xlu0 %v2405_v60, %s2698_s17 }
 0x2b2   : > { %v2408_v60 = vld [vmem:[%s2814_s30 + $0x208] sm:$0xff] }
 0x2b3   : > { %v916_v42 = vpop.permute.xlu1 %915  ;;  %v914_v61 = vpop.permute.xlu0 %913 }
 0x2b4   : > { %v1682_v1 = vsel %vm3960_vm0, %v1426_v0, %v916_v42  ;;  %v1681_v35 = vsel %vm3960_vm0, %v1425_v50, %v914_v61  ;;  %v1429_v0 = vsub.f32 0.0, %v2972_v13  ;;  %v1432_v13 = vsub.f32 0.0, %v2978_v16  ;;  %v2413_v16 = vld [vmem:[%s2814_s30 + $0x220] sm:$0xff] }
 0x2b5   : > { %1938 = vst [vmem:[%s3972_s27 + $0x28] sm:$0xff] %v1682_v1  ;;  %1937 = vst [vmem:[%s3972_s27 + $0x20] sm:$0xff] %v1681_v35  ;;  %1031 = vrot.lane.b32.xlu1 %v2406_v10, %s2698_s17  ;;  %1029 = vrot.lane.b32.xlu0 %v2407_v4, %s2698_s17  ;;  %v1431_v10 = vsub.f32 0.0, %v2980_v17  ;;  %v1434_v17 = vsub.f32 0.0, %v2986_v20 }
 0x2b6   : > { %v2410_v35 = vld [vmem:[%s2814_s30 + $0x218] sm:$0xff]  ;;  %v2415_v20 = vld [vmem:[%s2814_s30 + $0x230] sm:$0xff] }
 0x2b7   : > { %v920_v51 = vpop.permute.xlu1 %919  ;;  %v918_v26 = vpop.permute.xlu0 %917 }
 0x2b8   : > { %v1684_v11 = vsel %vm3960_vm0, %v1428_v5, %v920_v51  ;;  %v1683_v43 = vsel %vm3960_vm0, %v1427_v58, %v918_v26  ;;  %v2412_v26 = vld [vmem:[%s2814_s30 + $0x228] sm:$0xff] }
 0x2b9   : > { %1940 = vst [vmem:[%s3972_s27 + $0x38] sm:$0xff] %v1684_v11  ;;  %1939 = vst [vmem:[%s3972_s27 + $0x30] sm:$0xff] %v1683_v43  ;;  %1035 = vrot.lane.b32.xlu1 %v2408_v60, %s2698_s17  ;;  %1033 = vrot.lane.b32.xlu0 %v2409_v8, %s2698_s17  ;;  %v1433_v11 = vsub.f32 0.0, %v2988_v21  ;;  %v1436_v21 = vsub.f32 0.0, %v2994_v24 }
 0x2ba   : > { %v2417_v24 = vld [vmem:[%s2814_s30 + $0x240] sm:$0xff] }
 0x2bb   : > { %v924_v50 = vpop.permute.xlu1 %923  ;;  %v922_v42 = vpop.permute.xlu0 %921 }
 0x2bc   : > { %v1686_v61 = vsel %vm3960_vm0, %v1430_v9, %v924_v50  ;;  %v1685_v1 = vsel %vm3960_vm0, %v1429_v0, %v922_v42  ;;  %v2414_v0 = vld [vmem:[%s2814_s30 + $0x238] sm:$0xff]  ;;  %v1435_v50 = vsub.f32 0.0, %v2996_v25  ;;  %v1438_v25 = vsub.f32 0.0, %v3002_v28  ;;  %v2419_v28 = vld [vmem:[%s2814_s30 + $0x250] sm:$0xff] }
 0x2bd   : > { %1942 = vst [vmem:[%s3972_s27 + $0x48] sm:$0xff] %v1686_v61  ;;  %1941 = vst [vmem:[%s3972_s27 + $0x40] sm:$0xff] %v1685_v1  ;;  %1039 = vrot.lane.b32.xlu1 %v2410_v35, %s2698_s17  ;;  %1037 = vrot.lane.b32.xlu0 %v2411_v12, %s2698_s17 }
 0x2be   : > { %v2416_v12 = vld [vmem:[%s2814_s30 + $0x248] sm:$0xff] }
 0x2bf   : > { %v928_v4 = vpop.permute.xlu1 %927  ;;  %v926_v5 = vpop.permute.xlu0 %925 }
 0x2c0   : > { %v1688_v58 = vsel %vm3960_vm0, %v1432_v13, %v928_v4  ;;  %v1687_v51 = vsel %vm3960_vm0, %v1431_v10, %v926_v5  ;;  %v1437_v13 = vsub.f32 0.0, %v3004_v29  ;;  %v1440_v29 = vsub.f32 0.0, %v3010_v32  ;;  %v2421_v32 = vld [vmem:[%s2814_s30 + $0x260] sm:$0xff] }
 0x2c1   : > { %1944 = vst [vmem:[%s3972_s27 + $0x58] sm:$0xff] %v1688_v58  ;;  %1943 = vst [vmem:[%s3972_s27 + $0x50] sm:$0xff] %v1687_v51  ;;  %1043 = vrot.lane.b32.xlu1 %v2412_v26, %s2698_s17  ;;  %1041 = vrot.lane.b32.xlu0 %v2413_v16, %s2698_s17  ;;  %v1439_v26 = vsub.f32 0.0, %v3012_v33  ;;  %v1442_v33 = vsub.f32 0.0, %v3018_v36 }
 0x2c2   : > { %v2418_v51 = vld [vmem:[%s2814_s30 + $0x258] sm:$0xff]  ;;  %v2423_v36 = vld [vmem:[%s2814_s30 + $0x270] sm:$0xff] }
 0x2c3   : > { %v932_v43 = vpop.permute.xlu1 %931  ;;  %v930_v60 = vpop.permute.xlu0 %929 }
 0x2c4   : > { %v1690_v8 = vsel %vm3960_vm0, %v1434_v17, %v932_v43  ;;  %v1689_v9 = vsel %vm3960_vm0, %v1433_v11, %v930_v60  ;;  %v2420_v60 = vld [vmem:[%s2814_s30 + $0x268] sm:$0xff] }
 0x2c5   : > { %1946 = vst [vmem:[%s3972_s27 + $0x68] sm:$0xff] %v1690_v8  ;;  %1945 = vst [vmem:[%s3972_s27 + $0x60] sm:$0xff] %v1689_v9  ;;  %1047 = vrot.lane.b32.xlu1 %v2414_v0, %s2698_s17  ;;  %1045 = vrot.lane.b32.xlu0 %v2415_v20, %s2698_s17  ;;  %v1441_v8 = vsub.f32 0.0, %v3020_v37  ;;  %v1444_v37 = vsub.f32 0.0, %v3026_v40 }
 0x2c6   : > { %v2425_v40 = vld [vmem:[%s2814_s30 + $0x280] sm:$0xff] }
 0x2c7   : > { %v936_v42 = vpop.permute.xlu1 %935  ;;  %v934_v61 = vpop.permute.xlu0 %933 }
 0x2c8   : > { %v1692_v1 = vsel %vm3960_vm0, %v1436_v21, %v936_v42  ;;  %v1691_v35 = vsel %vm3960_vm0, %v1435_v50, %v934_v61  ;;  %v2422_v50 = vld [vmem:[%s2814_s30 + $0x278] sm:$0xff]  ;;  %v1443_v42 = vsub.f32 0.0, %v3028_v41  ;;  %v1446_v41 = vsub.f32 0.0, %v3034_v44  ;;  %v2427_v44 = vld [vmem:[%s2814_s30 + $0x290] sm:$0xff] }
 0x2c9   : > { %1948 = vst [vmem:[%s3972_s27 + $0x78] sm:$0xff] %v1692_v1  ;;  %1947 = vst [vmem:[%s3972_s27 + $0x70] sm:$0xff] %v1691_v35  ;;  %1051 = vrot.lane.b32.xlu1 %v2416_v12, %s2698_s17  ;;  %1049 = vrot.lane.b32.xlu0 %v2417_v24, %s2698_s17 }
 0x2ca   : > { %v2424_v24 = vld [vmem:[%s2814_s30 + $0x288] sm:$0xff] }
 0x2cb   : > { %v940_v10 = vpop.permute.xlu1 %939  ;;  %v938_v4 = vpop.permute.xlu0 %937 }
 0x2cc   : > { %v1694_v5 = vsel %vm3960_vm0, %v1438_v25, %v940_v10  ;;  %v1693_v58 = vsel %vm3960_vm0, %v1437_v13, %v938_v4  ;;  %v1445_v25 = vsub.f32 0.0, %v3036_v45  ;;  %v1448_v45 = vsub.f32 0.0, %v3042_v48  ;;  %v2429_v48 = vld [vmem:[%s2814_s30 + $0x2a0] sm:$0xff] }
 0x2cd   : > { %1950 = vst [vmem:[%s3972_s27 + $0x88] sm:$0xff] %v1694_v5  ;;  %1949 = vst [vmem:[%s3972_s27 + $0x80] sm:$0xff] %v1693_v58  ;;  %1055 = vrot.lane.b32.xlu1 %v2418_v51, %s2698_s17  ;;  %1053 = vrot.lane.b32.xlu0 %v2419_v28, %s2698_s17  ;;  %v1447_v51 = vsub.f32 0.0, %v3044_v49  ;;  %v1450_v49 = vsub.f32 0.0, %v3050_v52 }
 0x2ce   : > { %v2426_v58 = vld [vmem:[%s2814_s30 + $0x298] sm:$0xff]  ;;  %v2431_v52 = vld [vmem:[%s2814_s30 + $0x2b0] sm:$0xff] }
 0x2cf   : > { %v944_v16 = vpop.permute.xlu1 %943  ;;  %v942_v17 = vpop.permute.xlu0 %941 }
 0x2d0   : > { %v1696_v11 = vsel %vm3960_vm0, %v1440_v29, %v944_v16  ;;  %v1695_v43 = vsel %vm3960_vm0, %v1439_v26, %v942_v17  ;;  %v2428_v17 = vld [vmem:[%s2814_s30 + $0x2a8] sm:$0xff] }
 0x2d1   : > { %1952 = vst [vmem:[%s3972_s27 + $0x98] sm:$0xff] %v1696_v11  ;;  %1951 = vst [vmem:[%s3972_s27 + $0x90] sm:$0xff] %v1695_v43  ;;  %1059 = vrot.lane.b32.xlu1 %v2420_v60, %s2698_s17  ;;  %1057 = vrot.lane.b32.xlu0 %v2421_v32, %s2698_s17  ;;  %v1449_v11 = vsub.f32 0.0, %v3052_v53  ;;  %v1452_v53 = vsub.f32 0.0, %v3058_v56 }
 0x2d2   : > { %v2433_v56 = vld [vmem:[%s2814_s30 + $0x2c0] sm:$0xff] }
 0x2d3   : > { %v948_v9 = vpop.permute.xlu1 %947  ;;  %v946_v0 = vpop.permute.xlu0 %945 }
 0x2d4   : > { %v1698_v20 = vsel %vm3960_vm0, %v1442_v33, %v948_v9  ;;  %v1697_v21 = vsel %vm3960_vm0, %v1441_v8, %v946_v0  ;;  %v2430_v8 = vld [vmem:[%s2814_s30 + $0x2b8] sm:$0xff]  ;;  %v1451_v9 = vsub.f32 0.0, %v3060_v57  ;;  %v1454_v57 = vsub.f32 0.0, %v3066_v62  ;;  %v2435_v62 = vld [vmem:[%s2814_s30 + $0x2d0] sm:$0xff] }
 0x2d5   : > { %1954 = vst [vmem:[%s3972_s27 + $0xa8] sm:$0xff] %v1698_v20  ;;  %1953 = vst [vmem:[%s3972_s27 + $0xa0] sm:$0xff] %v1697_v21  ;;  %1063 = vrot.lane.b32.xlu1 %v2422_v50, %s2698_s17  ;;  %1061 = vrot.lane.b32.xlu0 %v2423_v36, %s2698_s17 }
 0x2d6   : > { %v2432_v36 = vld [vmem:[%s2814_s30 + $0x2c8] sm:$0xff] }
 0x2d7   : > { %v952_v61 = vpop.permute.xlu1 %951  ;;  %v950_v1 = vpop.permute.xlu0 %949 }
 0x2d8   : > { %v1700_v35 = vsel %vm3960_vm0, %v1444_v37, %v952_v61  ;;  %v1699_v12 = vsel %vm3960_vm0, %v1443_v42, %v950_v1  ;;  %v1453_v37 = vsub.f32 0.0, %v3068_v63  ;;  %v1456_v63 = vsub.f32 0.0, %v3074_v6  ;;  %v2437_v6 = vld [vmem:[%s2814_s30 + $0x2e0] sm:$0xff] }
 0x2d9   : > { %1956 = vst [vmem:[%s3972_s27 + $0xb8] sm:$0xff] %v1700_v35  ;;  %1955 = vst [vmem:[%s3972_s27 + $0xb0] sm:$0xff] %v1699_v12  ;;  %1067 = vrot.lane.b32.xlu1 %v2424_v24, %s2698_s17  ;;  %1065 = vrot.lane.b32.xlu0 %v2425_v40, %s2698_s17  ;;  %v1455_v24 = vsub.f32 0.0, %v3076_v7  ;;  %v1458_v7 = vsub.f32 0.0, %v3082_v14 }
 0x2da   : > { %v2434_v12 = vld [vmem:[%s2814_s30 + $0x2d8] sm:$0xff]  ;;  %v2439_v14 = vld [vmem:[%s2814_s30 + $0x2f0] sm:$0xff] }
 0x2db   : > { %v956_v13 = vpop.permute.xlu1 %955  ;;  %v954_v10 = vpop.permute.xlu0 %953 }
 0x2dc   : > { %v1702_v4 = vsel %vm3960_vm0, %v1446_v41, %v956_v13  ;;  %v1701_v5 = vsel %vm3960_vm0, %v1445_v25, %v954_v10  ;;  %v2436_v10 = vld [vmem:[%s2814_s30 + $0x2e8] sm:$0xff] }
 0x2dd   : > { %1958 = vst [vmem:[%s3972_s27 + $0xc8] sm:$0xff] %v1702_v4  ;;  %1957 = vst [vmem:[%s3972_s27 + $0xc0] sm:$0xff] %v1701_v5  ;;  %1071 = vrot.lane.b32.xlu1 %v2426_v58, %s2698_s17  ;;  %1069 = vrot.lane.b32.xlu0 %v2427_v44, %s2698_s17  ;;  %v1457_v4 = vsub.f32 0.0, %v3084_v15  ;;  %v1460_v15 = vsub.f32 0.0, %v3090_v22 }
 0x2de   : > { %v2441_v22 = vld [vmem:[%s2814_s30 + $0x300] sm:$0xff] }
 0x2df   : > { %v960_v28 = vpop.permute.xlu1 %959  ;;  %v958_v29 = vpop.permute.xlu0 %957 }
 0x2e0   : > { %v1704_v26 = vsel %vm3960_vm0, %v1448_v45, %v960_v28  ;;  %v1703_v16 = vsel %vm3960_vm0, %v1447_v51, %v958_v29  ;;  %v2438_v51 = vld [vmem:[%s2814_s30 + $0x2f8] sm:$0xff]  ;;  %v1459_v28 = vsub.f32 0.0, %v3092_v23  ;;  %v1462_v23 = vsub.f32 0.0, %v3098_v30  ;;  %v2443_v30 = vld [vmem:[%s2814_s30 + $0x310] sm:$0xff] }
 0x2e1   : > { %1960 = vst [vmem:[%s3972_s27 + $0xd8] sm:$0xff] %v1704_v26  ;;  %1959 = vst [vmem:[%s3972_s27 + $0xd0] sm:$0xff] %v1703_v16  ;;  %1075 = vrot.lane.b32.xlu1 %v2428_v17, %s2698_s17  ;;  %1073 = vrot.lane.b32.xlu0 %v2429_v48, %s2698_s17 }
 0x2e2   : > { %v2440_v48 = vld [vmem:[%s2814_s30 + $0x308] sm:$0xff] }
 0x2e3   : > { %v964_v43 = vpop.permute.xlu1 %963  ;;  %v962_v60 = vpop.permute.xlu0 %961 }
 0x2e4   : > { %v1706_v32 = vsel %vm3960_vm0, %v1450_v49, %v964_v43  ;;  %v1705_v33 = vsel %vm3960_vm0, %v1449_v11, %v962_v60  ;;  %v1461_v49 = vsub.f32 0.0, %v3100_v31  ;;  %v1464_v31 = vsub.f32 0.0, %v3106_v38  ;;  %v2445_v38 = vld [vmem:[%s2814_s30 + $0x320] sm:$0xff] }
 0x2e5   : > { %1962 = vst [vmem:[%s3972_s27 + $0xe8] sm:$0xff] %v1706_v32  ;;  %1961 = vst [vmem:[%s3972_s27 + $0xe0] sm:$0xff] %v1705_v33  ;;  %1079 = vrot.lane.b32.xlu1 %v2430_v8, %s2698_s17  ;;  %1077 = vrot.lane.b32.xlu0 %v2431_v52, %s2698_s17  ;;  %v1463_v8 = vsub.f32 0.0, %v3108_v39  ;;  %v1466_v39 = vsub.f32 0.0, %v3114_v46 }
 0x2e6   : > { %v2442_v33 = vld [vmem:[%s2814_s30 + $0x318] sm:$0xff]  ;;  %v2447_v46 = vld [vmem:[%s2814_s30 + $0x330] sm:$0xff] }
 0x2e7   : > { %v968_v0 = vpop.permute.xlu1 %967  ;;  %v966_v20 = vpop.permute.xlu0 %965 }
 0x2e8   : > { %v1708_v21 = vsel %vm3960_vm0, %v1452_v53, %v968_v0  ;;  %v1707_v50 = vsel %vm3960_vm0, %v1451_v9, %v966_v20  ;;  %v2444_v20 = vld [vmem:[%s2814_s30 + $0x328] sm:$0xff] }
 0x2e9   : > { %1964 = vst [vmem:[%s3972_s27 + $0xf8] sm:$0xff] %v1708_v21  ;;  %1963 = vst [vmem:[%s3972_s27 + $0xf0] sm:$0xff] %v1707_v50  ;;  %1083 = vrot.lane.b32.xlu1 %v2432_v36, %s2698_s17  ;;  %1081 = vrot.lane.b32.xlu0 %v2433_v56, %s2698_s17  ;;  %v1465_v21 = vsub.f32 0.0, %v3116_v47  ;;  %v1468_v47 = vsub.f32 0.0, %v3122_v54 }
 0x2ea   : > { %v2449_v54 = vld [vmem:[%s2814_s30 + $0x340] sm:$0xff] }
 0x2eb   : > { %v972_v42 = vpop.permute.xlu1 %971  ;;  %v970_v61 = vpop.permute.xlu0 %969 }
 0x2ec   : > { %v1710_v1 = vsel %vm3960_vm0, %v1454_v57, %v972_v42  ;;  %v1709_v35 = vsel %vm3960_vm0, %v1453_v37, %v970_v61  ;;  %v2446_v37 = vld [vmem:[%s2814_s30 + $0x338] sm:$0xff]  ;;  %v1467_v42 = vsub.f32 0.0, %v3124_v55  ;;  %v1470_v55 = vsub.f32 0.0, %v3130_v2  ;;  %v2451_v2 = vld [vmem:[%s2814_s30 + $0x350] sm:$0xff] }
 0x2ed   : > { %1966 = vst [vmem:[%s3972_s27 + $0x108] sm:$0xff] %v1710_v1  ;;  %1965 = vst [vmem:[%s3972_s27 + $0x100] sm:$0xff] %v1709_v35  ;;  %1087 = vrot.lane.b32.xlu1 %v2434_v12, %s2698_s17  ;;  %1085 = vrot.lane.b32.xlu0 %v2435_v62, %s2698_s17 }
 0x2ee   : > { %v2448_v62 = vld [vmem:[%s2814_s30 + $0x348] sm:$0xff] }
 0x2ef   : > { %v976_v40 = vpop.permute.xlu1 %975  ;;  %v974_v41 = vpop.permute.xlu0 %973 }
 0x2f0   : > { %v1712_v25 = vsel %vm3960_vm0, %v1456_v63, %v976_v40  ;;  %v1711_v13 = vsel %vm3960_vm0, %v1455_v24, %v974_v41  ;;  %v1469_v63 = vsub.f32 0.0, %v3132_v3  ;;  %v1472_v3 = vsub.f32 0.0, %v3138_v18  ;;  %v2453_v18 = vld [vmem:[%s2814_s30 + $0x360] sm:$0xff] }
 0x2f1   : > { %1968 = vst [vmem:[%s3972_s27 + $0x118] sm:$0xff] %v1712_v25  ;;  %1967 = vst [vmem:[%s3972_s27 + $0x110] sm:$0xff] %v1711_v13  ;;  %1091 = vrot.lane.b32.xlu1 %v2436_v10, %s2698_s17  ;;  %1089 = vrot.lane.b32.xlu0 %v2437_v6, %s2698_s17  ;;  %v1471_v10 = vsub.f32 0.0, %v3140_v19  ;;  %v1474_v19 = vsub.f32 0.0, %v3146_v34 }
 0x2f2   : > { %v2450_v13 = vld [vmem:[%s2814_s30 + $0x358] sm:$0xff]  ;;  %v2455_v34 = vld [vmem:[%s2814_s30 + $0x370] sm:$0xff] }
 0x2f3   : > { %v980_v5 = vpop.permute.xlu1 %979  ;;  %v978_v58 = vpop.permute.xlu0 %977 }
 0x2f4   : > { %v1714_v44 = vsel %vm3960_vm0, %v1458_v7, %v980_v5  ;;  %v1713_v45 = vsel %vm3960_vm0, %v1457_v4, %v978_v58  ;;  %v2452_v58 = vld [vmem:[%s2814_s30 + $0x368] sm:$0xff] }
 0x2f5   : > { %1970 = vst [vmem:[%s3972_s27 + $0x128] sm:$0xff] %v1714_v44  ;;  %1969 = vst [vmem:[%s3972_s27 + $0x120] sm:$0xff] %v1713_v45  ;;  %1095 = vrot.lane.b32.xlu1 %v2438_v51, %s2698_s17  ;;  %1093 = vrot.lane.b32.xlu0 %v2439_v14, %s2698_s17  ;;  %v5651_v44 = vld [vmem:[#allocation8_spill] sm:$0xff] }
 0x2f6   : > { %v1473_v45 = vsub.f32 0.0, %v5651_v44 }
 0x2f7   : > { %v984_v29 = vpop.permute.xlu1 %983  ;;  %v982_v26 = vpop.permute.xlu0 %981 }
 0x2f8   : > { %v1716_v16 = vsel %vm3960_vm0, %v1460_v15, %v984_v29  ;;  %v1715_v17 = vsel %vm3960_vm0, %v1459_v28, %v982_v26  ;;  %v2454_v29 = vld [vmem:[%s2814_s30 + $0x378] sm:$0xff]  ;;  %v5652_v26 = vld [vmem:[#allocation9_spill] sm:$0xff] }
 0x2f9   : > { %1972 = vst [vmem:[%s3972_s27 + $0x138] sm:$0xff] %v1716_v16  ;;  %1971 = vst [vmem:[%s3972_s27 + $0x130] sm:$0xff] %v1715_v17  ;;  %1099 = vrot.lane.b32.xlu1 %v2440_v48, %s2698_s17  ;;  %1097 = vrot.lane.b32.xlu0 %v2441_v22, %s2698_s17  ;;  %v1476_v16 = vsub.f32 0.0, %v5652_v26  ;;  %v5653_v17 = vld [vmem:[#allocation10_spill] sm:$0xff] }
 0x2fa   : > { %v1475_v48 = vsub.f32 0.0, %v5653_v17  ;;  %v5665_v26 = vld [vmem:[#allocation22_spill] sm:$0xff] }
 0x2fb   : > { %v988_v11 = vpop.permute.xlu1 %987  ;;  %v986_v43 = vpop.permute.xlu0 %985 }
 0x2fc   : > { %v1718_v60 = vsel %vm3960_vm0, %v1462_v23, %v988_v11  ;;  %v1717_v32 = vsel %vm3960_vm0, %v1461_v49, %v986_v43  ;;  %v2456_v43 = vld [vmem:[%s2814_s30 + $0x388] sm:$0xff] }
 0x2fd   : > { %1974 = vst [vmem:[%s3972_s27 + $0x148] sm:$0xff] %v1718_v60  ;;  %1973 = vst [vmem:[%s3972_s27 + $0x140] sm:$0xff] %v1717_v32  ;;  %1103 = vrot.lane.b32.xlu1 %v2442_v33, %s2698_s17  ;;  %1101 = vrot.lane.b32.xlu0 %v2443_v30, %s2698_s17  ;;  %v5654_v32 = vld [vmem:[#allocation11_spill] sm:$0xff]  ;;  %v5655_v30 = vld [vmem:[#allocation12_spill] sm:$0xff] }
 0x2fe   : > { %v2457_v60 = vld [vmem:[%s2814_s30 + $0x380] sm:$0xff]  ;;  %v1478_v33 = vsub.f32 0.0, %v5654_v32 }
 0x2ff   : > { %v992_v52 = vpop.permute.xlu1 %991  ;;  %v990_v53 = vpop.permute.xlu0 %989  ;;  %v5667_v32 = vld [vmem:[#allocation24_spill] sm:$0xff] }
 0x300   : > { %v1720_v9 = vsel %vm3960_vm0, %v1464_v31, %v992_v52  ;;  %v1719_v0 = vsel %vm3960_vm0, %v1463_v8, %v990_v53  ;;  %v1477_v31 = vsub.f32 0.0, %v5655_v30 }
 0x301   : > { %1976 = vst [vmem:[%s3972_s27 + $0x158] sm:$0xff] %v1720_v9  ;;  %1975 = vst [vmem:[%s3972_s27 + $0x150] sm:$0xff] %v1719_v0  ;;  %1107 = vrot.lane.b32.xlu1 %v2444_v20, %s2698_s17  ;;  %1105 = vrot.lane.b32.xlu0 %v2445_v38, %s2698_s17  ;;  %v5656_v38 = vld [vmem:[#allocation13_spill] sm:$0xff] }
 0x302   : > { %v2458_v0 = vld [vmem:[%s2814_s30 + $0x398] sm:$0xff]  ;;  %v2459_v20 = vld [vmem:[%s2814_s30 + $0x390] sm:$0xff] }
 0x303   : > { %v996_v50 = vpop.permute.xlu1 %995  ;;  %v994_v36 = vpop.permute.xlu0 %993 }
 0x304   : > { %v1722_v56 = vsel %vm3960_vm0, %v1466_v39, %v996_v50  ;;  %v1721_v57 = vsel %vm3960_vm0, %v1465_v21, %v994_v36  ;;  %v1480_v39 = vsub.f32 0.0, %v5656_v38  ;;  %v5657_v21 = vld [vmem:[#allocation14_spill] sm:$0xff] }
 0x305   : > { %1978 = vst [vmem:[%s3972_s27 + $0x168] sm:$0xff] %v1722_v56  ;;  %1977 = vst [vmem:[%s3972_s27 + $0x160] sm:$0xff] %v1721_v57  ;;  %1111 = vrot.lane.b32.xlu1 %v2446_v37, %s2698_s17  ;;  %1109 = vrot.lane.b32.xlu0 %v2447_v46, %s2698_s17  ;;  %v1479_v50 = vsub.f32 0.0, %v5657_v21  ;;  %v5669_v38 = vld [vmem:[#allocation26_spill] sm:$0xff] }
 0x306   : > { %v2460_v46 = vld [vmem:[%s2814_s30 + $0x3a8] sm:$0xff] }
 0x307   : > { %v1000_v61 = vpop.permute.xlu1 %999  ;;  %v998_v1 = vpop.permute.xlu0 %997 }
 0x308   : > { %v1724_v35 = vsel %vm3960_vm0, %v1468_v47, %v1000_v61  ;;  %v1723_v12 = vsel %vm3960_vm0, %v1467_v42, %v998_v1  ;;  %v2461_v47 = vld [vmem:[%s2814_s30 + $0x3a0] sm:$0xff]  ;;  %v5658_v42 = vld [vmem:[#allocation15_spill] sm:$0xff] }
 0x309   : > { %1980 = vst [vmem:[%s3972_s27 + $0x178] sm:$0xff] %v1724_v35  ;;  %1979 = vst [vmem:[%s3972_s27 + $0x170] sm:$0xff] %v1723_v12  ;;  %1115 = vrot.lane.b32.xlu1 %v2448_v62, %s2698_s17  ;;  %1113 = vrot.lane.b32.xlu0 %v2449_v54, %s2698_s17  ;;  %v1482_v61 = vsub.f32 0.0, %v5658_v42  ;;  %v5659_v1 = vld [vmem:[#allocation16_spill] sm:$0xff] }
 0x30a   : > { %v1481_v35 = vsub.f32 0.0, %v5659_v1  ;;  %v5671_v42 = vld [vmem:[#allocation28_spill] sm:$0xff] }
 0x30b   : > { %v1004_v24 = vpop.permute.xlu1 %1003  ;;  %v1002_v40 = vpop.permute.xlu0 %1001 }
 0x30c   : > { %v1726_v41 = vsel %vm3960_vm0, %v1470_v55, %v1004_v24  ;;  %v1725_v25 = vsel %vm3960_vm0, %v1469_v63, %v1002_v40  ;;  %v2462_v63 = vld [vmem:[%s2814_s30 + $0x3b8] sm:$0xff]  ;;  %v2463_v24 = vld [vmem:[%s2814_s30 + $0x3b0] sm:$0xff]  ;;  %v5660_v40 = vld [vmem:[#allocation17_spill] sm:$0xff] }
 0x30d   : > { %1982 = vst [vmem:[%s3972_s27 + $0x188] sm:$0xff] %v1726_v41  ;;  %1981 = vst [vmem:[%s3972_s27 + $0x180] sm:$0xff] %v1725_v25  ;;  %1119 = vrot.lane.b32.xlu1 %v2450_v13, %s2698_s17  ;;  %1117 = vrot.lane.b32.xlu0 %v2451_v2, %s2698_s17  ;;  %v1484_v41 = vsub.f32 0.0, %v5660_v40  ;;  %v5661_v25 = vld [vmem:[#allocation18_spill] sm:$0xff] }
 0x30e   : > { %v1483_v13 = vsub.f32 0.0, %v5661_v25  ;;  %v5673_v40 = vld [vmem:[#allocation30_spill] sm:$0xff] }
 0x30f   : > { %v1008_v6 = vpop.permute.xlu1 %1007  ;;  %v1006_v7 = vpop.permute.xlu0 %1005 }
 0x310   : > { %v1728_v4 = vsel %vm3960_vm0, %v1472_v3, %v1008_v6  ;;  %v1727_v5 = vsel %vm3960_vm0, %v1471_v10, %v1006_v7  ;;  %v2464_v7 = vld [vmem:[%s2814_s30 + $0x3c8] sm:$0xff] }
 0x311   : > { %1984 = vst [vmem:[%s3972_s27 + $0x198] sm:$0xff] %v1728_v4  ;;  %1983 = vst [vmem:[%s3972_s27 + $0x190] sm:$0xff] %v1727_v5  ;;  %1123 = vrot.lane.b32.xlu1 %v2452_v58, %s2698_s17  ;;  %1121 = vrot.lane.b32.xlu0 %v2453_v18, %s2698_s17  ;;  %v5662_v5 = vld [vmem:[#allocation19_spill] sm:$0xff]  ;;  %v5663_v18 = vld [vmem:[#allocation20_spill] sm:$0xff] }
 0x312   : > { %v2465_v4 = vld [vmem:[%s2814_s30 + $0x3c0] sm:$0xff]  ;;  %v1486_v58 = vsub.f32 0.0, %v5662_v5 }
 0x313   : > { %v1012_v51 = vpop.permute.xlu1 %1011  ;;  %v1010_v14 = vpop.permute.xlu0 %1009  ;;  %v5675_v5 = vld [vmem:[#allocation32_spill] sm:$0xff] }
 0x314   : > { %v1730_v15 = vsel %vm3960_vm0, %v1474_v19, %v1012_v51  ;;  %v1729_v28 = vsel %vm3960_vm0, %v1473_v45, %v1010_v14  ;;  %v1485_v19 = vsub.f32 0.0, %v5663_v18 }
 0x315   : > { %1986 = vst [vmem:[%s3972_s27 + $0x1a8] sm:$0xff] %v1730_v15  ;;  %1985 = vst [vmem:[%s3972_s27 + $0x1a0] sm:$0xff] %v1729_v28  ;;  %1127 = vrot.lane.b32.xlu1 %v2454_v29, %s2698_s17  ;;  %1125 = vrot.lane.b32.xlu0 %v2455_v34, %s2698_s17  ;;  %v5664_v29 = vld [vmem:[#allocation21_spill] sm:$0xff] }
 0x316   : > { %v2466_v15 = vld [vmem:[%s2814_s30 + $0x3d8] sm:$0xff]  ;;  %v2467_v28 = vld [vmem:[%s2814_s30 + $0x3d0] sm:$0xff]  ;;  %v1488_v34 = vsub.f32 0.0, %v5664_v29 }
 0x317   : > { %v1016_v22 = vpop.permute.xlu1 %1015  ;;  %v1014_v23 = vpop.permute.xlu0 %1013  ;;  %v5677_v29 = vld [vmem:[#allocation34_spill] sm:$0xff] }
 0x318   : > { %v1732_v49 = vsel %vm3960_vm0, %v1476_v16, %v1016_v22  ;;  %v1731_v11 = vsel %vm3960_vm0, %v1475_v48, %v1014_v23  ;;  %v1487_v16 = vsub.f32 0.0, %v5665_v26 }
 0x319   : > { %1988 = vst [vmem:[%s3972_s27 + $0x1b8] sm:$0xff] %v1732_v49  ;;  %1987 = vst [vmem:[%s3972_s27 + $0x1b0] sm:$0xff] %v1731_v11  ;;  %1131 = vrot.lane.b32.xlu1 %v2456_v43, %s2698_s17  ;;  %1129 = vrot.lane.b32.xlu0 %v2457_v60, %s2698_s17  ;;  %v5666_v43 = vld [vmem:[#allocation23_spill] sm:$0xff] }
 0x31a   : > { %v2468_v49 = vld [vmem:[%s2814_s30 + $0x3e8] sm:$0xff]  ;;  %v2469_v11 = vld [vmem:[%s2814_s30 + $0x3e0] sm:$0xff]  ;;  %v1490_v60 = vsub.f32 0.0, %v5666_v43 }
 0x31b   : > { %v1020_v8 = vpop.permute.xlu1 %1019  ;;  %v1018_v52 = vpop.permute.xlu0 %1017  ;;  %v5679_v43 = vld [vmem:[#allocation36_spill] sm:$0xff] }
 0x31c   : > { %v1734_v53 = vsel %vm3960_vm0, %v1478_v33, %v1020_v8  ;;  %v1733_v9 = vsel %vm3960_vm0, %v1477_v31, %v1018_v52  ;;  %v1489_v33 = vsub.f32 0.0, %v5667_v32 }
 0x31d   : > { %1990 = vst [vmem:[%s3972_s27 + $0x1c8] sm:$0xff] %v1734_v53  ;;  %1989 = vst [vmem:[%s3972_s27 + $0x1c0] sm:$0xff] %v1733_v9  ;;  %1135 = vrot.lane.b32.xlu1 %v2458_v0, %s2698_s17  ;;  %1133 = vrot.lane.b32.xlu0 %v2459_v20, %s2698_s17  ;;  %v5668_v0 = vld [vmem:[#allocation25_spill] sm:$0xff] }
 0x31e   : > { %v2470_v53 = vld [vmem:[%s2814_s30 + $0x3f8] sm:$0xff]  ;;  %v2471_v9 = vld [vmem:[%s2814_s30 + $0x3f0] sm:$0xff]  ;;  %v1492_v20 = vsub.f32 0.0, %v5668_v0 }
 0x31f   : > { %v1024_v36 = vpop.permute.xlu1 %1023  ;;  %v1022_v56 = vpop.permute.xlu0 %1021  ;;  %v5681_v0 = vld [vmem:[#allocation38_spill] sm:$0xff] }
 0x320   : > { %v1736_v57 = vsel %vm3960_vm0, %v1480_v39, %v1024_v36  ;;  %v1735_v37 = vsel %vm3960_vm0, %v1479_v50, %v1022_v56  ;;  %v1491_v39 = vsub.f32 0.0, %v5669_v38 }
 0x321   : > { %1992 = vst [vmem:[%s3972_s27 + $0x1d8] sm:$0xff] %v1736_v57  ;;  %1991 = vst [vmem:[%s3972_s27 + $0x1d0] sm:$0xff] %v1735_v37  ;;  %1139 = vrot.lane.b32.xlu1 %v2460_v46, %s2698_s17  ;;  %1137 = vrot.lane.b32.xlu0 %v2461_v47, %s2698_s17  ;;  %v5670_v46 = vld [vmem:[#allocation27_spill] sm:$0xff] }
 0x322   : > { %v2472_v57 = vld [vmem:[%s2814_s30 + $0x408] sm:$0xff]  ;;  %v2473_v37 = vld [vmem:[%s2814_s30 + $0x400] sm:$0xff]  ;;  %v1494_v47 = vsub.f32 0.0, %v5670_v46 }
 0x323   : > { %v1028_v12 = vpop.permute.xlu1 %1027  ;;  %v1026_v62 = vpop.permute.xlu0 %1025  ;;  %v5683_v46 = vld [vmem:[#allocation40_spill] sm:$0xff] }
 0x324   : > { %v1738_v54 = vsel %vm3960_vm0, %v1482_v61, %v1028_v12  ;;  %v1737_v55 = vsel %vm3960_vm0, %v1481_v35, %v1026_v62  ;;  %v1493_v61 = vsub.f32 0.0, %v5671_v42 }
 0x325   : > { %1994 = vst [vmem:[%s3972_s27 + $0x1e8] sm:$0xff] %v1738_v54  ;;  %1993 = vst [vmem:[%s3972_s27 + $0x1e0] sm:$0xff] %v1737_v55  ;;  %1143 = vrot.lane.b32.xlu1 %v2462_v63, %s2698_s17  ;;  %1141 = vrot.lane.b32.xlu0 %v2463_v24, %s2698_s17  ;;  %v5672_v63 = vld [vmem:[#allocation29_spill] sm:$0xff] }
 0x326   : > { %v2474_v54 = vld [vmem:[%s2814_s30 + $0x418] sm:$0xff]  ;;  %v2475_v55 = vld [vmem:[%s2814_s30 + $0x410] sm:$0xff]  ;;  %v1496_v24 = vsub.f32 0.0, %v5672_v63 }
 0x327   : > { %v1032_v2 = vpop.permute.xlu1 %1031  ;;  %v1030_v3 = vpop.permute.xlu0 %1029  ;;  %v5685_v63 = vld [vmem:[#allocation42_spill] sm:$0xff] }
 0x328   : > { %v1740_v10 = vsel %vm3960_vm0, %v1484_v41, %v1032_v2  ;;  %v1739_v6 = vsel %vm3960_vm0, %v1483_v13, %v1030_v3  ;;  %v1495_v41 = vsub.f32 0.0, %v5673_v40 }
 0x329   : > { %1996 = vst [vmem:[%s3972_s27 + $0x1f8] sm:$0xff] %v1740_v10  ;;  %1995 = vst [vmem:[%s3972_s27 + $0x1f0] sm:$0xff] %v1739_v6  ;;  %1147 = vrot.lane.b32.xlu1 %v2464_v7, %s2698_s17  ;;  %1145 = vrot.lane.b32.xlu0 %v2465_v4, %s2698_s17  ;;  %v5674_v7 = vld [vmem:[#allocation31_spill] sm:$0xff] }
 0x32a   : > { %v2476_v10 = vld [vmem:[%s2814_s30 + $0x428] sm:$0xff]  ;;  %v2477_v6 = vld [vmem:[%s2814_s30 + $0x420] sm:$0xff]  ;;  %v1498_v4 = vsub.f32 0.0, %v5674_v7 }
 0x32b   : > { %v1036_v44 = vpop.permute.xlu1 %1035  ;;  %v1034_v45 = vpop.permute.xlu0 %1033  ;;  %v5687_v7 = vld [vmem:[#allocation44_spill] sm:$0xff] }
 0x32c   : > { %v1742_v51 = vsel %vm3960_vm0, %v1486_v58, %v1036_v44  ;;  %v1741_v14 = vsel %vm3960_vm0, %v1485_v19, %v1034_v45  ;;  %v1497_v58 = vsub.f32 0.0, %v5675_v5 }
 0x32d   : > { %1998 = vst [vmem:[%s3972_s27 + $0x208] sm:$0xff] %v1742_v51  ;;  %1997 = vst [vmem:[%s3972_s27 + $0x200] sm:$0xff] %v1741_v14  ;;  %1151 = vrot.lane.b32.xlu1 %v2466_v15, %s2698_s17  ;;  %1149 = vrot.lane.b32.xlu0 %v2467_v28, %s2698_s17  ;;  %v5676_v15 = vld [vmem:[#allocation33_spill] sm:$0xff] }
 0x32e   : > { %v2478_v51 = vld [vmem:[%s2814_s30 + $0x438] sm:$0xff]  ;;  %v2479_v14 = vld [vmem:[%s2814_s30 + $0x430] sm:$0xff]  ;;  %v1500_v28 = vsub.f32 0.0, %v5676_v15 }
 0x32f   : > { %v1040_v17 = vpop.permute.xlu1 %1039  ;;  %v1038_v48 = vpop.permute.xlu0 %1037  ;;  %v5689_v15 = vld [vmem:[#allocation46_spill] sm:$0xff] }
 0x330   : > { %v1744_v22 = vsel %vm3960_vm0, %v1488_v34, %v1040_v17  ;;  %v1743_v23 = vsel %vm3960_vm0, %v1487_v16, %v1038_v48  ;;  %v1499_v34 = vsub.f32 0.0, %v5677_v29 }
 0x331   : > { %2000 = vst [vmem:[%s3972_s27 + $0x218] sm:$0xff] %v1744_v22  ;;  %1999 = vst [vmem:[%s3972_s27 + $0x210] sm:$0xff] %v1743_v23  ;;  %1155 = vrot.lane.b32.xlu1 %v2468_v49, %s2698_s17  ;;  %1153 = vrot.lane.b32.xlu0 %v2469_v11, %s2698_s17  ;;  %v5678_v49 = vld [vmem:[#allocation35_spill] sm:$0xff] }
 0x332   : > { %v2480_v22 = vld [vmem:[%s2814_s30 + $0x448] sm:$0xff]  ;;  %v2481_v23 = vld [vmem:[%s2814_s30 + $0x440] sm:$0xff]  ;;  %v1502_v11 = vsub.f32 0.0, %v5678_v49 }
 0x333   : > { %v1044_v30 = vpop.permute.xlu1 %1043  ;;  %v1042_v31 = vpop.permute.xlu0 %1041  ;;  %v5691_v49 = vld [vmem:[#allocation48_spill] sm:$0xff] }
 0x334   : > { %v1746_v8 = vsel %vm3960_vm0, %v1490_v60, %v1044_v30  ;;  %v1745_v52 = vsel %vm3960_vm0, %v1489_v33, %v1042_v31  ;;  %v1501_v60 = vsub.f32 0.0, %v5679_v43 }
 0x335   : > { %2002 = vst [vmem:[%s3972_s27 + $0x228] sm:$0xff] %v1746_v8  ;;  %2001 = vst [vmem:[%s3972_s27 + $0x220] sm:$0xff] %v1745_v52  ;;  %1159 = vrot.lane.b32.xlu1 %v2470_v53, %s2698_s17  ;;  %1157 = vrot.lane.b32.xlu0 %v2471_v9, %s2698_s17  ;;  %v5680_v53 = vld [vmem:[#allocation37_spill] sm:$0xff] }
 0x336   : > { %v2482_v8 = vld [vmem:[%s2814_s30 + $0x458] sm:$0xff]  ;;  %v2483_v52 = vld [vmem:[%s2814_s30 + $0x450] sm:$0xff]  ;;  %v1504_v9 = vsub.f32 0.0, %v5680_v53 }
 0x337   : > { %v1048_v21 = vpop.permute.xlu1 %1047  ;;  %v1046_v50 = vpop.permute.xlu0 %1045  ;;  %v5693_v53 = vld [vmem:[#allocation50_spill] sm:$0xff] }
 0x338   : > { %v1748_v36 = vsel %vm3960_vm0, %v1492_v20, %v1048_v21  ;;  %v1747_v56 = vsel %vm3960_vm0, %v1491_v39, %v1046_v50  ;;  %v1503_v20 = vsub.f32 0.0, %v5681_v0 }
 0x339   : > { %2004 = vst [vmem:[%s3972_s27 + $0x238] sm:$0xff] %v1748_v36  ;;  %2003 = vst [vmem:[%s3972_s27 + $0x230] sm:$0xff] %v1747_v56  ;;  %1163 = vrot.lane.b32.xlu1 %v2472_v57, %s2698_s17  ;;  %1161 = vrot.lane.b32.xlu0 %v2473_v37, %s2698_s17  ;;  %v5682_v57 = vld [vmem:[#allocation39_spill] sm:$0xff] }
 0x33a   : > { %v2484_v36 = vld [vmem:[%s2814_s30 + $0x468] sm:$0xff]  ;;  %v2485_v56 = vld [vmem:[%s2814_s30 + $0x460] sm:$0xff]  ;;  %v1506_v37 = vsub.f32 0.0, %v5682_v57 }
 0x33b   : > { %v1052_v1 = vpop.permute.xlu1 %1051  ;;  %v1050_v35 = vpop.permute.xlu0 %1049  ;;  %v5695_v57 = vld [vmem:[#allocation52_spill] sm:$0xff] }
 0x33c   : > { %v1750_v12 = vsel %vm3960_vm0, %v1494_v47, %v1052_v1  ;;  %v1749_v62 = vsel %vm3960_vm0, %v1493_v61, %v1050_v35  ;;  %v1505_v47 = vsub.f32 0.0, %v5683_v46 }
 0x33d   : > { %2006 = vst [vmem:[%s3972_s27 + $0x248] sm:$0xff] %v1750_v12  ;;  %2005 = vst [vmem:[%s3972_s27 + $0x240] sm:$0xff] %v1749_v62  ;;  %1167 = vrot.lane.b32.xlu1 %v2474_v54, %s2698_s17  ;;  %1165 = vrot.lane.b32.xlu0 %v2475_v55, %s2698_s17  ;;  %v5684_v54 = vld [vmem:[#allocation41_spill] sm:$0xff] }
 0x33e   : > { %v2486_v12 = vld [vmem:[%s2814_s30 + $0x478] sm:$0xff]  ;;  %v2487_v62 = vld [vmem:[%s2814_s30 + $0x470] sm:$0xff]  ;;  %v1508_v55 = vsub.f32 0.0, %v5684_v54 }
 0x33f   : > { %v1056_v25 = vpop.permute.xlu1 %1055  ;;  %v1054_v13 = vpop.permute.xlu0 %1053  ;;  %v5697_v54 = vld [vmem:[#allocation54_spill] sm:$0xff] }
 0x340   : > { %v1752_v2 = vsel %vm3960_vm0, %v1496_v24, %v1056_v25  ;;  %v1751_v3 = vsel %vm3960_vm0, %v1495_v41, %v1054_v13  ;;  %v1507_v24 = vsub.f32 0.0, %v5685_v63 }
 0x341   : > { %2008 = vst [vmem:[%s3972_s27 + $0x258] sm:$0xff] %v1752_v2  ;;  %2007 = vst [vmem:[%s3972_s27 + $0x250] sm:$0xff] %v1751_v3  ;;  %1171 = vrot.lane.b32.xlu1 %v2476_v10, %s2698_s17  ;;  %1169 = vrot.lane.b32.xlu0 %v2477_v6, %s2698_s17  ;;  %v5686_v10 = vld [vmem:[#allocation43_spill] sm:$0xff] }
 0x342   : > { %v2488_v2 = vld [vmem:[%s2814_s30 + $0x488] sm:$0xff]  ;;  %v2489_v3 = vld [vmem:[%s2814_s30 + $0x480] sm:$0xff]  ;;  %v1510_v6 = vsub.f32 0.0, %v5686_v10 }
 0x343   : > { %v1060_v18 = vpop.permute.xlu1 %1059  ;;  %v1058_v19 = vpop.permute.xlu0 %1057  ;;  %v5699_v10 = vld [vmem:[#allocation56_spill] sm:$0xff] }
 0x344   : > { %v1754_v44 = vsel %vm3960_vm0, %v1498_v4, %v1060_v18  ;;  %v1753_v45 = vsel %vm3960_vm0, %v1497_v58, %v1058_v19  ;;  %v1509_v4 = vsub.f32 0.0, %v5687_v7 }
 0x345   : > { %2010 = vst [vmem:[%s3972_s27 + $0x268] sm:$0xff] %v1754_v44  ;;  %2009 = vst [vmem:[%s3972_s27 + $0x260] sm:$0xff] %v1753_v45  ;;  %1175 = vrot.lane.b32.xlu1 %v2478_v51, %s2698_s17  ;;  %1173 = vrot.lane.b32.xlu0 %v2479_v14, %s2698_s17  ;;  %v5688_v51 = vld [vmem:[#allocation45_spill] sm:$0xff] }
 0x346   : > { %v2490_v44 = vld [vmem:[%s2814_s30 + $0x498] sm:$0xff]  ;;  %v2491_v45 = vld [vmem:[%s2814_s30 + $0x490] sm:$0xff]  ;;  %v1512_v14 = vsub.f32 0.0, %v5688_v51 }
 0x347   : > { %v1064_v26 = vpop.permute.xlu1 %1063  ;;  %v1062_v16 = vpop.permute.xlu0 %1061  ;;  %v5701_v51 = vld [vmem:[#allocation58_spill] sm:$0xff] }
 0x348   : > { %v1756_v17 = vsel %vm3960_vm0, %v1500_v28, %v1064_v26  ;;  %v1755_v48 = vsel %vm3960_vm0, %v1499_v34, %v1062_v16  ;;  %v1511_v28 = vsub.f32 0.0, %v5689_v15 }
 0x349   : > { %2012 = vst [vmem:[%s3972_s27 + $0x278] sm:$0xff] %v1756_v17  ;;  %2011 = vst [vmem:[%s3972_s27 + $0x270] sm:$0xff] %v1755_v48  ;;  %1179 = vrot.lane.b32.xlu1 %v2480_v22, %s2698_s17  ;;  %1177 = vrot.lane.b32.xlu0 %v2481_v23, %s2698_s17  ;;  %v5690_v22 = vld [vmem:[#allocation47_spill] sm:$0xff] }
 0x34a   : > { %v2492_v17 = vld [vmem:[%s2814_s30 + $0x4a8] sm:$0xff]  ;;  %v2493_v48 = vld [vmem:[%s2814_s30 + $0x4a0] sm:$0xff]  ;;  %v1514_v23 = vsub.f32 0.0, %v5690_v22 }
 0x34b   : > { %v1068_v32 = vpop.permute.xlu1 %1067  ;;  %v1066_v33 = vpop.permute.xlu0 %1065  ;;  %v5703_v22 = vld [vmem:[#allocation60_spill] sm:$0xff] }
 0x34c   : > { %v1758_v30 = vsel %vm3960_vm0, %v1502_v11, %v1068_v32  ;;  %v1757_v31 = vsel %vm3960_vm0, %v1501_v60, %v1066_v33  ;;  %v1513_v11 = vsub.f32 0.0, %v5691_v49 }
 0x34d   : > { %2014 = vst [vmem:[%s3972_s27 + $0x288] sm:$0xff] %v1758_v30  ;;  %2013 = vst [vmem:[%s3972_s27 + $0x280] sm:$0xff] %v1757_v31  ;;  %1183 = vrot.lane.b32.xlu1 %v2482_v8, %s2698_s17  ;;  %1181 = vrot.lane.b32.xlu0 %v2483_v52, %s2698_s17  ;;  %v5692_v8 = vld [vmem:[#allocation49_spill] sm:$0xff] }
 0x34e   : > { %v2494_v30 = vld [vmem:[%s2814_s30 + $0x4b8] sm:$0xff]  ;;  %v2495_v31 = vld [vmem:[%s2814_s30 + $0x4b0] sm:$0xff]  ;;  %v1516_v52 = vsub.f32 0.0, %v5692_v8 }
 0x34f   : > { %v1072_v38 = vpop.permute.xlu1 %1071  ;;  %v1070_v39 = vpop.permute.xlu0 %1069  ;;  %v5705_v8 = vld [vmem:[#allocation62_spill] sm:$0xff] }
 0x350   : > { %v1760_v21 = vsel %vm3960_vm0, %v1504_v9, %v1072_v38  ;;  %v1759_v50 = vsel %vm3960_vm0, %v1503_v20, %v1070_v39  ;;  %v1515_v9 = vsub.f32 0.0, %v5693_v53 }
 0x351   : > { %2016 = vst [vmem:[%s3972_s27 + $0x298] sm:$0xff] %v1760_v21  ;;  %2015 = vst [vmem:[%s3972_s27 + $0x290] sm:$0xff] %v1759_v50  ;;  %1187 = vrot.lane.b32.xlu1 %v2484_v36, %s2698_s17  ;;  %1185 = vrot.lane.b32.xlu0 %v2485_v56, %s2698_s17  ;;  %v5694_v36 = vld [vmem:[#allocation51_spill] sm:$0xff] }
 0x352   : > { %v2496_v21 = vld [vmem:[%s2814_s30 + $0x4c8] sm:$0xff]  ;;  %v2497_v50 = vld [vmem:[%s2814_s30 + $0x4c0] sm:$0xff]  ;;  %v1518_v56 = vsub.f32 0.0, %v5694_v36 }
 0x353   : > { %v1076_v42 = vpop.permute.xlu1 %1075  ;;  %v1074_v61 = vpop.permute.xlu0 %1073  ;;  %v5707_v36 = vld [vmem:[#allocation64_spill] sm:$0xff] }
 0x354   : > { %v1762_v1 = vsel %vm3960_vm0, %v1506_v37, %v1076_v42  ;;  %v1761_v35 = vsel %vm3960_vm0, %v1505_v47, %v1074_v61  ;;  %v1517_v37 = vsub.f32 0.0, %v5695_v57 }
 0x355   : > { %2018 = vst [vmem:[%s3972_s27 + $0x2a8] sm:$0xff] %v1762_v1  ;;  %2017 = vst [vmem:[%s3972_s27 + $0x2a0] sm:$0xff] %v1761_v35  ;;  %1191 = vrot.lane.b32.xlu1 %v2486_v12, %s2698_s17  ;;  %1189 = vrot.lane.b32.xlu0 %v2487_v62, %s2698_s17  ;;  %v5696_v12 = vld [vmem:[#allocation53_spill] sm:$0xff] }
 0x356   : > { %v2498_v1 = vld [vmem:[%s2814_s30 + $0x4d8] sm:$0xff]  ;;  %v2499_v35 = vld [vmem:[%s2814_s30 + $0x4d0] sm:$0xff]  ;;  %v1520_v62 = vsub.f32 0.0, %v5696_v12 }
 0x357   : > { %v1080_v40 = vpop.permute.xlu1 %1079  ;;  %v1078_v41 = vpop.permute.xlu0 %1077  ;;  %v5709_v12 = vld [vmem:[#allocation66_spill] sm:$0xff] }
 0x358   : > { %v1764_v25 = vsel %vm3960_vm0, %v1508_v55, %v1080_v40  ;;  %v1763_v13 = vsel %vm3960_vm0, %v1507_v24, %v1078_v41  ;;  %v1519_v55 = vsub.f32 0.0, %v5697_v54 }
 0x359   : > { %2020 = vst [vmem:[%s3972_s27 + $0x2b8] sm:$0xff] %v1764_v25  ;;  %2019 = vst [vmem:[%s3972_s27 + $0x2b0] sm:$0xff] %v1763_v13  ;;  %1195 = vrot.lane.b32.xlu1 %v2488_v2, %s2698_s17  ;;  %1193 = vrot.lane.b32.xlu0 %v2489_v3, %s2698_s17  ;;  %v5698_v2 = vld [vmem:[#allocation55_spill] sm:$0xff] }
 0x35a   : > { %v2500_v25 = vld [vmem:[%s2814_s30 + $0x4e8] sm:$0xff]  ;;  %v2501_v13 = vld [vmem:[%s2814_s30 + $0x4e0] sm:$0xff]  ;;  %v1522_v3 = vsub.f32 0.0, %v5698_v2 }
 0x35b   : > { %v1084_v5 = vpop.permute.xlu1 %1083  ;;  %v1082_v58 = vpop.permute.xlu0 %1081  ;;  %v5711_v2 = vld [vmem:[#allocation68_spill] sm:$0xff] }
 0x35c   : > { %v1766_v18 = vsel %vm3960_vm0, %v1510_v6, %v1084_v5  ;;  %v1765_v19 = vsel %vm3960_vm0, %v1509_v4, %v1082_v58  ;;  %v1521_v6 = vsub.f32 0.0, %v5699_v10 }
 0x35d   : > { %2022 = vst [vmem:[%s3972_s27 + $0x2c8] sm:$0xff] %v1766_v18  ;;  %2021 = vst [vmem:[%s3972_s27 + $0x2c0] sm:$0xff] %v1765_v19  ;;  %1199 = vrot.lane.b32.xlu1 %v2490_v44, %s2698_s17  ;;  %1197 = vrot.lane.b32.xlu0 %v2491_v45, %s2698_s17  ;;  %v5700_v44 = vld [vmem:[#allocation57_spill] sm:$0xff] }
 0x35e   : > { %v2502_v18 = vld [vmem:[%s2814_s30 + $0x4f8] sm:$0xff]  ;;  %v2503_v19 = vld [vmem:[%s2814_s30 + $0x4f0] sm:$0xff]  ;;  %v1524_v45 = vsub.f32 0.0, %v5700_v44 }
 0x35f   : > { %v1088_v29 = vpop.permute.xlu1 %1087  ;;  %v1086_v34 = vpop.permute.xlu0 %1085  ;;  %v5713_v44 = vld [vmem:[#allocation70_spill] sm:$0xff] }
 0x360   : > { %v1768_v26 = vsel %vm3960_vm0, %v1512_v14, %v1088_v29  ;;  %v1767_v16 = vsel %vm3960_vm0, %v1511_v28, %v1086_v34  ;;  %v1523_v14 = vsub.f32 0.0, %v5701_v51 }
 0x361   : > { %2024 = vst [vmem:[%s3972_s27 + $0x2d8] sm:$0xff] %v1768_v26  ;;  %2023 = vst [vmem:[%s3972_s27 + $0x2d0] sm:$0xff] %v1767_v16  ;;  %1203 = vrot.lane.b32.xlu1 %v2492_v17, %s2698_s17  ;;  %1201 = vrot.lane.b32.xlu0 %v2493_v48, %s2698_s17  ;;  %v5702_v17 = vld [vmem:[#allocation59_spill] sm:$0xff] }
 0x362   : > { %v2504_v26 = vld [vmem:[%s2814_s30 + $0x508] sm:$0xff]  ;;  %v2505_v16 = vld [vmem:[%s2814_s30 + $0x500] sm:$0xff]  ;;  %v1526_v48 = vsub.f32 0.0, %v5702_v17 }
 0x363   : > { %v1092_v43 = vpop.permute.xlu1 %1091  ;;  %v1090_v60 = vpop.permute.xlu0 %1089  ;;  %v5715_v17 = vld [vmem:[#allocation72_spill] sm:$0xff] }
 0x364   : > { %v1770_v32 = vsel %vm3960_vm0, %v1514_v23, %v1092_v43  ;;  %v1769_v33 = vsel %vm3960_vm0, %v1513_v11, %v1090_v60  ;;  %v1525_v23 = vsub.f32 0.0, %v5703_v22 }
 0x365   : > { %2026 = vst [vmem:[%s3972_s27 + $0x2e8] sm:$0xff] %v1770_v32  ;;  %2025 = vst [vmem:[%s3972_s27 + $0x2e0] sm:$0xff] %v1769_v33  ;;  %1207 = vrot.lane.b32.xlu1 %v2494_v30, %s2698_s17  ;;  %1205 = vrot.lane.b32.xlu0 %v2495_v31, %s2698_s17  ;;  %v5704_v30 = vld [vmem:[#allocation61_spill] sm:$0xff] }
 0x366   : > { %v2506_v32 = vld [vmem:[%s2814_s30 + $0x518] sm:$0xff]  ;;  %v2507_v33 = vld [vmem:[%s2814_s30 + $0x510] sm:$0xff]  ;;  %v1528_v31 = vsub.f32 0.0, %v5704_v30 }
 0x367   : > { %v1096_v0 = vpop.permute.xlu1 %1095  ;;  %v1094_v20 = vpop.permute.xlu0 %1093  ;;  %v5717_v30 = vld [vmem:[#allocation74_spill] sm:$0xff] }
 0x368   : > { %v1772_v38 = vsel %vm3960_vm0, %v1516_v52, %v1096_v0  ;;  %v1771_v39 = vsel %vm3960_vm0, %v1515_v9, %v1094_v20  ;;  %v1527_v52 = vsub.f32 0.0, %v5705_v8 }
 0x369   : > { %2028 = vst [vmem:[%s3972_s27 + $0x2f8] sm:$0xff] %v1772_v38  ;;  %2027 = vst [vmem:[%s3972_s27 + $0x2f0] sm:$0xff] %v1771_v39  ;;  %1211 = vrot.lane.b32.xlu1 %v2496_v21, %s2698_s17  ;;  %1209 = vrot.lane.b32.xlu0 %v2497_v50, %s2698_s17  ;;  %v5706_v21 = vld [vmem:[#allocation63_spill] sm:$0xff] }
 0x36a   : > { %v2508_v38 = vld [vmem:[%s2814_s30 + $0x528] sm:$0xff]  ;;  %v2509_v39 = vld [vmem:[%s2814_s30 + $0x520] sm:$0xff]  ;;  %v1530_v50 = vsub.f32 0.0, %v5706_v21 }
 0x36b   : > { %v1100_v46 = vpop.permute.xlu1 %1099  ;;  %v1098_v47 = vpop.permute.xlu0 %1097  ;;  %v5719_v21 = vld [vmem:[#allocation76_spill] sm:$0xff] }
 0x36c   : > { %v1774_v42 = vsel %vm3960_vm0, %v1518_v56, %v1100_v46  ;;  %v1773_v61 = vsel %vm3960_vm0, %v1517_v37, %v1098_v47  ;;  %v1529_v56 = vsub.f32 0.0, %v5707_v36 }
 0x36d   : > { %2030 = vst [vmem:[%s3972_s27 + $0x308] sm:$0xff] %v1774_v42  ;;  %2029 = vst [vmem:[%s3972_s27 + $0x300] sm:$0xff] %v1773_v61  ;;  %1215 = vrot.lane.b32.xlu1 %v2498_v1, %s2698_s17  ;;  %1213 = vrot.lane.b32.xlu0 %v2499_v35, %s2698_s17  ;;  %v5708_v1 = vld [vmem:[#allocation65_spill] sm:$0xff] }
 0x36e   : > { %v2510_v42 = vld [vmem:[%s2814_s30 + $0x538] sm:$0xff]  ;;  %v2511_v61 = vld [vmem:[%s2814_s30 + $0x530] sm:$0xff]  ;;  %v1532_v35 = vsub.f32 0.0, %v5708_v1 }
 0x36f   : > { %v1104_v63 = vpop.permute.xlu1 %1103  ;;  %v1102_v24 = vpop.permute.xlu0 %1101  ;;  %v5721_v1 = vld [vmem:[#allocation78_spill] sm:$0xff] }
 0x370   : > { %v1776_v40 = vsel %vm3960_vm0, %v1520_v62, %v1104_v63  ;;  %v1775_v41 = vsel %vm3960_vm0, %v1519_v55, %v1102_v24  ;;  %v1531_v62 = vsub.f32 0.0, %v5709_v12 }
 0x371   : > { %2032 = vst [vmem:[%s3972_s27 + $0x318] sm:$0xff] %v1776_v40  ;;  %2031 = vst [vmem:[%s3972_s27 + $0x310] sm:$0xff] %v1775_v41  ;;  %1219 = vrot.lane.b32.xlu1 %v2500_v25, %s2698_s17  ;;  %1217 = vrot.lane.b32.xlu0 %v2501_v13, %s2698_s17  ;;  %v5710_v25 = vld [vmem:[#allocation67_spill] sm:$0xff] }
 0x372   : > { %v2512_v40 = vld [vmem:[%s2814_s30 + $0x548] sm:$0xff]  ;;  %v2513_v41 = vld [vmem:[%s2814_s30 + $0x540] sm:$0xff]  ;;  %v1534_v13 = vsub.f32 0.0, %v5710_v25 }
 0x373   : > { %v1108_v7 = vpop.permute.xlu1 %1107  ;;  %v1106_v4 = vpop.permute.xlu0 %1105  ;;  %v5723_v25 = vld [vmem:[#allocation80_spill] sm:$0xff] }
 0x374   : > { %v1778_v5 = vsel %vm3960_vm0, %v1522_v3, %v1108_v7  ;;  %v1777_v58 = vsel %vm3960_vm0, %v1521_v6, %v1106_v4  ;;  %v1533_v3 = vsub.f32 0.0, %v5711_v2 }
 0x375   : > { %2034 = vst [vmem:[%s3972_s27 + $0x328] sm:$0xff] %v1778_v5  ;;  %2033 = vst [vmem:[%s3972_s27 + $0x320] sm:$0xff] %v1777_v58  ;;  %1223 = vrot.lane.b32.xlu1 %v2502_v18, %s2698_s17  ;;  %1221 = vrot.lane.b32.xlu0 %v2503_v19, %s2698_s17  ;;  %v5712_v18 = vld [vmem:[#allocation69_spill] sm:$0xff] }
 0x376   : > { %v2514_v5 = vld [vmem:[%s2814_s30 + $0x558] sm:$0xff]  ;;  %v2515_v58 = vld [vmem:[%s2814_s30 + $0x550] sm:$0xff]  ;;  %v1536_v19 = vsub.f32 0.0, %v5712_v18 }
 0x377   : > { %v1112_v15 = vpop.permute.xlu1 %1111  ;;  %v1110_v28 = vpop.permute.xlu0 %1109  ;;  %v5725_v18 = vld [vmem:[#allocation82_spill] sm:$0xff] }
 0x378   : > { %v1780_v29 = vsel %vm3960_vm0, %v1524_v45, %v1112_v15  ;;  %v1779_v34 = vsel %vm3960_vm0, %v1523_v14, %v1110_v28  ;;  %v1535_v45 = vsub.f32 0.0, %v5713_v44 }
 0x379   : > { %2036 = vst [vmem:[%s3972_s27 + $0x338] sm:$0xff] %v1780_v29  ;;  %2035 = vst [vmem:[%s3972_s27 + $0x330] sm:$0xff] %v1779_v34  ;;  %1227 = vrot.lane.b32.xlu1 %v2504_v26, %s2698_s17  ;;  %1225 = vrot.lane.b32.xlu0 %v2505_v16, %s2698_s17  ;;  %v5714_v26 = vld [vmem:[#allocation71_spill] sm:$0xff] }
 0x37a   : > { %v2516_v29 = vld [vmem:[%s2814_s30 + $0x568] sm:$0xff]  ;;  %v2517_v34 = vld [vmem:[%s2814_s30 + $0x560] sm:$0xff]  ;;  %v1538_v16 = vsub.f32 0.0, %v5714_v26 }
 0x37b   : > { %v1116_v49 = vpop.permute.xlu1 %1115  ;;  %v1114_v11 = vpop.permute.xlu0 %1113  ;;  %v5727_v26 = vld [vmem:[#allocation84_spill] sm:$0xff] }
 0x37c   : > { %v1782_v43 = vsel %vm3960_vm0, %v1526_v48, %v1116_v49  ;;  %v1781_v60 = vsel %vm3960_vm0, %v1525_v23, %v1114_v11  ;;  %v1537_v48 = vsub.f32 0.0, %v5715_v17 }
 0x37d   : > { %2038 = vst [vmem:[%s3972_s27 + $0x348] sm:$0xff] %v1782_v43  ;;  %2037 = vst [vmem:[%s3972_s27 + $0x340] sm:$0xff] %v1781_v60  ;;  %1231 = vrot.lane.b32.xlu1 %v2506_v32, %s2698_s17  ;;  %1229 = vrot.lane.b32.xlu0 %v2507_v33, %s2698_s17  ;;  %v5716_v32 = vld [vmem:[#allocation73_spill] sm:$0xff] }
 0x37e   : > { %v2518_v43 = vld [vmem:[%s2814_s30 + $0x578] sm:$0xff]  ;;  %v2519_v60 = vld [vmem:[%s2814_s30 + $0x570] sm:$0xff]  ;;  %v1540_v33 = vsub.f32 0.0, %v5716_v32 }
 0x37f   : > { %v1120_v53 = vpop.permute.xlu1 %1119  ;;  %v1118_v9 = vpop.permute.xlu0 %1117  ;;  %v5729_v32 = vld [vmem:[#allocation86_spill] sm:$0xff] }
 0x380   : > { %v1784_v0 = vsel %vm3960_vm0, %v1528_v31, %v1120_v53  ;;  %v1783_v20 = vsel %vm3960_vm0, %v1527_v52, %v1118_v9  ;;  %v1539_v31 = vsub.f32 0.0, %v5717_v30 }
 0x381   : > { %2040 = vst [vmem:[%s3972_s27 + $0x358] sm:$0xff] %v1784_v0  ;;  %2039 = vst [vmem:[%s3972_s27 + $0x350] sm:$0xff] %v1783_v20  ;;  %1235 = vrot.lane.b32.xlu1 %v2508_v38, %s2698_s17  ;;  %1233 = vrot.lane.b32.xlu0 %v2509_v39, %s2698_s17  ;;  %v5718_v38 = vld [vmem:[#allocation75_spill] sm:$0xff] }
 0x382   : > { %v2520_v0 = vld [vmem:[%s2814_s30 + $0x588] sm:$0xff]  ;;  %v2521_v20 = vld [vmem:[%s2814_s30 + $0x580] sm:$0xff]  ;;  %v1542_v39 = vsub.f32 0.0, %v5718_v38 }
 0x383   : > { %v1124_v57 = vpop.permute.xlu1 %1123  ;;  %v1122_v37 = vpop.permute.xlu0 %1121  ;;  %v5731_v38 = vld [vmem:[#allocation88_spill] sm:$0xff] }
 0x384   : > { %v1786_v46 = vsel %vm3960_vm0, %v1530_v50, %v1124_v57  ;;  %v1785_v47 = vsel %vm3960_vm0, %v1529_v56, %v1122_v37  ;;  %v1541_v50 = vsub.f32 0.0, %v5719_v21 }
 0x385   : > { %2042 = vst [vmem:[%s3972_s27 + $0x368] sm:$0xff] %v1786_v46  ;;  %2041 = vst [vmem:[%s3972_s27 + $0x360] sm:$0xff] %v1785_v47  ;;  %1239 = vrot.lane.b32.xlu1 %v2510_v42, %s2698_s17  ;;  %1237 = vrot.lane.b32.xlu0 %v2511_v61, %s2698_s17  ;;  %v5720_v42 = vld [vmem:[#allocation77_spill] sm:$0xff] }
 0x386   : > { %v2522_v46 = vld [vmem:[%s2814_s30 + $0x598] sm:$0xff]  ;;  %v2523_v47 = vld [vmem:[%s2814_s30 + $0x590] sm:$0xff]  ;;  %v1544_v61 = vsub.f32 0.0, %v5720_v42 }
 0x387   : > { %v1128_v54 = vpop.permute.xlu1 %1127  ;;  %v1126_v55 = vpop.permute.xlu0 %1125  ;;  %v5733_v42 = vld [vmem:[#allocation90_spill] sm:$0xff] }
 0x388   : > { %v1788_v63 = vsel %vm3960_vm0, %v1532_v35, %v1128_v54  ;;  %v1787_v24 = vsel %vm3960_vm0, %v1531_v62, %v1126_v55  ;;  %v1543_v35 = vsub.f32 0.0, %v5721_v1 }
 0x389   : > { %2044 = vst [vmem:[%s3972_s27 + $0x378] sm:$0xff] %v1788_v63  ;;  %2043 = vst [vmem:[%s3972_s27 + $0x370] sm:$0xff] %v1787_v24  ;;  %1243 = vrot.lane.b32.xlu1 %v2512_v40, %s2698_s17  ;;  %1241 = vrot.lane.b32.xlu0 %v2513_v41, %s2698_s17  ;;  %v5722_v40 = vld [vmem:[#allocation79_spill] sm:$0xff] }
 0x38a   : > { %v2524_v63 = vld [vmem:[%s2814_s30 + $0x5a8] sm:$0xff]  ;;  %v2525_v24 = vld [vmem:[%s2814_s30 + $0x5a0] sm:$0xff]  ;;  %v1546_v41 = vsub.f32 0.0, %v5722_v40 }
 0x38b   : > { %v1132_v10 = vpop.permute.xlu1 %1131  ;;  %v1130_v6 = vpop.permute.xlu0 %1129  ;;  %v5735_v40 = vld [vmem:[#allocation92_spill] sm:$0xff] }
 0x38c   : > { %v1790_v7 = vsel %vm3960_vm0, %v1534_v13, %v1132_v10  ;;  %v1789_v4 = vsel %vm3960_vm0, %v1533_v3, %v1130_v6  ;;  %v1545_v13 = vsub.f32 0.0, %v5723_v25 }
 0x38d   : > { %2046 = vst [vmem:[%s3972_s27 + $0x388] sm:$0xff] %v1790_v7  ;;  %2045 = vst [vmem:[%s3972_s27 + $0x380] sm:$0xff] %v1789_v4  ;;  %1247 = vrot.lane.b32.xlu1 %v2514_v5, %s2698_s17  ;;  %1245 = vrot.lane.b32.xlu0 %v2515_v58, %s2698_s17  ;;  %v5724_v5 = vld [vmem:[#allocation81_spill] sm:$0xff] }
 0x38e   : > { %v2526_v7 = vld [vmem:[%s2814_s30 + $0x5b8] sm:$0xff]  ;;  %v2527_v4 = vld [vmem:[%s2814_s30 + $0x5b0] sm:$0xff]  ;;  %v1548_v58 = vsub.f32 0.0, %v5724_v5 }
 0x38f   : > { %v1136_v51 = vpop.permute.xlu1 %1135  ;;  %v1134_v14 = vpop.permute.xlu0 %1133  ;;  %v5737_v5 = vld [vmem:[#allocation94_spill] sm:$0xff] }
 0x390   : > { %v1792_v15 = vsel %vm3960_vm0, %v1536_v19, %v1136_v51  ;;  %v1791_v28 = vsel %vm3960_vm0, %v1535_v45, %v1134_v14  ;;  %v1547_v19 = vsub.f32 0.0, %v5725_v18 }
 0x391   : > { %2048 = vst [vmem:[%s3972_s27 + $0x398] sm:$0xff] %v1792_v15  ;;  %2047 = vst [vmem:[%s3972_s27 + $0x390] sm:$0xff] %v1791_v28  ;;  %1251 = vrot.lane.b32.xlu1 %v2516_v29, %s2698_s17  ;;  %1249 = vrot.lane.b32.xlu0 %v2517_v34, %s2698_s17  ;;  %v5726_v29 = vld [vmem:[#allocation83_spill] sm:$0xff] }
 0x392   : > { %v2528_v15 = vld [vmem:[%s2814_s30 + $0x5c8] sm:$0xff]  ;;  %v2529_v28 = vld [vmem:[%s2814_s30 + $0x5c0] sm:$0xff]  ;;  %v1550_v34 = vsub.f32 0.0, %v5726_v29 }
 0x393   : > { %v1140_v22 = vpop.permute.xlu1 %1139  ;;  %v1138_v23 = vpop.permute.xlu0 %1137  ;;  %v5739_v29 = vld [vmem:[#allocation96_spill] sm:$0xff] }
 0x394   : > { %v1794_v49 = vsel %vm3960_vm0, %v1538_v16, %v1140_v22  ;;  %v1793_v11 = vsel %vm3960_vm0, %v1537_v48, %v1138_v23  ;;  %v1549_v16 = vsub.f32 0.0, %v5727_v26 }
 0x395   : > { %2050 = vst [vmem:[%s3972_s27 + $0x3a8] sm:$0xff] %v1794_v49  ;;  %2049 = vst [vmem:[%s3972_s27 + $0x3a0] sm:$0xff] %v1793_v11  ;;  %1255 = vrot.lane.b32.xlu1 %v2518_v43, %s2698_s17  ;;  %1253 = vrot.lane.b32.xlu0 %v2519_v60, %s2698_s17  ;;  %v5728_v43 = vld [vmem:[#allocation85_spill] sm:$0xff] }
 0x396   : > { %v2530_v49 = vld [vmem:[%s2814_s30 + $0x5d8] sm:$0xff]  ;;  %v2531_v11 = vld [vmem:[%s2814_s30 + $0x5d0] sm:$0xff]  ;;  %v1552_v60 = vsub.f32 0.0, %v5728_v43 }
 0x397   : > { %v1144_v8 = vpop.permute.xlu1 %1143  ;;  %v1142_v52 = vpop.permute.xlu0 %1141  ;;  %v5741_v43 = vld [vmem:[#allocation98_spill] sm:$0xff] }
 0x398   : > { %v1796_v53 = vsel %vm3960_vm0, %v1540_v33, %v1144_v8  ;;  %v1795_v9 = vsel %vm3960_vm0, %v1539_v31, %v1142_v52  ;;  %v1551_v33 = vsub.f32 0.0, %v5729_v32 }
 0x399   : > { %2052 = vst [vmem:[%s3972_s27 + $0x3b8] sm:$0xff] %v1796_v53  ;;  %2051 = vst [vmem:[%s3972_s27 + $0x3b0] sm:$0xff] %v1795_v9  ;;  %1259 = vrot.lane.b32.xlu1 %v2520_v0, %s2698_s17  ;;  %1257 = vrot.lane.b32.xlu0 %v2521_v20, %s2698_s17  ;;  %v5730_v0 = vld [vmem:[#allocation87_spill] sm:$0xff] }
 0x39a   : > { %v2532_v53 = vld [vmem:[%s2814_s30 + $0x5e8] sm:$0xff]  ;;  %v2533_v9 = vld [vmem:[%s2814_s30 + $0x5e0] sm:$0xff]  ;;  %v1554_v20 = vsub.f32 0.0, %v5730_v0 }
 0x39b   : > { %v1148_v36 = vpop.permute.xlu1 %1147  ;;  %v1146_v56 = vpop.permute.xlu0 %1145  ;;  %v5743_v0 = vld [vmem:[#allocation100_spill] sm:$0xff] }
 0x39c   : > { %v1798_v57 = vsel %vm3960_vm0, %v1542_v39, %v1148_v36  ;;  %v1797_v37 = vsel %vm3960_vm0, %v1541_v50, %v1146_v56  ;;  %v1553_v39 = vsub.f32 0.0, %v5731_v38 }
 0x39d   : > { %2054 = vst [vmem:[%s3972_s27 + $0x3c8] sm:$0xff] %v1798_v57  ;;  %2053 = vst [vmem:[%s3972_s27 + $0x3c0] sm:$0xff] %v1797_v37  ;;  %1263 = vrot.lane.b32.xlu1 %v2522_v46, %s2698_s17  ;;  %1261 = vrot.lane.b32.xlu0 %v2523_v47, %s2698_s17  ;;  %v5732_v46 = vld [vmem:[#allocation89_spill] sm:$0xff] }
 0x39e   : > { %v2534_v57 = vld [vmem:[%s2814_s30 + $0x5f8] sm:$0xff]  ;;  %v2535_v37 = vld [vmem:[%s2814_s30 + $0x5f0] sm:$0xff]  ;;  %v1556_v47 = vsub.f32 0.0, %v5732_v46 }
 0x39f   : > { %v1152_v12 = vpop.permute.xlu1 %1151  ;;  %v1150_v62 = vpop.permute.xlu0 %1149  ;;  %v5745_v46 = vld [vmem:[#allocation102_spill] sm:$0xff] }
 0x3a0   : > { %v1800_v54 = vsel %vm3960_vm0, %v1544_v61, %v1152_v12  ;;  %v1799_v55 = vsel %vm3960_vm0, %v1543_v35, %v1150_v62  ;;  %v1555_v61 = vsub.f32 0.0, %v5733_v42 }
 0x3a1   : > { %2056 = vst [vmem:[%s3972_s27 + $0x3d8] sm:$0xff] %v1800_v54  ;;  %2055 = vst [vmem:[%s3972_s27 + $0x3d0] sm:$0xff] %v1799_v55  ;;  %1267 = vrot.lane.b32.xlu1 %v2524_v63, %s2698_s17  ;;  %1265 = vrot.lane.b32.xlu0 %v2525_v24, %s2698_s17  ;;  %v5734_v63 = vld [vmem:[#allocation91_spill] sm:$0xff] }
 0x3a2   : > { %v2536_v54 = vld [vmem:[%s2814_s30 + $0x608] sm:$0xff]  ;;  %v2537_v55 = vld [vmem:[%s2814_s30 + $0x600] sm:$0xff]  ;;  %v1558_v24 = vsub.f32 0.0, %v5734_v63 }
 0x3a3   : > { %v1156_v2 = vpop.permute.xlu1 %1155  ;;  %v1154_v3 = vpop.permute.xlu0 %1153  ;;  %v5747_v63 = vld [vmem:[#allocation104_spill] sm:$0xff] }
 0x3a4   : > { %v1802_v10 = vsel %vm3960_vm0, %v1546_v41, %v1156_v2  ;;  %v1801_v6 = vsel %vm3960_vm0, %v1545_v13, %v1154_v3  ;;  %v1557_v41 = vsub.f32 0.0, %v5735_v40 }
 0x3a5   : > { %2058 = vst [vmem:[%s3972_s27 + $0x3e8] sm:$0xff] %v1802_v10  ;;  %2057 = vst [vmem:[%s3972_s27 + $0x3e0] sm:$0xff] %v1801_v6  ;;  %1271 = vrot.lane.b32.xlu1 %v2526_v7, %s2698_s17  ;;  %1269 = vrot.lane.b32.xlu0 %v2527_v4, %s2698_s17  ;;  %v5736_v7 = vld [vmem:[#allocation93_spill] sm:$0xff] }
 0x3a6   : > { %v2538_v10 = vld [vmem:[%s2814_s30 + $0x618] sm:$0xff]  ;;  %v2539_v6 = vld [vmem:[%s2814_s30 + $0x610] sm:$0xff]  ;;  %v1560_v4 = vsub.f32 0.0, %v5736_v7 }
 0x3a7   : > { %v1160_v44 = vpop.permute.xlu1 %1159  ;;  %v1158_v45 = vpop.permute.xlu0 %1157  ;;  %v5749_v7 = vld [vmem:[#allocation106_spill] sm:$0xff] }
 0x3a8   : > { %v1804_v51 = vsel %vm3960_vm0, %v1548_v58, %v1160_v44  ;;  %v1803_v14 = vsel %vm3960_vm0, %v1547_v19, %v1158_v45  ;;  %v1559_v58 = vsub.f32 0.0, %v5737_v5 }
 0x3a9   : > { %2060 = vst [vmem:[%s3972_s27 + $0x3f8] sm:$0xff] %v1804_v51  ;;  %2059 = vst [vmem:[%s3972_s27 + $0x3f0] sm:$0xff] %v1803_v14  ;;  %1275 = vrot.lane.b32.xlu1 %v2528_v15, %s2698_s17  ;;  %1273 = vrot.lane.b32.xlu0 %v2529_v28, %s2698_s17  ;;  %v5738_v15 = vld [vmem:[#allocation95_spill] sm:$0xff] }
 0x3aa   : > { %v2540_v51 = vld [vmem:[%s2814_s30 + $0x628] sm:$0xff]  ;;  %v2541_v14 = vld [vmem:[%s2814_s30 + $0x620] sm:$0xff]  ;;  %v1562_v28 = vsub.f32 0.0, %v5738_v15 }
 0x3ab   : > { %v1164_v17 = vpop.permute.xlu1 %1163  ;;  %v1162_v48 = vpop.permute.xlu0 %1161  ;;  %v5751_v15 = vld [vmem:[#allocation108_spill] sm:$0xff] }
 0x3ac   : > { %v1806_v22 = vsel %vm3960_vm0, %v1550_v34, %v1164_v17  ;;  %v1805_v23 = vsel %vm3960_vm0, %v1549_v16, %v1162_v48  ;;  %v1561_v34 = vsub.f32 0.0, %v5739_v29 }
 0x3ad   : > { %2062 = vst [vmem:[%s3972_s27 + $0x408] sm:$0xff] %v1806_v22  ;;  %2061 = vst [vmem:[%s3972_s27 + $0x400] sm:$0xff] %v1805_v23  ;;  %1279 = vrot.lane.b32.xlu1 %v2530_v49, %s2698_s17  ;;  %1277 = vrot.lane.b32.xlu0 %v2531_v11, %s2698_s17  ;;  %v5740_v49 = vld [vmem:[#allocation97_spill] sm:$0xff] }
 0x3ae   : > { %v2542_v22 = vld [vmem:[%s2814_s30 + $0x638] sm:$0xff]  ;;  %v2543_v23 = vld [vmem:[%s2814_s30 + $0x630] sm:$0xff]  ;;  %v1564_v11 = vsub.f32 0.0, %v5740_v49 }
 0x3af   : > { %v1168_v30 = vpop.permute.xlu1 %1167  ;;  %v1166_v31 = vpop.permute.xlu0 %1165  ;;  %v5753_v49 = vld [vmem:[#allocation110_spill] sm:$0xff] }
 0x3b0   : > { %v1808_v8 = vsel %vm3960_vm0, %v1552_v60, %v1168_v30  ;;  %v1807_v52 = vsel %vm3960_vm0, %v1551_v33, %v1166_v31  ;;  %v1563_v60 = vsub.f32 0.0, %v5741_v43 }
 0x3b1   : > { %2064 = vst [vmem:[%s3972_s27 + $0x418] sm:$0xff] %v1808_v8  ;;  %2063 = vst [vmem:[%s3972_s27 + $0x410] sm:$0xff] %v1807_v52  ;;  %1283 = vrot.lane.b32.xlu1 %v2532_v53, %s2698_s17  ;;  %1281 = vrot.lane.b32.xlu0 %v2533_v9, %s2698_s17  ;;  %v5742_v53 = vld [vmem:[#allocation99_spill] sm:$0xff] }
 0x3b2   : > { %v2544_v8 = vld [vmem:[%s2814_s30 + $0x648] sm:$0xff]  ;;  %v2545_v52 = vld [vmem:[%s2814_s30 + $0x640] sm:$0xff]  ;;  %v1566_v9 = vsub.f32 0.0, %v5742_v53 }
 0x3b3   : > { %v1172_v21 = vpop.permute.xlu1 %1171  ;;  %v1170_v50 = vpop.permute.xlu0 %1169  ;;  %v5755_v53 = vld [vmem:[#allocation112_spill] sm:$0xff] }
 0x3b4   : > { %v1810_v36 = vsel %vm3960_vm0, %v1554_v20, %v1172_v21  ;;  %v1809_v56 = vsel %vm3960_vm0, %v1553_v39, %v1170_v50  ;;  %v1565_v20 = vsub.f32 0.0, %v5743_v0 }
 0x3b5   : > { %2066 = vst [vmem:[%s3972_s27 + $0x428] sm:$0xff] %v1810_v36  ;;  %2065 = vst [vmem:[%s3972_s27 + $0x420] sm:$0xff] %v1809_v56  ;;  %1287 = vrot.lane.b32.xlu1 %v2534_v57, %s2698_s17  ;;  %1285 = vrot.lane.b32.xlu0 %v2535_v37, %s2698_s17  ;;  %v5744_v57 = vld [vmem:[#allocation101_spill] sm:$0xff] }
 0x3b6   : > { %v2546_v36 = vld [vmem:[%s2814_s30 + $0x658] sm:$0xff]  ;;  %v2547_v56 = vld [vmem:[%s2814_s30 + $0x650] sm:$0xff]  ;;  %v1568_v37 = vsub.f32 0.0, %v5744_v57 }
 0x3b7   : > { %v1176_v1 = vpop.permute.xlu1 %1175  ;;  %v1174_v35 = vpop.permute.xlu0 %1173  ;;  %v5757_v57 = vld [vmem:[#allocation114_spill] sm:$0xff] }
 0x3b8   : > { %v1812_v12 = vsel %vm3960_vm0, %v1556_v47, %v1176_v1  ;;  %v1811_v62 = vsel %vm3960_vm0, %v1555_v61, %v1174_v35  ;;  %v1567_v47 = vsub.f32 0.0, %v5745_v46 }
 0x3b9   : > { %2068 = vst [vmem:[%s3972_s27 + $0x438] sm:$0xff] %v1812_v12  ;;  %2067 = vst [vmem:[%s3972_s27 + $0x430] sm:$0xff] %v1811_v62  ;;  %1291 = vrot.lane.b32.xlu1 %v2536_v54, %s2698_s17  ;;  %1289 = vrot.lane.b32.xlu0 %v2537_v55, %s2698_s17  ;;  %v5746_v54 = vld [vmem:[#allocation103_spill] sm:$0xff] }
 0x3ba   : > { %v2548_v12 = vld [vmem:[%s2814_s30 + $0x668] sm:$0xff]  ;;  %v2549_v62 = vld [vmem:[%s2814_s30 + $0x660] sm:$0xff]  ;;  %v1570_v55 = vsub.f32 0.0, %v5746_v54 }
 0x3bb   : > { %v1180_v25 = vpop.permute.xlu1 %1179  ;;  %v1178_v13 = vpop.permute.xlu0 %1177  ;;  %v5759_v54 = vld [vmem:[#allocation116_spill] sm:$0xff] }
 0x3bc   : > { %v1814_v2 = vsel %vm3960_vm0, %v1558_v24, %v1180_v25  ;;  %v1813_v3 = vsel %vm3960_vm0, %v1557_v41, %v1178_v13  ;;  %v1569_v24 = vsub.f32 0.0, %v5747_v63 }
 0x3bd   : > { %2070 = vst [vmem:[%s3972_s27 + $0x448] sm:$0xff] %v1814_v2  ;;  %2069 = vst [vmem:[%s3972_s27 + $0x440] sm:$0xff] %v1813_v3  ;;  %1295 = vrot.lane.b32.xlu1 %v2538_v10, %s2698_s17  ;;  %1293 = vrot.lane.b32.xlu0 %v2539_v6, %s2698_s17  ;;  %v5748_v10 = vld [vmem:[#allocation105_spill] sm:$0xff] }
 0x3be   : > { %v2550_v2 = vld [vmem:[%s2814_s30 + $0x678] sm:$0xff]  ;;  %v2551_v3 = vld [vmem:[%s2814_s30 + $0x670] sm:$0xff]  ;;  %v1572_v6 = vsub.f32 0.0, %v5748_v10 }
 0x3bf   : > { %v1184_v18 = vpop.permute.xlu1 %1183  ;;  %v1182_v19 = vpop.permute.xlu0 %1181  ;;  %v5761_v10 = vld [vmem:[#allocation118_spill] sm:$0xff] }
 0x3c0   : > { %v1816_v44 = vsel %vm3960_vm0, %v1560_v4, %v1184_v18  ;;  %v1815_v45 = vsel %vm3960_vm0, %v1559_v58, %v1182_v19  ;;  %v1571_v4 = vsub.f32 0.0, %v5749_v7 }
 0x3c1   : > { %2072 = vst [vmem:[%s3972_s27 + $0x458] sm:$0xff] %v1816_v44  ;;  %2071 = vst [vmem:[%s3972_s27 + $0x450] sm:$0xff] %v1815_v45  ;;  %1299 = vrot.lane.b32.xlu1 %v2540_v51, %s2698_s17  ;;  %1297 = vrot.lane.b32.xlu0 %v2541_v14, %s2698_s17  ;;  %v5750_v51 = vld [vmem:[#allocation107_spill] sm:$0xff] }
 0x3c2   : > { %v2552_v44 = vld [vmem:[%s2814_s30 + $0x688] sm:$0xff]  ;;  %v2553_v45 = vld [vmem:[%s2814_s30 + $0x680] sm:$0xff]  ;;  %v1574_v14 = vsub.f32 0.0, %v5750_v51 }
 0x3c3   : > { %v1188_v26 = vpop.permute.xlu1 %1187  ;;  %v1186_v16 = vpop.permute.xlu0 %1185  ;;  %v5763_v51 = vld [vmem:[#allocation120_spill] sm:$0xff] }
 0x3c4   : > { %v1818_v17 = vsel %vm3960_vm0, %v1562_v28, %v1188_v26  ;;  %v1817_v48 = vsel %vm3960_vm0, %v1561_v34, %v1186_v16  ;;  %v1573_v28 = vsub.f32 0.0, %v5751_v15 }
 0x3c5   : > { %2074 = vst [vmem:[%s3972_s27 + $0x468] sm:$0xff] %v1818_v17  ;;  %2073 = vst [vmem:[%s3972_s27 + $0x460] sm:$0xff] %v1817_v48  ;;  %1303 = vrot.lane.b32.xlu1 %v2542_v22, %s2698_s17  ;;  %1301 = vrot.lane.b32.xlu0 %v2543_v23, %s2698_s17  ;;  %v5752_v22 = vld [vmem:[#allocation109_spill] sm:$0xff] }
 0x3c6   : > { %v2554_v17 = vld [vmem:[%s2814_s30 + $0x698] sm:$0xff]  ;;  %v2555_v48 = vld [vmem:[%s2814_s30 + $0x690] sm:$0xff]  ;;  %v1576_v23 = vsub.f32 0.0, %v5752_v22 }
 0x3c7   : > { %v1192_v32 = vpop.permute.xlu1 %1191  ;;  %v1190_v33 = vpop.permute.xlu0 %1189  ;;  %v5765_v22 = vld [vmem:[#allocation122_spill] sm:$0xff] }
 0x3c8   : > { %v1820_v30 = vsel %vm3960_vm0, %v1564_v11, %v1192_v32  ;;  %v1819_v31 = vsel %vm3960_vm0, %v1563_v60, %v1190_v33  ;;  %v1575_v11 = vsub.f32 0.0, %v5753_v49 }
 0x3c9   : > { %2076 = vst [vmem:[%s3972_s27 + $0x478] sm:$0xff] %v1820_v30  ;;  %2075 = vst [vmem:[%s3972_s27 + $0x470] sm:$0xff] %v1819_v31  ;;  %1307 = vrot.lane.b32.xlu1 %v2544_v8, %s2698_s17  ;;  %1305 = vrot.lane.b32.xlu0 %v2545_v52, %s2698_s17  ;;  %v5754_v8 = vld [vmem:[#allocation111_spill] sm:$0xff] }
 0x3ca   : > { %v2556_v30 = vld [vmem:[%s2814_s30 + $0x6a8] sm:$0xff]  ;;  %v2557_v31 = vld [vmem:[%s2814_s30 + $0x6a0] sm:$0xff]  ;;  %v1578_v52 = vsub.f32 0.0, %v5754_v8 }
 0x3cb   : > { %v1196_v38 = vpop.permute.xlu1 %1195  ;;  %v1194_v39 = vpop.permute.xlu0 %1193  ;;  %v5767_v8 = vld [vmem:[#allocation124_spill] sm:$0xff] }
 0x3cc   : > { %v1822_v21 = vsel %vm3960_vm0, %v1566_v9, %v1196_v38  ;;  %v1821_v50 = vsel %vm3960_vm0, %v1565_v20, %v1194_v39  ;;  %v1577_v9 = vsub.f32 0.0, %v5755_v53 }
 0x3cd   : > { %2078 = vst [vmem:[%s3972_s27 + $0x488] sm:$0xff] %v1822_v21  ;;  %2077 = vst [vmem:[%s3972_s27 + $0x480] sm:$0xff] %v1821_v50  ;;  %1311 = vrot.lane.b32.xlu1 %v2546_v36, %s2698_s17  ;;  %1309 = vrot.lane.b32.xlu0 %v2547_v56, %s2698_s17  ;;  %v5756_v36 = vld [vmem:[#allocation113_spill] sm:$0xff] }
 0x3ce   : > { %v2558_v21 = vld [vmem:[%s2814_s30 + $0x6b8] sm:$0xff]  ;;  %v2559_v50 = vld [vmem:[%s2814_s30 + $0x6b0] sm:$0xff]  ;;  %v1580_v56 = vsub.f32 0.0, %v5756_v36 }
 0x3cf   : > { %v1200_v42 = vpop.permute.xlu1 %1199  ;;  %v1198_v61 = vpop.permute.xlu0 %1197  ;;  %v5769_v36 = vld [vmem:[#allocation126_spill] sm:$0xff] }
 0x3d0   : > { %v1824_v1 = vsel %vm3960_vm0, %v1568_v37, %v1200_v42  ;;  %v1823_v35 = vsel %vm3960_vm0, %v1567_v47, %v1198_v61  ;;  %v1579_v37 = vsub.f32 0.0, %v5757_v57 }
 0x3d1   : > { %2080 = vst [vmem:[%s3972_s27 + $0x498] sm:$0xff] %v1824_v1  ;;  %2079 = vst [vmem:[%s3972_s27 + $0x490] sm:$0xff] %v1823_v35  ;;  %1315 = vrot.lane.b32.xlu1 %v2548_v12, %s2698_s17  ;;  %1313 = vrot.lane.b32.xlu0 %v2549_v62, %s2698_s17  ;;  %v5758_v12 = vld [vmem:[#allocation115_spill] sm:$0xff] }
 0x3d2   : > { %v2560_v1 = vld [vmem:[%s2814_s30 + $0x6c8] sm:$0xff]  ;;  %v2561_v35 = vld [vmem:[%s2814_s30 + $0x6c0] sm:$0xff]  ;;  %v1582_v62 = vsub.f32 0.0, %v5758_v12 }
 0x3d3   : > { %v1204_v40 = vpop.permute.xlu1 %1203  ;;  %v1202_v41 = vpop.permute.xlu0 %1201  ;;  %v5771_v12 = vld [vmem:[#allocation128_spill] sm:$0xff] }
 0x3d4   : > { %v1826_v25 = vsel %vm3960_vm0, %v1570_v55, %v1204_v40  ;;  %v1825_v13 = vsel %vm3960_vm0, %v1569_v24, %v1202_v41  ;;  %v1581_v55 = vsub.f32 0.0, %v5759_v54 }
 0x3d5   : > { %2082 = vst [vmem:[%s3972_s27 + $0x4a8] sm:$0xff] %v1826_v25  ;;  %2081 = vst [vmem:[%s3972_s27 + $0x4a0] sm:$0xff] %v1825_v13  ;;  %1319 = vrot.lane.b32.xlu1 %v2550_v2, %s2698_s17  ;;  %1317 = vrot.lane.b32.xlu0 %v2551_v3, %s2698_s17  ;;  %v5760_v2 = vld [vmem:[#allocation117_spill] sm:$0xff] }
 0x3d6   : > { %v2562_v25 = vld [vmem:[%s2814_s30 + $0x6d8] sm:$0xff]  ;;  %v2563_v13 = vld [vmem:[%s2814_s30 + $0x6d0] sm:$0xff]  ;;  %v1584_v3 = vsub.f32 0.0, %v5760_v2 }
 0x3d7   : > { %v1208_v5 = vpop.permute.xlu1 %1207  ;;  %v1206_v58 = vpop.permute.xlu0 %1205  ;;  %v5773_v2 = vld [vmem:[#allocation130_spill] sm:$0xff] }
 0x3d8   : > { %v1828_v18 = vsel %vm3960_vm0, %v1572_v6, %v1208_v5  ;;  %v1827_v19 = vsel %vm3960_vm0, %v1571_v4, %v1206_v58  ;;  %v1583_v6 = vsub.f32 0.0, %v5761_v10 }
 0x3d9   : > { %2084 = vst [vmem:[%s3972_s27 + $0x4b8] sm:$0xff] %v1828_v18  ;;  %2083 = vst [vmem:[%s3972_s27 + $0x4b0] sm:$0xff] %v1827_v19  ;;  %1323 = vrot.lane.b32.xlu1 %v2552_v44, %s2698_s17  ;;  %1321 = vrot.lane.b32.xlu0 %v2553_v45, %s2698_s17  ;;  %v5762_v44 = vld [vmem:[#allocation119_spill] sm:$0xff] }
 0x3da   : > { %v2564_v18 = vld [vmem:[%s2814_s30 + $0x6e8] sm:$0xff]  ;;  %v2565_v19 = vld [vmem:[%s2814_s30 + $0x6e0] sm:$0xff]  ;;  %v1586_v45 = vsub.f32 0.0, %v5762_v44 }
 0x3db   : > { %v1212_v29 = vpop.permute.xlu1 %1211  ;;  %v1210_v34 = vpop.permute.xlu0 %1209  ;;  %v5775_v44 = vld [vmem:[#allocation132_spill] sm:$0xff] }
 0x3dc   : > { %v1830_v26 = vsel %vm3960_vm0, %v1574_v14, %v1212_v29  ;;  %v1829_v16 = vsel %vm3960_vm0, %v1573_v28, %v1210_v34  ;;  %v1585_v14 = vsub.f32 0.0, %v5763_v51 }
 0x3dd   : > { %2086 = vst [vmem:[%s3972_s27 + $0x4c8] sm:$0xff] %v1830_v26  ;;  %2085 = vst [vmem:[%s3972_s27 + $0x4c0] sm:$0xff] %v1829_v16  ;;  %1327 = vrot.lane.b32.xlu1 %v2554_v17, %s2698_s17  ;;  %1325 = vrot.lane.b32.xlu0 %v2555_v48, %s2698_s17  ;;  %v5764_v17 = vld [vmem:[#allocation121_spill] sm:$0xff] }
 0x3de   : > { %v2566_v26 = vld [vmem:[%s2814_s30 + $0x6f8] sm:$0xff]  ;;  %v2567_v16 = vld [vmem:[%s2814_s30 + $0x6f0] sm:$0xff]  ;;  %v1588_v48 = vsub.f32 0.0, %v5764_v17 }
 0x3df   : > { %v1216_v43 = vpop.permute.xlu1 %1215  ;;  %v1214_v60 = vpop.permute.xlu0 %1213  ;;  %v5777_v17 = vld [vmem:[#allocation134_spill] sm:$0xff] }
 0x3e0   : > { %v1832_v32 = vsel %vm3960_vm0, %v1576_v23, %v1216_v43  ;;  %v1831_v33 = vsel %vm3960_vm0, %v1575_v11, %v1214_v60  ;;  %v1587_v23 = vsub.f32 0.0, %v5765_v22 }
 0x3e1   : > { %2088 = vst [vmem:[%s3972_s27 + $0x4d8] sm:$0xff] %v1832_v32  ;;  %2087 = vst [vmem:[%s3972_s27 + $0x4d0] sm:$0xff] %v1831_v33  ;;  %1331 = vrot.lane.b32.xlu1 %v2556_v30, %s2698_s17  ;;  %1329 = vrot.lane.b32.xlu0 %v2557_v31, %s2698_s17  ;;  %v5766_v30 = vld [vmem:[#allocation123_spill] sm:$0xff] }
 0x3e2   : > { %v2568_v32 = vld [vmem:[%s2814_s30 + $0x708] sm:$0xff]  ;;  %v2569_v33 = vld [vmem:[%s2814_s30 + $0x700] sm:$0xff]  ;;  %v1590_v31 = vsub.f32 0.0, %v5766_v30 }
 0x3e3   : > { %v1220_v0 = vpop.permute.xlu1 %1219  ;;  %v1218_v20 = vpop.permute.xlu0 %1217  ;;  %v5779_v30 = vld [vmem:[#allocation136_spill] sm:$0xff] }
 0x3e4   : > { %v1834_v38 = vsel %vm3960_vm0, %v1578_v52, %v1220_v0  ;;  %v1833_v39 = vsel %vm3960_vm0, %v1577_v9, %v1218_v20  ;;  %v1589_v52 = vsub.f32 0.0, %v5767_v8 }
 0x3e5   : > { %2090 = vst [vmem:[%s3972_s27 + $0x4e8] sm:$0xff] %v1834_v38  ;;  %2089 = vst [vmem:[%s3972_s27 + $0x4e0] sm:$0xff] %v1833_v39  ;;  %1335 = vrot.lane.b32.xlu1 %v2558_v21, %s2698_s17  ;;  %1333 = vrot.lane.b32.xlu0 %v2559_v50, %s2698_s17  ;;  %v5768_v21 = vld [vmem:[#allocation125_spill] sm:$0xff] }
 0x3e6   : > { %v2570_v38 = vld [vmem:[%s2814_s30 + $0x718] sm:$0xff]  ;;  %v2571_v39 = vld [vmem:[%s2814_s30 + $0x710] sm:$0xff]  ;;  %v1592_v50 = vsub.f32 0.0, %v5768_v21 }
 0x3e7   : > { %v1224_v46 = vpop.permute.xlu1 %1223  ;;  %v1222_v47 = vpop.permute.xlu0 %1221  ;;  %v5781_v21 = vld [vmem:[#allocation138_spill] sm:$0xff] }
 0x3e8   : > { %v1836_v42 = vsel %vm3960_vm0, %v1580_v56, %v1224_v46  ;;  %v1835_v61 = vsel %vm3960_vm0, %v1579_v37, %v1222_v47  ;;  %v1591_v56 = vsub.f32 0.0, %v5769_v36 }
 0x3e9   : > { %2092 = vst [vmem:[%s3972_s27 + $0x4f8] sm:$0xff] %v1836_v42  ;;  %2091 = vst [vmem:[%s3972_s27 + $0x4f0] sm:$0xff] %v1835_v61  ;;  %1339 = vrot.lane.b32.xlu1 %v2560_v1, %s2698_s17  ;;  %1337 = vrot.lane.b32.xlu0 %v2561_v35, %s2698_s17  ;;  %v5770_v1 = vld [vmem:[#allocation127_spill] sm:$0xff] }
 0x3ea   : > { %v2572_v42 = vld [vmem:[%s2814_s30 + $0x728] sm:$0xff]  ;;  %v2573_v61 = vld [vmem:[%s2814_s30 + $0x720] sm:$0xff]  ;;  %v1594_v35 = vsub.f32 0.0, %v5770_v1 }
 0x3eb   : > { %v1228_v63 = vpop.permute.xlu1 %1227  ;;  %v1226_v24 = vpop.permute.xlu0 %1225  ;;  %v5783_v1 = vld [vmem:[#allocation140_spill] sm:$0xff] }
 0x3ec   : > { %v1838_v40 = vsel %vm3960_vm0, %v1582_v62, %v1228_v63  ;;  %v1837_v41 = vsel %vm3960_vm0, %v1581_v55, %v1226_v24  ;;  %v1593_v62 = vsub.f32 0.0, %v5771_v12 }
 0x3ed   : > { %2094 = vst [vmem:[%s3972_s27 + $0x508] sm:$0xff] %v1838_v40  ;;  %2093 = vst [vmem:[%s3972_s27 + $0x500] sm:$0xff] %v1837_v41  ;;  %1343 = vrot.lane.b32.xlu1 %v2562_v25, %s2698_s17  ;;  %1341 = vrot.lane.b32.xlu0 %v2563_v13, %s2698_s17  ;;  %v5772_v25 = vld [vmem:[#allocation129_spill] sm:$0xff] }
 0x3ee   : > { %v2574_v40 = vld [vmem:[%s2814_s30 + $0x738] sm:$0xff]  ;;  %v2575_v41 = vld [vmem:[%s2814_s30 + $0x730] sm:$0xff]  ;;  %v1596_v13 = vsub.f32 0.0, %v5772_v25 }
 0x3ef   : > { %v1232_v7 = vpop.permute.xlu1 %1231  ;;  %v1230_v4 = vpop.permute.xlu0 %1229  ;;  %v5785_v25 = vld [vmem:[#allocation142_spill] sm:$0xff] }
 0x3f0   : > { %v1840_v5 = vsel %vm3960_vm0, %v1584_v3, %v1232_v7  ;;  %v1839_v58 = vsel %vm3960_vm0, %v1583_v6, %v1230_v4  ;;  %v1595_v3 = vsub.f32 0.0, %v5773_v2 }
 0x3f1   : > { %2096 = vst [vmem:[%s3972_s27 + $0x518] sm:$0xff] %v1840_v5  ;;  %2095 = vst [vmem:[%s3972_s27 + $0x510] sm:$0xff] %v1839_v58  ;;  %1347 = vrot.lane.b32.xlu1 %v2564_v18, %s2698_s17  ;;  %1345 = vrot.lane.b32.xlu0 %v2565_v19, %s2698_s17  ;;  %v5774_v18 = vld [vmem:[#allocation131_spill] sm:$0xff] }
 0x3f2   : > { %v2576_v5 = vld [vmem:[%s2814_s30 + $0x748] sm:$0xff]  ;;  %v2577_v58 = vld [vmem:[%s2814_s30 + $0x740] sm:$0xff]  ;;  %v1598_v19 = vsub.f32 0.0, %v5774_v18 }
 0x3f3   : > { %v1236_v15 = vpop.permute.xlu1 %1235  ;;  %v1234_v28 = vpop.permute.xlu0 %1233  ;;  %v5787_v18 = vld [vmem:[#allocation144_spill] sm:$0xff] }
 0x3f4   : > { %v1842_v29 = vsel %vm3960_vm0, %v1586_v45, %v1236_v15  ;;  %v1841_v34 = vsel %vm3960_vm0, %v1585_v14, %v1234_v28  ;;  %v1597_v45 = vsub.f32 0.0, %v5775_v44 }
 0x3f5   : > { %2098 = vst [vmem:[%s3972_s27 + $0x528] sm:$0xff] %v1842_v29  ;;  %2097 = vst [vmem:[%s3972_s27 + $0x520] sm:$0xff] %v1841_v34  ;;  %1351 = vrot.lane.b32.xlu1 %v2566_v26, %s2698_s17  ;;  %1349 = vrot.lane.b32.xlu0 %v2567_v16, %s2698_s17  ;;  %v5776_v26 = vld [vmem:[#allocation133_spill] sm:$0xff] }
 0x3f6   : > { %v2578_v29 = vld [vmem:[%s2814_s30 + $0x758] sm:$0xff]  ;;  %v2579_v34 = vld [vmem:[%s2814_s30 + $0x750] sm:$0xff]  ;;  %v1600_v16 = vsub.f32 0.0, %v5776_v26 }
 0x3f7   : > { %v1240_v49 = vpop.permute.xlu1 %1239  ;;  %v1238_v11 = vpop.permute.xlu0 %1237  ;;  %v5789_v26 = vld [vmem:[#allocation146_spill] sm:$0xff] }
 0x3f8   : > { %v1844_v43 = vsel %vm3960_vm0, %v1588_v48, %v1240_v49  ;;  %v1843_v60 = vsel %vm3960_vm0, %v1587_v23, %v1238_v11  ;;  %v1599_v48 = vsub.f32 0.0, %v5777_v17 }
 0x3f9   : > { %2100 = vst [vmem:[%s3972_s27 + $0x538] sm:$0xff] %v1844_v43  ;;  %2099 = vst [vmem:[%s3972_s27 + $0x530] sm:$0xff] %v1843_v60  ;;  %1355 = vrot.lane.b32.xlu1 %v2568_v32, %s2698_s17  ;;  %1353 = vrot.lane.b32.xlu0 %v2569_v33, %s2698_s17  ;;  %v5778_v32 = vld [vmem:[#allocation135_spill] sm:$0xff] }
 0x3fa   : > { %v2580_v43 = vld [vmem:[%s2814_s30 + $0x768] sm:$0xff]  ;;  %v2581_v60 = vld [vmem:[%s2814_s30 + $0x760] sm:$0xff]  ;;  %v1602_v33 = vsub.f32 0.0, %v5778_v32 }
 0x3fb   : > { %v1244_v53 = vpop.permute.xlu1 %1243  ;;  %v1242_v9 = vpop.permute.xlu0 %1241  ;;  %v5791_v32 = vld [vmem:[#allocation148_spill] sm:$0xff] }
 0x3fc   : > { %v1846_v0 = vsel %vm3960_vm0, %v1590_v31, %v1244_v53  ;;  %v1845_v20 = vsel %vm3960_vm0, %v1589_v52, %v1242_v9  ;;  %v1601_v31 = vsub.f32 0.0, %v5779_v30 }
 0x3fd   : > { %2102 = vst [vmem:[%s3972_s27 + $0x548] sm:$0xff] %v1846_v0  ;;  %2101 = vst [vmem:[%s3972_s27 + $0x540] sm:$0xff] %v1845_v20  ;;  %1359 = vrot.lane.b32.xlu1 %v2570_v38, %s2698_s17  ;;  %1357 = vrot.lane.b32.xlu0 %v2571_v39, %s2698_s17  ;;  %v5780_v38 = vld [vmem:[#allocation137_spill] sm:$0xff] }
 0x3fe   : > { %v2582_v0 = vld [vmem:[%s2814_s30 + $0x778] sm:$0xff]  ;;  %v2583_v20 = vld [vmem:[%s2814_s30 + $0x770] sm:$0xff]  ;;  %v1604_v39 = vsub.f32 0.0, %v5780_v38 }
 0x3ff   : > { %v1248_v57 = vpop.permute.xlu1 %1247  ;;  %v1246_v37 = vpop.permute.xlu0 %1245  ;;  %v5793_v38 = vld [vmem:[#allocation150_spill] sm:$0xff] }
 0x400   : > { %v1848_v46 = vsel %vm3960_vm0, %v1592_v50, %v1248_v57  ;;  %v1847_v47 = vsel %vm3960_vm0, %v1591_v56, %v1246_v37  ;;  %v1603_v50 = vsub.f32 0.0, %v5781_v21 }
 0x401   : > { %2104 = vst [vmem:[%s3972_s27 + $0x558] sm:$0xff] %v1848_v46  ;;  %2103 = vst [vmem:[%s3972_s27 + $0x550] sm:$0xff] %v1847_v47  ;;  %1363 = vrot.lane.b32.xlu1 %v2572_v42, %s2698_s17  ;;  %1361 = vrot.lane.b32.xlu0 %v2573_v61, %s2698_s17  ;;  %v5782_v42 = vld [vmem:[#allocation139_spill] sm:$0xff] }
 0x402   : > { %v2584_v46 = vld [vmem:[%s2814_s30 + $0x788] sm:$0xff]  ;;  %v2585_v47 = vld [vmem:[%s2814_s30 + $0x780] sm:$0xff]  ;;  %v1606_v61 = vsub.f32 0.0, %v5782_v42 }
 0x403   : > { %v1252_v54 = vpop.permute.xlu1 %1251  ;;  %v1250_v55 = vpop.permute.xlu0 %1249  ;;  %v5795_v42 = vld [vmem:[#allocation152_spill] sm:$0xff] }
 0x404   : > { %v1850_v63 = vsel %vm3960_vm0, %v1594_v35, %v1252_v54  ;;  %v1849_v24 = vsel %vm3960_vm0, %v1593_v62, %v1250_v55  ;;  %v1605_v35 = vsub.f32 0.0, %v5783_v1 }
 0x405   : > { %2106 = vst [vmem:[%s3972_s27 + $0x568] sm:$0xff] %v1850_v63  ;;  %2105 = vst [vmem:[%s3972_s27 + $0x560] sm:$0xff] %v1849_v24  ;;  %1367 = vrot.lane.b32.xlu1 %v2574_v40, %s2698_s17  ;;  %1365 = vrot.lane.b32.xlu0 %v2575_v41, %s2698_s17  ;;  %v5784_v40 = vld [vmem:[#allocation141_spill] sm:$0xff] }
 0x406   : > { %v2586_v63 = vld [vmem:[%s2814_s30 + $0x798] sm:$0xff]  ;;  %v2587_v24 = vld [vmem:[%s2814_s30 + $0x790] sm:$0xff]  ;;  %v1608_v41 = vsub.f32 0.0, %v5784_v40 }
 0x407   : > { %v1256_v10 = vpop.permute.xlu1 %1255  ;;  %v1254_v6 = vpop.permute.xlu0 %1253  ;;  %v5797_v40 = vld [vmem:[#allocation154_spill] sm:$0xff] }
 0x408   : > { %v1852_v7 = vsel %vm3960_vm0, %v1596_v13, %v1256_v10  ;;  %v1851_v4 = vsel %vm3960_vm0, %v1595_v3, %v1254_v6  ;;  %v1607_v13 = vsub.f32 0.0, %v5785_v25 }
 0x409   : > { %2108 = vst [vmem:[%s3972_s27 + $0x578] sm:$0xff] %v1852_v7  ;;  %2107 = vst [vmem:[%s3972_s27 + $0x570] sm:$0xff] %v1851_v4  ;;  %1371 = vrot.lane.b32.xlu1 %v2576_v5, %s2698_s17  ;;  %1369 = vrot.lane.b32.xlu0 %v2577_v58, %s2698_s17  ;;  %v5786_v5 = vld [vmem:[#allocation143_spill] sm:$0xff] }
 0x40a   : > { %v2588_v7 = vld [vmem:[%s2814_s30 + $0x7a8] sm:$0xff]  ;;  %v2589_v4 = vld [vmem:[%s2814_s30 + $0x7a0] sm:$0xff]  ;;  %v1610_v58 = vsub.f32 0.0, %v5786_v5 }
 0x40b   : > { %v1260_v51 = vpop.permute.xlu1 %1259  ;;  %v1258_v14 = vpop.permute.xlu0 %1257 }
 0x40c   : > { %v1854_v15 = vsel %vm3960_vm0, %v1598_v19, %v1260_v51  ;;  %v1853_v28 = vsel %vm3960_vm0, %v1597_v45, %v1258_v14  ;;  %v1609_v19 = vsub.f32 0.0, %v5787_v18 }
 0x40d   : > { %2110 = vst [vmem:[%s3972_s27 + $0x588] sm:$0xff] %v1854_v15  ;;  %2109 = vst [vmem:[%s3972_s27 + $0x580] sm:$0xff] %v1853_v28  ;;  %1375 = vrot.lane.b32.xlu1 %v2578_v29, %s2698_s17  ;;  %1373 = vrot.lane.b32.xlu0 %v2579_v34, %s2698_s17  ;;  %v5788_v29 = vld [vmem:[#allocation145_spill] sm:$0xff] }
 0x40e   : > { %v2590_v15 = vld [vmem:[%s2814_s30 + $0x7b8] sm:$0xff]  ;;  %v2591_v28 = vld [vmem:[%s2814_s30 + $0x7b0] sm:$0xff]  ;;  %v1612_v34 = vsub.f32 0.0, %v5788_v29 }
 0x40f   : > { %v1264_v22 = vpop.permute.xlu1 %1263  ;;  %v1262_v23 = vpop.permute.xlu0 %1261 }
 0x410   : > { %v1856_v49 = vsel %vm3960_vm0, %v1600_v16, %v1264_v22  ;;  %v1855_v11 = vsel %vm3960_vm0, %v1599_v48, %v1262_v23  ;;  %v1611_v16 = vsub.f32 0.0, %v5789_v26  ;;  %v5802_v26 = vld [vmem:[#allocation159_spill] sm:$0xff] }
 0x411   : > { %2112 = vst [vmem:[%s3972_s27 + $0x598] sm:$0xff] %v1856_v49  ;;  %2111 = vst [vmem:[%s3972_s27 + $0x590] sm:$0xff] %v1855_v11  ;;  %1379 = vrot.lane.b32.xlu1 %v2580_v43, %s2698_s17  ;;  %1377 = vrot.lane.b32.xlu0 %v2581_v60, %s2698_s17  ;;  %v5790_v43 = vld [vmem:[#allocation147_spill] sm:$0xff] }
 0x412   : > { %v2592_v49 = vld [vmem:[%s2814_s30 + $0x7c8] sm:$0xff]  ;;  %v2593_v11 = vld [vmem:[%s2814_s30 + $0x7c0] sm:$0xff]  ;;  %v1614_v60 = vsub.f32 0.0, %v5790_v43 }
 0x413   : > { %v1268_v8 = vpop.permute.xlu1 %1267  ;;  %v1266_v52 = vpop.permute.xlu0 %1265  ;;  %v5804_v43 = vld [vmem:[#allocation161_spill] sm:$0xff] }
 0x414   : > { %v1858_v53 = vsel %vm3960_vm0, %v1602_v33, %v1268_v8  ;;  %v1857_v9 = vsel %vm3960_vm0, %v1601_v31, %v1266_v52  ;;  %v1613_v33 = vsub.f32 0.0, %v5791_v32  ;;  %v5805_v32 = vld [vmem:[#allocation162_spill] sm:$0xff] }
 0x415   : > { %2114 = vst [vmem:[%s3972_s27 + $0x5a8] sm:$0xff] %v1858_v53  ;;  %2113 = vst [vmem:[%s3972_s27 + $0x5a0] sm:$0xff] %v1857_v9  ;;  %1383 = vrot.lane.b32.xlu1 %v2582_v0, %s2698_s17  ;;  %1381 = vrot.lane.b32.xlu0 %v2583_v20, %s2698_s17  ;;  %v5792_v0 = vld [vmem:[#allocation149_spill] sm:$0xff] }
 0x416   : > { %v2594_v53 = vld [vmem:[%s2814_s30 + $0x7d8] sm:$0xff]  ;;  %v2595_v9 = vld [vmem:[%s2814_s30 + $0x7d0] sm:$0xff]  ;;  %v1616_v20 = vsub.f32 0.0, %v5792_v0  ;;  %v5807_v0 = vld [vmem:[#allocation164_spill] sm:$0xff] }
 0x417   : > { %v1272_v36 = vpop.permute.xlu1 %1271  ;;  %v1270_v56 = vpop.permute.xlu0 %1269 }
 0x418   : > { %v1860_v57 = vsel %vm3960_vm0, %v1604_v39, %v1272_v36  ;;  %v1859_v37 = vsel %vm3960_vm0, %v1603_v50, %v1270_v56  ;;  %v1615_v39 = vsub.f32 0.0, %v5793_v38 }
 0x419   : > { %2116 = vst [vmem:[%s3972_s27 + $0x5b8] sm:$0xff] %v1860_v57  ;;  %2115 = vst [vmem:[%s3972_s27 + $0x5b0] sm:$0xff] %v1859_v37  ;;  %1387 = vrot.lane.b32.xlu1 %v2584_v46, %s2698_s17  ;;  %1385 = vrot.lane.b32.xlu0 %v2585_v47, %s2698_s17  ;;  %v5794_v46 = vld [vmem:[#allocation151_spill] sm:$0xff] }
 0x41a   : > { %v2596_v57 = vld [vmem:[%s2814_s30 + $0x7e8] sm:$0xff]  ;;  %v2597_v37 = vld [vmem:[%s2814_s30 + $0x7e0] sm:$0xff]  ;;  %v1618_v47 = vsub.f32 0.0, %v5794_v46 }
 0x41b   : > { %v1276_v12 = vpop.permute.xlu1 %1275  ;;  %v1274_v62 = vpop.permute.xlu0 %1273 }
 0x41c   : > { %v1862_v54 = vsel %vm3960_vm0, %v1606_v61, %v1276_v12  ;;  %v1861_v55 = vsel %vm3960_vm0, %v1605_v35, %v1274_v62  ;;  %v1617_v61 = vsub.f32 0.0, %v5795_v42 }
 0x41d   : > { %2118 = vst [vmem:[%s3972_s27 + $0x5c8] sm:$0xff] %v1862_v54  ;;  %2117 = vst [vmem:[%s3972_s27 + $0x5c0] sm:$0xff] %v1861_v55  ;;  %1391 = vrot.lane.b32.xlu1 %v2586_v63, %s2698_s17  ;;  %1389 = vrot.lane.b32.xlu0 %v2587_v24, %s2698_s17  ;;  %v5796_v63 = vld [vmem:[#allocation153_spill] sm:$0xff] }
 0x41e   : > { %v2598_v54 = vld [vmem:[%s2814_s30 + $0x7f8] sm:$0xff]  ;;  %v2599_v55 = vld [vmem:[%s2814_s30 + $0x7f0] sm:$0xff]  ;;  %v1620_v24 = vsub.f32 0.0, %v5796_v63 }
 0x41f   : > { %v1280_v2 = vpop.permute.xlu1 %1279  ;;  %v1278_v3 = vpop.permute.xlu0 %1277 }
 0x420   : > { %v1864_v10 = vsel %vm3960_vm0, %v1608_v41, %v1280_v2  ;;  %v1863_v6 = vsel %vm3960_vm0, %v1607_v13, %v1278_v3  ;;  %v1619_v41 = vsub.f32 0.0, %v5797_v40  ;;  %v5812_v40 = vld [vmem:[#allocation169_spill] sm:$0xff] }
 0x421   : > { %2120 = vst [vmem:[%s3972_s27 + $0x5d8] sm:$0xff] %v1864_v10  ;;  %2119 = vst [vmem:[%s3972_s27 + $0x5d0] sm:$0xff] %v1863_v6  ;;  %1395 = vrot.lane.b32.xlu1 %v2588_v7, %s2698_s17  ;;  %1393 = vrot.lane.b32.xlu0 %v2589_v4, %s2698_s17  ;;  %v5798_v10 = vld [vmem:[#allocation155_spill] sm:$0xff]  ;;  %v5799_v7 = vld [vmem:[#allocation156_spill] sm:$0xff] }
 0x422   : > { %v1622_v6 = vsub.f32 0.0, %v5798_v10  ;;  %v1621_v4 = vsub.f32 0.0, %v5799_v7  ;;  %v5814_v7 = vld [vmem:[#allocation171_spill] sm:$0xff] }
 0x423   : > { %v1284_v44 = vpop.permute.xlu1 %1283  ;;  %v1282_v45 = vpop.permute.xlu0 %1281 }
 0x424   : > { %v1866_v51 = vsel %vm3960_vm0, %v1610_v58, %v1284_v44  ;;  %v1865_v14 = vsel %vm3960_vm0, %v1609_v19, %v1282_v45  ;;  %v5800_v44 = vld [vmem:[#allocation157_spill] sm:$0xff] }
 0x425   : > { %2122 = vst [vmem:[%s3972_s27 + $0x5e8] sm:$0xff] %v1866_v51  ;;  %2121 = vst [vmem:[%s3972_s27 + $0x5e0] sm:$0xff] %v1865_v14  ;;  %1399 = vrot.lane.b32.xlu1 %v2590_v15, %s2698_s17  ;;  %1397 = vrot.lane.b32.xlu0 %v2591_v28, %s2698_s17  ;;  %v1624_v45 = vsub.f32 0.0, %v5800_v44  ;;  %v5801_v51 = vld [vmem:[#allocation158_spill] sm:$0xff] }
 0x426   : > { %v1623_v14 = vsub.f32 0.0, %v5801_v51  ;;  %v5816_v51 = vld [vmem:[#allocation173_spill] sm:$0xff] }
 0x427   : > { %v1288_v17 = vpop.permute.xlu1 %1287  ;;  %v1286_v48 = vpop.permute.xlu0 %1285 }
 0x428   : > { %v1868_v22 = vsel %vm3960_vm0, %v1612_v34, %v1288_v17  ;;  %v1867_v23 = vsel %vm3960_vm0, %v1611_v16, %v1286_v48  ;;  %v1626_v16 = vsub.f32 0.0, %v5802_v26  ;;  %v5803_v17 = vld [vmem:[#allocation160_spill] sm:$0xff] }
 0x429   : > { %2124 = vst [vmem:[%s3972_s27 + $0x5f8] sm:$0xff] %v1868_v22  ;;  %2123 = vst [vmem:[%s3972_s27 + $0x5f0] sm:$0xff] %v1867_v23  ;;  %1403 = vrot.lane.b32.xlu1 %v2592_v49, %s2698_s17  ;;  %1401 = vrot.lane.b32.xlu0 %v2593_v11, %s2698_s17  ;;  %v1625_v48 = vsub.f32 0.0, %v5803_v17  ;;  %v5818_v17 = vld [vmem:[#allocation175_spill] sm:$0xff] }
 0x42b   : > { %v1292_v30 = vpop.permute.xlu1 %1291  ;;  %v1290_v31 = vpop.permute.xlu0 %1289 }
 0x42c   : > { %v1870_v8 = vsel %vm3960_vm0, %v1614_v60, %v1292_v30  ;;  %v1869_v52 = vsel %vm3960_vm0, %v1613_v33, %v1290_v31  ;;  %v1628_v60 = vsub.f32 0.0, %v5804_v43  ;;  %v1627_v33 = vsub.f32 0.0, %v5805_v32  ;;  %v5820_v32 = vld [vmem:[#allocation177_spill] sm:$0xff] }
 0x42d   : > { %2126 = vst [vmem:[%s3972_s27 + $0x608] sm:$0xff] %v1870_v8  ;;  %2125 = vst [vmem:[%s3972_s27 + $0x600] sm:$0xff] %v1869_v52  ;;  %1407 = vrot.lane.b32.xlu1 %v2594_v53, %s2698_s17  ;;  %1405 = vrot.lane.b32.xlu0 %v2595_v9, %s2698_s17  ;;  %v5806_v53 = vld [vmem:[#allocation163_spill] sm:$0xff] }
 0x42e   : > { %v1630_v9 = vsub.f32 0.0, %v5806_v53 }
 0x42f   : > { %v1296_v21 = vpop.permute.xlu1 %1295  ;;  %v1294_v50 = vpop.permute.xlu0 %1293 }
 0x430   : > { %v1872_v36 = vsel %vm3960_vm0, %v1616_v20, %v1296_v21  ;;  %v1871_v56 = vsel %vm3960_vm0, %v1615_v39, %v1294_v50  ;;  %v1629_v20 = vsub.f32 0.0, %v5807_v0  ;;  %v5822_v0 = vld [vmem:[#allocation179_spill] sm:$0xff] }
 0x431   : > { %2128 = vst [vmem:[%s3972_s27 + $0x618] sm:$0xff] %v1872_v36  ;;  %2127 = vst [vmem:[%s3972_s27 + $0x610] sm:$0xff] %v1871_v56  ;;  %1411 = vrot.lane.b32.xlu1 %v2596_v57, %s2698_s17  ;;  %1409 = vrot.lane.b32.xlu0 %v2597_v37, %s2698_s17  ;;  %v5808_v36 = vld [vmem:[#allocation165_spill] sm:$0xff]  ;;  %v5809_v57 = vld [vmem:[#allocation166_spill] sm:$0xff] }
 0x432   : > { %v1632_v56 = vsub.f32 0.0, %v5808_v36  ;;  %v1631_v37 = vsub.f32 0.0, %v5809_v57  ;;  %v5824_v57 = vld [vmem:[#allocation181_spill] sm:$0xff] }
 0x433   : > { %v1300_v1 = vpop.permute.xlu1 %1299  ;;  %v1298_v35 = vpop.permute.xlu0 %1297 }
 0x434   : > { %v1874_v12 = vsel %vm3960_vm0, %v1618_v47, %v1300_v1  ;;  %v1873_v62 = vsel %vm3960_vm0, %v1617_v61, %v1298_v35  ;;  %v5810_v1 = vld [vmem:[#allocation167_spill] sm:$0xff] }
 0x435   : > { %2130 = vst [vmem:[%s3972_s27 + $0x628] sm:$0xff] %v1874_v12  ;;  %2129 = vst [vmem:[%s3972_s27 + $0x620] sm:$0xff] %v1873_v62  ;;  %1415 = vrot.lane.b32.xlu1 %v2598_v54, %s2698_s17  ;;  %1413 = vrot.lane.b32.xlu0 %v2599_v55, %s2698_s17  ;;  %v1634_v35 = vsub.f32 0.0, %v5810_v1  ;;  %v5811_v12 = vld [vmem:[#allocation168_spill] sm:$0xff] }
 0x436   : > { %v1633_v62 = vsub.f32 0.0, %v5811_v12  ;;  %v5826_v12 = vld [vmem:[#allocation183_spill] sm:$0xff] }
 0x437   : > { %v1304_v25 = vpop.permute.xlu1 %1303  ;;  %v1302_v13 = vpop.permute.xlu0 %1301 }
 0x438   : > { %v1876_v2 = vsel %vm3960_vm0, %v1620_v24, %v1304_v25  ;;  %v1875_v3 = vsel %vm3960_vm0, %v1619_v41, %v1302_v13  ;;  %v1636_v41 = vsub.f32 0.0, %v5812_v40  ;;  %v5813_v25 = vld [vmem:[#allocation170_spill] sm:$0xff] }
 0x439   : > { %2132 = vst [vmem:[%s3972_s27 + $0x638] sm:$0xff] %v1876_v2  ;;  %2131 = vst [vmem:[%s3972_s27 + $0x630] sm:$0xff] %v1875_v3  ;;  %v1635_v13 = vsub.f32 0.0, %v5813_v25  ;;  %v5828_v25 = vld [vmem:[#allocation185_spill] sm:$0xff] }
 0x43b   : > { %v1308_v5 = vpop.permute.xlu1 %1307  ;;  %v1306_v58 = vpop.permute.xlu0 %1305 }
 0x43c   : > { %v1878_v18 = vsel %vm3960_vm0, %v1622_v6, %v1308_v5  ;;  %v1877_v19 = vsel %vm3960_vm0, %v1621_v4, %v1306_v58  ;;  %v1638_v4 = vsub.f32 0.0, %v5814_v7  ;;  %v5815_v5 = vld [vmem:[#allocation172_spill] sm:$0xff] }
 0x43d   : > { %2134 = vst [vmem:[%s3972_s27 + $0x648] sm:$0xff] %v1878_v18  ;;  %2133 = vst [vmem:[%s3972_s27 + $0x640] sm:$0xff] %v1877_v19  ;;  %v1637_v58 = vsub.f32 0.0, %v5815_v5  ;;  %v5830_v5 = vld [vmem:[#allocation187_spill] sm:$0xff] }
 0x43f   : > { %v1312_v15 = vpop.permute.xlu1 %1311  ;;  %v1310_v28 = vpop.permute.xlu0 %1309 }
 0x440   : > { %v1880_v29 = vsel %vm3960_vm0, %v1624_v45, %v1312_v15  ;;  %v1879_v34 = vsel %vm3960_vm0, %v1623_v14, %v1310_v28  ;;  %v1640_v14 = vsub.f32 0.0, %v5816_v51  ;;  %v5817_v15 = vld [vmem:[#allocation174_spill] sm:$0xff] }
 0x441   : > { %2136 = vst [vmem:[%s3972_s27 + $0x658] sm:$0xff] %v1880_v29  ;;  %2135 = vst [vmem:[%s3972_s27 + $0x650] sm:$0xff] %v1879_v34  ;;  %v1639_v28 = vsub.f32 0.0, %v5817_v15  ;;  %v5832_v15 = vld [vmem:[#allocation189_spill] sm:$0xff] }
 0x443   : > { %v1316_v22 = vpop.permute.xlu1 %1315  ;;  %v1314_v23 = vpop.permute.xlu0 %1313 }
 0x444   : > { %v1882_v49 = vsel %vm3960_vm0, %v1626_v16, %v1316_v22  ;;  %v1881_v11 = vsel %vm3960_vm0, %v1625_v48, %v1314_v23  ;;  %v1642_v48 = vsub.f32 0.0, %v5818_v17  ;;  %v5819_v22 = vld [vmem:[#allocation176_spill] sm:$0xff] }
 0x445   : > { %2138 = vst [vmem:[%s3972_s27 + $0x668] sm:$0xff] %v1882_v49  ;;  %2137 = vst [vmem:[%s3972_s27 + $0x660] sm:$0xff] %v1881_v11  ;;  %v1641_v23 = vsub.f32 0.0, %v5819_v22  ;;  %v5834_v22 = vld [vmem:[#allocation191_spill] sm:$0xff] }
 0x447   : > { %v1320_v30 = vpop.permute.xlu1 %1319  ;;  %v1318_v31 = vpop.permute.xlu0 %1317 }
 0x448   : > { %v1884_v8 = vsel %vm3960_vm0, %v1628_v60, %v1320_v30  ;;  %v1883_v52 = vsel %vm3960_vm0, %v1627_v33, %v1318_v31  ;;  %v1644_v33 = vsub.f32 0.0, %v5820_v32  ;;  %v5821_v30 = vld [vmem:[#allocation178_spill] sm:$0xff] }
 0x449   : > { %2140 = vst [vmem:[%s3972_s27 + $0x678] sm:$0xff] %v1884_v8  ;;  %2139 = vst [vmem:[%s3972_s27 + $0x670] sm:$0xff] %v1883_v52  ;;  %v1643_v31 = vsub.f32 0.0, %v5821_v30  ;;  %v5836_v30 = vld [vmem:[#allocation193_spill] sm:$0xff] }
 0x44b   : > { %v1324_v38 = vpop.permute.xlu1 %1323  ;;  %v1322_v39 = vpop.permute.xlu0 %1321 }
 0x44c   : > { %v1886_v21 = vsel %vm3960_vm0, %v1630_v9, %v1324_v38  ;;  %v1885_v50 = vsel %vm3960_vm0, %v1629_v20, %v1322_v39  ;;  %v1646_v20 = vsub.f32 0.0, %v5822_v0  ;;  %v5823_v38 = vld [vmem:[#allocation180_spill] sm:$0xff] }
 0x44d   : > { %2142 = vst [vmem:[%s3972_s27 + $0x688] sm:$0xff] %v1886_v21  ;;  %2141 = vst [vmem:[%s3972_s27 + $0x680] sm:$0xff] %v1885_v50  ;;  %v1645_v39 = vsub.f32 0.0, %v5823_v38  ;;  %v5838_v38 = vld [vmem:[#allocation195_spill] sm:$0xff] }
 0x44f   : > { %v1328_v46 = vpop.permute.xlu1 %1327  ;;  %v1326_v47 = vpop.permute.xlu0 %1325 }
 0x450   : > { %v1888_v42 = vsel %vm3960_vm0, %v1632_v56, %v1328_v46  ;;  %v1887_v61 = vsel %vm3960_vm0, %v1631_v37, %v1326_v47  ;;  %v1648_v37 = vsub.f32 0.0, %v5824_v57  ;;  %v5825_v46 = vld [vmem:[#allocation182_spill] sm:$0xff] }
 0x451   : > { %2144 = vst [vmem:[%s3972_s27 + $0x698] sm:$0xff] %v1888_v42  ;;  %2143 = vst [vmem:[%s3972_s27 + $0x690] sm:$0xff] %v1887_v61  ;;  %v1647_v47 = vsub.f32 0.0, %v5825_v46  ;;  %v5840_v46 = vld [vmem:[#allocation197_spill] sm:$0xff] }
 0x453   : > { %v1332_v54 = vpop.permute.xlu1 %1331  ;;  %v1330_v55 = vpop.permute.xlu0 %1329 }
 0x454   : > { %v1890_v63 = vsel %vm3960_vm0, %v1634_v35, %v1332_v54  ;;  %v1889_v24 = vsel %vm3960_vm0, %v1633_v62, %v1330_v55  ;;  %v1650_v62 = vsub.f32 0.0, %v5826_v12  ;;  %v5827_v54 = vld [vmem:[#allocation184_spill] sm:$0xff] }
 0x455   : > { %2146 = vst [vmem:[%s3972_s27 + $0x6a8] sm:$0xff] %v1890_v63  ;;  %2145 = vst [vmem:[%s3972_s27 + $0x6a0] sm:$0xff] %v1889_v24  ;;  %v1649_v55 = vsub.f32 0.0, %v5827_v54  ;;  %v5842_v54 = vld [vmem:[#allocation199_spill] sm:$0xff] }
 0x457   : > { %v1336_v2 = vpop.permute.xlu1 %1335  ;;  %v1334_v3 = vpop.permute.xlu0 %1333 }
 0x458   : > { %v1892_v10 = vsel %vm3960_vm0, %v1636_v41, %v1336_v2  ;;  %v1891_v6 = vsel %vm3960_vm0, %v1635_v13, %v1334_v3  ;;  %v1652_v13 = vsub.f32 0.0, %v5828_v25  ;;  %v5829_v2 = vld [vmem:[#allocation186_spill] sm:$0xff] }
 0x459   : > { %2148 = vst [vmem:[%s3972_s27 + $0x6b8] sm:$0xff] %v1892_v10  ;;  %2147 = vst [vmem:[%s3972_s27 + $0x6b0] sm:$0xff] %v1891_v6  ;;  %v1651_v3 = vsub.f32 0.0, %v5829_v2  ;;  %v5844_v2 = vld [vmem:[#allocation201_spill] sm:$0xff] }
 0x45b   : > { %v1340_v18 = vpop.permute.xlu1 %1339  ;;  %v1338_v19 = vpop.permute.xlu0 %1337 }
 0x45c   : > { %v1894_v44 = vsel %vm3960_vm0, %v1638_v4, %v1340_v18  ;;  %v1893_v45 = vsel %vm3960_vm0, %v1637_v58, %v1338_v19  ;;  %v1654_v58 = vsub.f32 0.0, %v5830_v5  ;;  %v5831_v18 = vld [vmem:[#allocation188_spill] sm:$0xff] }
 0x45d   : > { %2150 = vst [vmem:[%s3972_s27 + $0x6c8] sm:$0xff] %v1894_v44  ;;  %2149 = vst [vmem:[%s3972_s27 + $0x6c0] sm:$0xff] %v1893_v45  ;;  %v1653_v19 = vsub.f32 0.0, %v5831_v18  ;;  %v5846_v18 = vld [vmem:[#allocation203_spill] sm:$0xff] }
 0x45f   : > { %v1344_v29 = vpop.permute.xlu1 %1343  ;;  %v1342_v34 = vpop.permute.xlu0 %1341 }
 0x460   : > { %v1896_v26 = vsel %vm3960_vm0, %v1640_v14, %v1344_v29  ;;  %v1895_v16 = vsel %vm3960_vm0, %v1639_v28, %v1342_v34  ;;  %v1656_v28 = vsub.f32 0.0, %v5832_v15  ;;  %v5833_v29 = vld [vmem:[#allocation190_spill] sm:$0xff] }
 0x461   : > { %2152 = vst [vmem:[%s3972_s27 + $0x6d8] sm:$0xff] %v1896_v26  ;;  %2151 = vst [vmem:[%s3972_s27 + $0x6d0] sm:$0xff] %v1895_v16  ;;  %v1655_v34 = vsub.f32 0.0, %v5833_v29  ;;  %v5848_v29 = vld [vmem:[#allocation205_spill] sm:$0xff] }
 0x463   : > { %v1348_v49 = vpop.permute.xlu1 %1347  ;;  %v1346_v11 = vpop.permute.xlu0 %1345 }
 0x464   : > { %v1898_v43 = vsel %vm3960_vm0, %v1642_v48, %v1348_v49  ;;  %v1897_v60 = vsel %vm3960_vm0, %v1641_v23, %v1346_v11  ;;  %v1658_v23 = vsub.f32 0.0, %v5834_v22  ;;  %v5835_v49 = vld [vmem:[#allocation192_spill] sm:$0xff] }
 0x465   : > { %2154 = vst [vmem:[%s3972_s27 + $0x6e8] sm:$0xff] %v1898_v43  ;;  %2153 = vst [vmem:[%s3972_s27 + $0x6e0] sm:$0xff] %v1897_v60  ;;  %v1657_v11 = vsub.f32 0.0, %v5835_v49  ;;  %v1674_v49 = vsub.f32 0.0, %v3944_v27 }
 0x467   : > { %v1352_v8 = vpop.permute.xlu1 %1351  ;;  %v1350_v52 = vpop.permute.xlu0 %1349 }
 0x468   : > { %v1900_v53 = vsel %vm3960_vm0, %v1644_v33, %v1352_v8  ;;  %v1899_v9 = vsel %vm3960_vm0, %v1643_v31, %v1350_v52  ;;  %v1660_v31 = vsub.f32 0.0, %v5836_v30  ;;  %v5837_v8 = vld [vmem:[#allocation194_spill] sm:$0xff] }
 0x469   : > { %2156 = vst [vmem:[%s3972_s27 + $0x6f8] sm:$0xff] %v1900_v53  ;;  %2155 = vst [vmem:[%s3972_s27 + $0x6f0] sm:$0xff] %v1899_v9  ;;  %v1659_v52 = vsub.f32 0.0, %v5837_v8  ;;  %v5852_v8 = vld [vmem:[#allocation209_spill] sm:$0xff] }
 0x46b   : > { %v1356_v21 = vpop.permute.xlu1 %1355  ;;  %v1354_v50 = vpop.permute.xlu0 %1353 }
 0x46c   : > { %v1902_v36 = vsel %vm3960_vm0, %v1646_v20, %v1356_v21  ;;  %v1901_v56 = vsel %vm3960_vm0, %v1645_v39, %v1354_v50  ;;  %v1662_v39 = vsub.f32 0.0, %v5838_v38  ;;  %v5839_v21 = vld [vmem:[#allocation196_spill] sm:$0xff] }
 0x46d   : > { %2158 = vst [vmem:[%s3972_s27 + $0x708] sm:$0xff] %v1902_v36  ;;  %2157 = vst [vmem:[%s3972_s27 + $0x700] sm:$0xff] %v1901_v56  ;;  %v1661_v50 = vsub.f32 0.0, %v5839_v21 }
 0x46f   : > { %v1360_v42 = vpop.permute.xlu1 %1359  ;;  %v1358_v61 = vpop.permute.xlu0 %1357 }
 0x470   : > { %v1904_v1 = vsel %vm3960_vm0, %v1648_v37, %v1360_v42  ;;  %v1903_v35 = vsel %vm3960_vm0, %v1647_v47, %v1358_v61  ;;  %v1664_v47 = vsub.f32 0.0, %v5840_v46  ;;  %v5841_v42 = vld [vmem:[#allocation198_spill] sm:$0xff] }
 0x471   : > { %2160 = vst [vmem:[%s3972_s27 + $0x718] sm:$0xff] %v1904_v1  ;;  %2159 = vst [vmem:[%s3972_s27 + $0x710] sm:$0xff] %v1903_v35  ;;  %v1663_v61 = vsub.f32 0.0, %v5841_v42 }
 0x473   : > { %v1364_v63 = vpop.permute.xlu1 %1363  ;;  %v1362_v24 = vpop.permute.xlu0 %1361 }
 0x474   : > { %v1906_v40 = vsel %vm3960_vm0, %v1650_v62, %v1364_v63  ;;  %v1905_v41 = vsel %vm3960_vm0, %v1649_v55, %v1362_v24  ;;  %v1666_v55 = vsub.f32 0.0, %v5842_v54  ;;  %v5843_v63 = vld [vmem:[#allocation200_spill] sm:$0xff] }
 0x475   : > { %2162 = vst [vmem:[%s3972_s27 + $0x728] sm:$0xff] %v1906_v40  ;;  %2161 = vst [vmem:[%s3972_s27 + $0x720] sm:$0xff] %v1905_v41  ;;  %v1665_v24 = vsub.f32 0.0, %v5843_v63 }
 0x477   : > { %v1368_v10 = vpop.permute.xlu1 %1367  ;;  %v1366_v6 = vpop.permute.xlu0 %1365 }
 0x478   : > { %v1908_v7 = vsel %vm3960_vm0, %v1652_v13, %v1368_v10  ;;  %v1907_v4 = vsel %vm3960_vm0, %v1651_v3, %v1366_v6  ;;  %v1668_v3 = vsub.f32 0.0, %v5844_v2  ;;  %v5845_v10 = vld [vmem:[#allocation202_spill] sm:$0xff] }
 0x479   : > { %2164 = vst [vmem:[%s3972_s27 + $0x738] sm:$0xff] %v1908_v7  ;;  %2163 = vst [vmem:[%s3972_s27 + $0x730] sm:$0xff] %v1907_v4  ;;  %v1667_v6 = vsub.f32 0.0, %v5845_v10 }
 0x47b   : > { %v1372_v44 = vpop.permute.xlu1 %1371  ;;  %v1370_v45 = vpop.permute.xlu0 %1369 }
 0x47c   : > { %v1910_v51 = vsel %vm3960_vm0, %v1654_v58, %v1372_v44  ;;  %v1909_v14 = vsel %vm3960_vm0, %v1653_v19, %v1370_v45  ;;  %v1670_v19 = vsub.f32 0.0, %v5846_v18  ;;  %v5847_v44 = vld [vmem:[#allocation204_spill] sm:$0xff] }
 0x47d   : > { %2166 = vst [vmem:[%s3972_s27 + $0x748] sm:$0xff] %v1910_v51  ;;  %2165 = vst [vmem:[%s3972_s27 + $0x740] sm:$0xff] %v1909_v14  ;;  %v1669_v45 = vsub.f32 0.0, %v5847_v44 }
 0x47f   : > { %v1376_v26 = vpop.permute.xlu1 %1375  ;;  %v1374_v16 = vpop.permute.xlu0 %1373 }
 0x480   : > { %v1912_v17 = vsel %vm3960_vm0, %v1656_v28, %v1376_v26  ;;  %v1911_v48 = vsel %vm3960_vm0, %v1655_v34, %v1374_v16  ;;  %v1672_v34 = vsub.f32 0.0, %v5848_v29  ;;  %v5849_v26 = vld [vmem:[#allocation206_spill] sm:$0xff] }
 0x481   : > { %2168 = vst [vmem:[%s3972_s27 + $0x758] sm:$0xff] %v1912_v17  ;;  %2167 = vst [vmem:[%s3972_s27 + $0x750] sm:$0xff] %v1911_v48  ;;  %v1671_v16 = vsub.f32 0.0, %v5849_v26 }
 0x483   : > { %v1380_v43 = vpop.permute.xlu1 %1379  ;;  %v1378_v60 = vpop.permute.xlu0 %1377 }
 0x484   : > { %v1914_v32 = vsel %vm3960_vm0, %v1658_v23, %v1380_v43  ;;  %v1913_v33 = vsel %vm3960_vm0, %v1657_v11, %v1378_v60  ;;  %v5850_v11 = vld [vmem:[#allocation207_spill] sm:$0xff] }
 0x485   : > { %2170 = vst [vmem:[%s3972_s27 + $0x768] sm:$0xff] %v1914_v32  ;;  %2169 = vst [vmem:[%s3972_s27 + $0x760] sm:$0xff] %v1913_v33  ;;  %v1673_v43 = vsub.f32 0.0, %v5850_v11 }
 0x487   : > { %v1384_v53 = vpop.permute.xlu1 %1383  ;;  %v1382_v9 = vpop.permute.xlu0 %1381 }
 0x488   : > { %v1916_v0 = vsel %vm3960_vm0, %v1660_v31, %v1384_v53  ;;  %v1915_v20 = vsel %vm3960_vm0, %v1659_v52, %v1382_v9  ;;  %v5851_v31 = vld [vmem:[#allocation208_spill] sm:$0xff]  ;;  %v1675_v52 = vsub.f32 0.0, %v5852_v8 }
 0x489   : > { %2172 = vst [vmem:[%s3972_s27 + $0x778] sm:$0xff] %v1916_v0  ;;  %2171 = vst [vmem:[%s3972_s27 + $0x770] sm:$0xff] %v1915_v20  ;;  %v1676_v27 = vsub.f32 0.0, %v5851_v31 }
 0x48b   : > { %v1388_v36 = vpop.permute.xlu1 %1387  ;;  %v1386_v56 = vpop.permute.xlu0 %1385 }
 0x48c   : > { %v1918_v57 = vsel %vm3960_vm0, %v1662_v39, %v1388_v36  ;;  %v1917_v37 = vsel %vm3960_vm0, %v1661_v50, %v1386_v56 }
 0x48d   : > { %2174 = vst [vmem:[%s3972_s27 + $0x788] sm:$0xff] %v1918_v57  ;;  %2173 = vst [vmem:[%s3972_s27 + $0x780] sm:$0xff] %v1917_v37 }
 0x48f   : > { %v1392_v1 = vpop.permute.xlu1 %1391  ;;  %v1390_v35 = vpop.permute.xlu0 %1389 }
 0x490   : > { %v1920_v12 = vsel %vm3960_vm0, %v1664_v47, %v1392_v1  ;;  %v1919_v62 = vsel %vm3960_vm0, %v1663_v61, %v1390_v35 }
 0x491   : > { %2176 = vst [vmem:[%s3972_s27 + $0x798] sm:$0xff] %v1920_v12  ;;  %2175 = vst [vmem:[%s3972_s27 + $0x790] sm:$0xff] %v1919_v62 }
 0x493   : > { %v1396_v40 = vpop.permute.xlu1 %1395  ;;  %v1394_v41 = vpop.permute.xlu0 %1393 }
 0x494   : > { %v1922_v25 = vsel %vm3960_vm0, %v1666_v55, %v1396_v40  ;;  %v1921_v13 = vsel %vm3960_vm0, %v1665_v24, %v1394_v41 }
 0x495   : > { %2178 = vst [vmem:[%s3972_s27 + $0x7a8] sm:$0xff] %v1922_v25  ;;  %2177 = vst [vmem:[%s3972_s27 + $0x7a0] sm:$0xff] %v1921_v13 }
 0x497   : > { %v1400_v7 = vpop.permute.xlu1 %1399  ;;  %v1398_v4 = vpop.permute.xlu0 %1397 }
 0x498   : > { %v1924_v5 = vsel %vm3960_vm0, %v1668_v3, %v1400_v7  ;;  %v1923_v58 = vsel %vm3960_vm0, %v1667_v6, %v1398_v4 }
 0x499   : > { %2180 = vst [vmem:[%s3972_s27 + $0x7b8] sm:$0xff] %v1924_v5  ;;  %2179 = vst [vmem:[%s3972_s27 + $0x7b0] sm:$0xff] %v1923_v58 }
 0x49b   : > { %v1404_v51 = vpop.permute.xlu1 %1403  ;;  %v1402_v14 = vpop.permute.xlu0 %1401 }
 0x49c   : > { %v1926_v15 = vsel %vm3960_vm0, %v1670_v19, %v1404_v51  ;;  %v1925_v28 = vsel %vm3960_vm0, %v1669_v45, %v1402_v14 }
 0x49d   : > { %2182 = vst [vmem:[%s3972_s27 + $0x7c8] sm:$0xff] %v1926_v15  ;;  %2181 = vst [vmem:[%s3972_s27 + $0x7c0] sm:$0xff] %v1925_v28 }
 0x49f   : > { %v1408_v17 = vpop.permute.xlu1 %1407  ;;  %v1406_v48 = vpop.permute.xlu0 %1405 }
 0x4a0   : > { %v1928_v22 = vsel %vm3960_vm0, %v1672_v34, %v1408_v17  ;;  %v1927_v23 = vsel %vm3960_vm0, %v1671_v16, %v1406_v48 }
 0x4a1   : > { %2184 = vst [vmem:[%s3972_s27 + $0x7d8] sm:$0xff] %v1928_v22  ;;  %2183 = vst [vmem:[%s3972_s27 + $0x7d0] sm:$0xff] %v1927_v23 }
 0x4a3   : > { %v1412_v60 = vpop.permute.xlu1 %1411  ;;  %v1410_v32 = vpop.permute.xlu0 %1409 }
 0x4a4   : > { %v1930_v33 = vsel %vm3960_vm0, %v1674_v49, %v1412_v60  ;;  %v1929_v30 = vsel %vm3960_vm0, %v1673_v43, %v1410_v32 }
 0x4a5   : > { %2186 = vst [vmem:[%s3972_s27 + $0x7e8] sm:$0xff] %v1930_v33  ;;  %2185 = vst [vmem:[%s3972_s27 + $0x7e0] sm:$0xff] %v1929_v30 }
 0x4a7   : > { %v1416_v53 = vpop.permute.xlu1 %1415  ;;  %v1414_v9 = vpop.permute.xlu0 %1413 }
 0x4a8   : > { %v1932_v0 = vsel %vm3960_vm0, %v1676_v27, %v1416_v53  ;;  %v1931_v20 = vsel %vm3960_vm0, %v1675_v52, %v1414_v9 }
 0x4a9   : > { %2188 = vst [vmem:[%s3972_s27 + $0x7f8] sm:$0xff] %v1932_v0  ;;  %2187 = vst [vmem:[%s3972_s27 + $0x7f0] sm:$0xff] %v1931_v20 }
 0x4aa   : > { %2641 = shalt.err (!%p2638_p9)
}
 0x4ab   : > { %s2642_s16 = scalar_lea.hbm %s5387_s4, 32768  ;;  %s2646_s22 = scalar_lea.hbm %s5438_s1, 131072 }
 0x4ac   : > { %p2643_p13 = scmp.ne.s32.totalorder %s5387_s4, %s2642_s16  ;;  %p2647_p2 = scmp.lt.s32.totalorder %s5387_s4, %s5438_s1 }
 0x4ad   : > { %p2648_p3 = scmp.lt.s32.totalorder %s2646_s22, %s2642_s16 }
 0x4ae   : > { %p2644_p1 = pnand %p2643_p13, %p5853_p11 }
 0x4af   : > { %p2649_p6 = por %p2648_p3, %p2647_p2 }
 0x4b0   : > { %p2645_p0 = pneg %p2644_p1 }
 0x4b2   : > { %p2650_p10 = pnand %p2649_p6, %p2645_p0 }
 0x4b4   : > { %2653 = shalt.err (!%p2650_p10)
}
 0x4b5   : > { %s2700_s30 = smov 128   ;;  %s2701_s25 = smov 8  }
 0x4b6   : > { %2294 = dma.vmem_to_hbm [thread:$0]  (%p5853_p11), %s5389_s29, 32768, %s5387_s4, %s2190_s10, %s2700_s30, %s2700_s30, %s2701_s25  }
 0x4b7 PF: > { %p2305_p12 = scmp.ge.s32.totalorder %s2692_s9, 2  ;;  %s2218_s17 = sand.u32 1, %s2680_s6  }
 0x4b8   : > { %p5854_p4 = scmp.ne.s32.totalorder %s5444_s19, 0  ;;  %s2219_s27 = scalar_lea.sflag [#allocation4], %s2218_s17 }
 0x4ba   : > { %p2301_p5 = pnand %p2305_p12, %p5854_p4 }
 0x4bc   : > { %p2302_p7 = pneg %p2301_p5 }
 0x4be   : > { %2675 = dma.done.wait (%p2302_p7), %s2219_s27, 32768  }
 0x4bf   : > { %2677 = vsyncadd (%p2302_p7), %s2219_s27, 4294934528  ;;  %p14_p8 = scmp.ge.s32.totalorder %s2737_s12, 6   ;;  %s5855_s6 = smov %s2684_s7 }
 0x4c0   : > { %s5856_s7 = smov %s2688_s8  ;;  %s5857_s8 = smov %s2749_s15 }
 0x4c1   : > { %s5858_s9 = smov %s2737_s12  ;;  %16 = sbr.rel (!%p14_p8) target bundleno = 5 (0x5), region = 69 }
 0x4c6   :  { %2224 = vsyncpa [#allocation3], 1 }
 0x4c7   :  { %2226 = vsyncpa [#allocation3 + $0x1], 1 }
 0x4c8   :  { %2227 = vsyncpa [#allocation4], 1 }
 0x4c9   :  { %2229 = vsyncpa [#allocation4 + $0x1], 1 }

</bundles_post_ra>
